<compile_context>
chip_gen: v7x
topology: tpu7x:2x2x1
jax: 0.10.0
libtpu: 0.0.40
codegen_flags: <defaults>
</compile_context>

<pallas_src>
import functools

import jax
import jax.numpy as jnp
from jax.experimental import pallas as pl
from jax.experimental.pallas import tpu as pltpu

LANES = 128
TARGET_TILE_BYTES = 4 * 1024 * 1024     # per input buffer, per pipeline slot
SMALL_FAST_PATH_ELEMS = 1 << 16         # below this, plain XLA reduce wins


def _l1_sum_kernel(real_ref, fake_ref, out_ref, *,
                   rows_total, tile_rows, tiles_per_part, acc_rows, any_masking):
    p = pl.program_id(0)   # partition axis ("parallel": megacore split on v7x)
    i = pl.program_id(1)   # reduction axis ("arbitrary")
    g = p * tiles_per_part + i   # logical (unclamped) global tile index

    # Output block index is constant along the reduction axis -> out_ref is a
    # VMEM-resident (acc_rows, 128) accumulator for this partition.
    @pl.when(i == 0)
    def _():
        out_ref[...] = jnp.zeros_like(out_ref)

    diff = real_ref[...].astype(jnp.float32) - fake_ref[...].astype(jnp.float32)
    absd = jnp.abs(diff)

    def accumulate(vals):
        # Pure-VPU folding of (tile_rows, 128) into (acc_rows, 128):
        # acc_rows independent add chains expose ILP across the VALU slots.
        out_ref[...] += vals.reshape(-1, acc_rows, LANES).sum(axis=0)

    if any_masking:
        # Only tiles whose row range extends past `rows_total` need masking:
        # the (possibly partial) last real tile and the fully-out-of-range
        # overhang tile from an uneven 2-way partition.  Gate the iota /
        # compare / select so every other grid step stays mask-free.
        needs_mask = (g + 1) * tile_rows > rows_total

        @pl.when(needs_mask)
        def _():
            base_row = g * tile_rows
            row_ids = base_row + jax.lax.broadcasted_iota(
                jnp.int32, (tile_rows, LANES), 0)
            accumulate(jnp.where(row_ids < rows_total, absd, 0.0))

        @pl.when(jnp.logical_not(needs_mask))
        def _():
            accumulate(absd)
    else:
        accumulate(absd)


def cycle_loss(real: jax.Array, fake: jax.Array) -> jax.Array:
    """mean(|real - fake|) over all elements (scalar, float32) == F.l1_loss."""
    assert real.shape == fake.shape, "l1_loss with identical shapes (no broadcast)"
    n_elems = real.size

    # Small-input fast path: pallas_call launch overhead dominates here.
    if n_elems < SMALL_FAST_PATH_ELEMS:
        return jnp.mean(jnp.abs(real.astype(jnp.float32) - fake.astype(jnp.float32)))

    # Flatten to a lane-dense (rows, 128) slab.  Pad (HBM copy) only in the rare
    # case n_elems is not a multiple of 128; padded zeros contribute |0-0| = 0.
    pad = (-n_elems) % LANES

    def prep(x):
        x = jnp.ravel(x)
        if pad:
            x = jnp.pad(x, (0, pad))
        return x.reshape(-1, LANES)

    real2d = prep(real)
    fake2d = prep(fake)
    rows = real2d.shape[0]

    # Dtype-aware tile size: ~TARGET_TILE_BYTES per input buffer.
    itemsize = max(jnp.dtype(real.dtype).itemsize, jnp.dtype(fake.dtype).itemsize)
    max_tile_rows = max(64, (TARGET_TILE_BYTES // (LANES * itemsize)) // 64 * 64)
    tile_rows = rows if rows <= max_tile_rows else max_tile_rows

    # Wide accumulator when possible (8 independent vadd chains per lane group).
    if tile_rows % 64 == 0:
        acc_rows = 64
    elif tile_rows % 8 == 0:
        acc_rows = 8
    else:
        acc_rows = tile_rows        # single-tile ragged case: whole tile

    n_tiles = pl.cdiv(rows, tile_rows)
    # Split across both TensorCores whenever there is more than one tile
    # (uneven splits allowed; overhang tile is clamped + fully masked).
    n_parts = 2 if n_tiles >= 2 else 1
    tiles_per_part = pl.cdiv(n_tiles, n_parts)
    any_masking = (rows % tile_rows != 0) or (n_parts * tiles_per_part != n_tiles)

    def in_idx(p, i):
        g = p * tiles_per_part + i
        return (jnp.minimum(g, n_tiles - 1), 0)   # clamp overhang tile

    kernel = functools.partial(
        _l1_sum_kernel,
        rows_total=rows,
        tile_rows=tile_rows,
        tiles_per_part=tiles_per_part,
        acc_rows=acc_rows,
        any_masking=any_masking,
    )

    # VMEM budget: 2 inputs x 2 pipeline buffers x tile bytes + accumulators,
    # with 25% headroom; capped at 48 MiB (fits v7x's 64 MiB physical VMEM).
    tile_bytes = tile_rows * LANES * itemsize
    acc_bytes = acc_rows * LANES * 4
    need = 2 * 2 * tile_bytes + 2 * acc_bytes
    vmem_limit = int(min(max(int(1.25 * need), 8 * 1024 * 1024), 48 * 1024 * 1024))

    partials = pl.pallas_call(
        kernel,
        out_shape=jax.ShapeDtypeStruct((n_parts * acc_rows, LANES), jnp.float32),
        grid_spec=pltpu.PrefetchScalarGridSpec(
            num_scalar_prefetch=0,
            grid=(n_parts, tiles_per_part),
            in_specs=[
                pl.BlockSpec((tile_rows, LANES), in_idx),
                pl.BlockSpec((tile_rows, LANES), in_idx),
            ],
            out_specs=pl.BlockSpec((acc_rows, LANES), lambda p, i: (p, 0)),
        ),
        compiler_params=pltpu.CompilerParams(
            dimension_semantics=("parallel", "arbitrary"),
            vmem_limit_bytes=vmem_limit,
        ),
    )(real2d, fake2d)

    # Single tiny final reduction + mean scaling outside the kernel.
    return jnp.sum(partials) * (1.0 / float(n_elems))


if __name__ == "__main__":
    key = jax.random.PRNGKey(0)
    k1, k2, k3, k4, k5, k6 = jax.random.split(key, 6)

    # 1) Small NCHW tensors (CycleGAN-style) -> fast path.
    real_s = jax.random.normal(k1, (2, 4, 16, 16), dtype=jnp.float32)
    fake_s = jax.random.normal(k2, (2, 4, 16, 16), dtype=jnp.float32)
    loss_s = cycle_loss(real_s, fake_s)
    jax.block_until_ready(loss_s)
    ref_s = jnp.mean(jnp.abs(real_s - fake_s))
    assert jnp.allclose(loss_s, ref_s, rtol=1e-4, atol=1e-6), (loss_s, ref_s)

    # 2) Medium tensors -> Pallas kernel, single tile / single partition.
    real_m = jax.random.normal(k3, (2, 8, 128, 128), dtype=jnp.float32)
    fake_m = jax.random.normal(k4, (2, 8, 128, 128), dtype=jnp.float32)
    loss_m = cycle_loss(real_m, fake_m)
    jax.block_until_ready(loss_m)
    ref_m = jnp.mean(jnp.abs(real_m - fake_m))
    assert jnp.allclose(loss_m, ref_m, rtol=1e-4, atol=1e-6), (loss_m, ref_m)

    # 3) Larger tensors -> multi-tile, uneven 2-way partition, masked overhang.
    real_l = jax.random.normal(k5, (4, 3, 512, 512), dtype=jnp.float32)
    fake_l = jax.random.normal(k6, (4, 3, 512, 512), dtype=jnp.float32)
    loss_l = cycle_loss(real_l, fake_l)
    jax.block_until_ready(loss_l)
    ref_l = jnp.mean(jnp.abs(real_l - fake_l))
    assert jnp.allclose(loss_l, ref_l, rtol=1e-4, atol=1e-6), (loss_l, ref_l)

    print("KERNEL_OK")
</pallas_src>

<mosaic_0001>
module attributes {stable_mosaic.version = 11 : i64} {
  func.func @_l1_sum_kernel(%arg0: i32, %arg1: i32, %arg2: memref<2048x128xf32, #tpu.memory_space<vmem>>, %arg3: memref<2048x128xf32, #tpu.memory_space<vmem>>, %arg4: memref<64x128xf32, #tpu.memory_space<vmem>>) attributes {dimension_semantics = [#tpu.dimension_semantics<parallel>, #tpu.dimension_semantics<arbitrary>], iteration_bounds = array<i64: 1, 1>, scalar_prefetch = 0 : i64, scratch_operands = 0 : i64, tpu.core_type = #tpu.core_type<tc>, window_params = [{transform_indices = @transform_0, window_bounds = array<i64: 2048, 128>}, {transform_indices = @transform_1, window_bounds = array<i64: 2048, 128>}, {transform_indices = @transform_2, window_bounds = array<i64: 64, 128>}]} {
    %c0_i32 = arith.constant 0 : i32
    %0 = arith.cmpi eq, %arg1, %c0_i32 : i32
    %1 = arith.extui %0 : i1 to i32
    %c0_i32_0 = arith.constant 0 : i32
    %2 = arith.cmpi ne, %1, %c0_i32_0 : i32
    scf.if %2 {
      %cst_8 = arith.constant 0.000000e+00 : f32
      %12 = vector.broadcast %cst_8 : f32 to vector<64x128xf32>
      %c0_9 = arith.constant 0 : index
      %c0_10 = arith.constant 0 : index
      %13 = vector.load %arg4[%c0_9, %c0_10] : memref<64x128xf32, #tpu.memory_space<vmem>>, vector<64x128xf32>
      tpu.vector_store %arg4[%c0_9, %c0_10], %12 {strides = array<i32>} : memref<64x128xf32, #tpu.memory_space<vmem>>, vector<64x128xf32>,
    } else {
    }
    %c0 = arith.constant 0 : index
    %c0_1 = arith.constant 0 : index
    %3 = vector.load %arg2[%c0, %c0_1] : memref<2048x128xf32, #tpu.memory_space<vmem>>, vector<2048x128xf32>
    %c0_2 = arith.constant 0 : index
    %c0_3 = arith.constant 0 : index
    %4 = vector.load %arg3[%c0_2, %c0_3] : memref<2048x128xf32, #tpu.memory_space<vmem>>, vector<2048x128xf32>
    %5 = arith.subf %3, %4 : vector<2048x128xf32>
    %6 = math.absf %5 : vector<2048x128xf32>
    %c0_4 = arith.constant 0 : index
    %c0_5 = arith.constant 0 : index
    %7 = vector.load %arg4[%c0_4, %c0_5] : memref<64x128xf32, #tpu.memory_space<vmem>>, vector<64x128xf32>
    %8 = vector.shape_cast %6 : vector<2048x128xf32> to vector<32x64x128xf32>
    %cst = arith.constant dense<0.000000e+00> : vector<64x128xf32>
    %9 = vector.multi_reduction <add>, %8, %cst [0] : vector<32x64x128xf32> to vector<64x128xf32>
    %10 = arith.addf %7, %9 : vector<64x128xf32>
    %c0_6 = arith.constant 0 : index
    %c0_7 = arith.constant 0 : index
    %11 = vector.load %arg4[%c0_6, %c0_7] : memref<64x128xf32, #tpu.memory_space<vmem>>, vector<64x128xf32>
    tpu.vector_store %arg4[%c0_6, %c0_7], %10 {strides = array<i32>} : memref<64x128xf32, #tpu.memory_space<vmem>>, vector<64x128xf32>,
    return
  }
  func.func @transform_0(%arg0: i32, %arg1: i32) -> (i32, i32) {
    %c1_i32 = arith.constant 1 : i32
    %0 = arith.muli %arg0, %c1_i32 : i32
    %1 = arith.addi %0, %arg1 : i32
    %c0_i32 = arith.constant 0 : i32
    %2 = arith.minsi %1, %c0_i32 : i32
    %c0_i32_0 = arith.constant 0 : i32
    %c0_i32_1 = arith.constant 0 : i32
    return %2, %c0_i32_0 : i32, i32
  }
  func.func @transform_1(%arg0: i32, %arg1: i32) -> (i32, i32) {
    %c1_i32 = arith.constant 1 : i32
    %0 = arith.muli %arg0, %c1_i32 : i32
    %1 = arith.addi %0, %arg1 : i32
    %c0_i32 = arith.constant 0 : i32
    %2 = arith.minsi %1, %c0_i32 : i32
    %c0_i32_0 = arith.constant 0 : i32
    %c0_i32_1 = arith.constant 0 : i32
    return %2, %c0_i32_0 : i32, i32
  }
  func.func @transform_2(%arg0: i32, %arg1: i32) -> (i32, i32) {
    %c0_i32 = arith.constant 0 : i32
    %c0_i32_0 = arith.constant 0 : i32
    return %arg0, %c0_i32 : i32, i32
  }
}

</mosaic_0001>

<bundles_post_ra>
// kernel: tpu_custom_call.1
= control target key start
LH: loop header
LB: loop body
LE: loop exit
PB: predicated region body
PF: predicated region fallthrough
CT: control target
= control target key end

     0   :  { %7 = vsyncpa [#allocation3], 0  ;;  %s4389_s0 = inlined_call_operand.hbm [shape: f32[2048,128], index: 0, kind: input, shape index: {}]   ;;  %s4390_s1 = inlined_call_operand.hbm [shape: f32[2048,128], index: 1, kind: input, shape index: {}]   ;;  %s4391_s2 = inlined_call_operand.hbm [shape: f32[64,128], index: 2, kind: output, shape index: {}]  }
   0x1   :  { %8 = vsyncpa [#allocation6], 0 }
   0x2   :  { %9 = vsyncpa [#allocation4], 0  ;;  %s1468_s9 = smov [#allocation2]   ;;  %s1396_s13 = scalar_lea.hbm %s4389_s0, 32768 }
   0x3   :  { %s21_s10 = sshll.u32 %s1468_s9, 4  ;;  %p1397_p0 = scmp.ne.s32.totalorder %s4389_s0, %s1396_s13  ;;  %s22_s10 = int_to_ptr.vmem [resolvable:$true] %s21_s10 }
   0x4   :  { %p1400_p1 = scmp.lt.u32.totalorder %s1396_s13, %s4389_s0 }
   0x6   :  { %p1402_p2 = pnand %p1400_p1, %p1397_p0 }
   0x8   :  { %1405 = shalt.err (!%p1402_p2)
}
   0x9   :  { %s1406_s18 = scalar_lea.vmem %s22_s10, 32768  ;;  %p1411_p4 = scmp.lt.s32.totalorder %s22_s10, %s22_s10 }
   0xa   :  { %p1407_p3 = scmp.ne.s32.totalorder %s22_s10, %s1406_s18  ;;  %p1412_p5 = scmp.lt.s32.totalorder %s1406_s18, %s1406_s18 }
   0xc   :  { %p1413_p6 = por %p1412_p5, %p1411_p4 }
   0xe   :  { %p1414_p7 = pnand %p1413_p6, %p1407_p3 }
  0x10   :  { %1417 = shalt.err (!%p1414_p7)
}
  0x11   :  { %s1469_s19 = smov 128   ;;  %s1470_s20 = smov 8  }
  0x12   :  { %27 = dma.hbm_to_vmem [thread:$0]  %s4389_s0, 32768, %s22_s10, [#allocation3], %s1469_s19, %s1469_s19, %s1470_s20  }
  0x13   :  { %s1471_s23 = smov [#allocation5]   ;;  %s1418_s27 = scalar_lea.hbm %s4390_s1, 32768 }
  0x14   :  { %s39_s24 = sshll.u32 %s1471_s23, 4  ;;  %p1419_p8 = scmp.ne.s32.totalorder %s4390_s1, %s1418_s27  ;;  %s40_s24 = int_to_ptr.vmem [resolvable:$true] %s39_s24 }
  0x15   :  { %p1422_p9 = scmp.lt.u32.totalorder %s1418_s27, %s4390_s1 }
  0x17   :  { %p1424_p10 = pnand %p1422_p9, %p1419_p8 }
  0x19   :  { %1427 = shalt.err (!%p1424_p10)
}
  0x1a   :  { %s1428_s4 = scalar_lea.vmem %s40_s24, 32768  ;;  %p1433_p12 = scmp.lt.s32.totalorder %s40_s24, %s40_s24 }
  0x1b   :  { %p1429_p11 = scmp.ne.s32.totalorder %s40_s24, %s1428_s4  ;;  %p1434_p13 = scmp.lt.s32.totalorder %s1428_s4, %s1428_s4 }
  0x1d   :  { %p1435_p0 = por %p1434_p13, %p1433_p12 }
  0x1f   :  { %p1436_p1 = pnand %p1435_p0, %p1429_p11 }
  0x21   :  { %1439 = shalt.err (!%p1436_p1)
}
  0x22   :  { %45 = dma.hbm_to_vmem [thread:$0]  %s4390_s1, 32768, %s40_s24, [#allocation6], %s1469_s19, %s1469_s19, %s1470_s20  }
  0x23   :  { %1462 = dma.done.wait [#allocation3], 32768  }
  0x24   :  { %1463 = vsyncadd [#allocation3], 4294934528 }
  0x25   :  { %1464 = dma.done.wait [#allocation6], 32768  }
  0x26   :  { %1465 = vsyncadd [#allocation6], 4294934528  ;;  %v72_v0 = vld [vmem:[#allocation2] sm:$0xff]  ;;  %v73_v1 = vld [vmem:[#allocation2 + $0x8] sm:$0xff]  ;;  %s1472_s1 = smov [#allocation7]  }
  0x27   :  { %v1518_v2 = vld [vmem:[#allocation2 + $0x10] sm:$0xff]  ;;  %v328_v3 = vld [vmem:[#allocation5] sm:$0xff]  ;;  %v1520_v4 = vld [vmem:[#allocation2 + $0x18] sm:$0xff]  ;;  %s1373_s6 = sshll.u32 %s1472_s1, 4  ;;  %s1374_s6 = int_to_ptr.vmem [resolvable:$true] %s1373_s6 }
  0x28   :  { %v1522_v5 = vld [vmem:[#allocation2 + $0x20] sm:$0xff]  ;;  %v1524_v6 = vld [vmem:[#allocation2 + $0x28] sm:$0xff]  ;;  %v1526_v8 = vld [vmem:[#allocation2 + $0x30] sm:$0xff]  ;;  %v584_v18 = vsub.f32 %v72_v0, %v328_v3  ;;  %s1440_s7 = scalar_lea.vmem %s1374_s6, 1024  ;;  %p1445_p3 = scmp.lt.s32.totalorder %s1374_s6, %s1374_s6 }
  0x29   :  { %v329_v7 = vld [vmem:[#allocation5 + $0x8] sm:$0xff]  ;;  %v1528_v9 = vld [vmem:[#allocation2 + $0x38] sm:$0xff]  ;;  %v1530_v10 = vld [vmem:[#allocation2 + $0x40] sm:$0xff]  ;;  %p1441_p2 = scmp.ne.s32.totalorder %s1374_s6, %s1440_s7  ;;  %p1446_p4 = scmp.lt.s32.totalorder %s1440_s7, %s1440_s7 }
  0x2a   :  { %v330_v11 = vld [vmem:[#allocation5 + $0x10] sm:$0xff]  ;;  %v1532_v12 = vld [vmem:[#allocation2 + $0x48] sm:$0xff]  ;;  %v1536_v14 = vld [vmem:[#allocation2 + $0x58] sm:$0xff]  ;;  %v585_v25 = vsub.f32 %v73_v1, %v329_v7  ;;  %v1605_v51 = vand.u32 2147483647, %v584_v18 }
  0x2b   :  { %v1534_v13 = vld [vmem:[#allocation2 + $0x50] sm:$0xff]  ;;  %v1538_v15 = vld [vmem:[#allocation5 + $0x18] sm:$0xff]  ;;  %v1540_v16 = vld [vmem:[#allocation5 + $0x20] sm:$0xff]  ;;  %v586_v32 = vsub.f32 %v1518_v2, %v330_v11  ;;  %p1447_p5 = por %p1446_p4, %p1445_p3 }
  0x2c   :  { %v1542_v17 = vld [vmem:[#allocation5 + $0x28] sm:$0xff]  ;;  %v1544_v19 = vld [vmem:[#allocation2 + $0x60] sm:$0xff]  ;;  %v1548_v21 = vld [vmem:[#allocation2 + $0x70] sm:$0xff]  ;;  %v587_v39 = vsub.f32 %v1520_v4, %v1538_v15  ;;  %v588_v40 = vsub.f32 %v1522_v5, %v1540_v16  ;;  %4825 = vst [vmem:[#allocation17_spill] sm:$0xff] %v1605_v51  ;;  %v1625_v61 = vand.u32 2147483647, %v585_v25 }
  0x2d   :  { %v1546_v20 = vld [vmem:[#allocation2 + $0x68] sm:$0xff]  ;;  %v1550_v22 = vld [vmem:[#allocation5 + $0x30] sm:$0xff]  ;;  %v1552_v23 = vld [vmem:[#allocation5 + $0x38] sm:$0xff]  ;;  %v589_v41 = vsub.f32 %v1524_v6, %v1542_v17  ;;  %v1645_v7 = vand.u32 2147483647, %v586_v32  ;;  %p1448_p6 = pnand %p1447_p5, %p1441_p2 }
  0x2e   :  { %v1554_v24 = vld [vmem:[#allocation5 + $0x40] sm:$0xff]  ;;  %v1556_v26 = vld [vmem:[#allocation2 + $0x78] sm:$0xff]  ;;  %v1560_v28 = vld [vmem:[#allocation2 + $0x88] sm:$0xff]  ;;  %4830 = vst [vmem:[#allocation22_spill] sm:$0xff] %v1625_v61  ;;  %v1665_v4 = vand.u32 2147483647, %v587_v39  ;;  %v4854_v32 = vsub.f32 %v1526_v8, %v1550_v22 }
  0x2f   :  { %v1558_v27 = vld [vmem:[#allocation2 + $0x80] sm:$0xff]  ;;  %4819 = vst [vmem:[#allocation11_spill] sm:$0xff] %v1560_v28  ;;  %v1562_v29 = vld [vmem:[#allocation5 + $0x48] sm:$0xff]  ;;  %v1564_v30 = vld [vmem:[#allocation5 + $0x50] sm:$0xff]  ;;  %v1685_v5 = vand.u32 2147483647, %v588_v40 }
  0x30   :  { %v1566_v31 = vld [vmem:[#allocation5 + $0x58] sm:$0xff]  ;;  %v1569_v33 = vld [vmem:[#allocation2 + $0x90] sm:$0xff]  ;;  %v1573_v35 = vld [vmem:[#allocation2 + $0xa0] sm:$0xff]  ;;  %4834 = vst [vmem:[#allocation26_spill] sm:$0xff] %v1645_v7  ;;  %v1705_v6 = vand.u32 2147483647, %v589_v41 }
  0x31   :  { %v1571_v34 = vld [vmem:[#allocation2 + $0x98] sm:$0xff]  ;;  %4821 = vst [vmem:[#allocation13_spill] sm:$0xff] %v1573_v35  ;;  %v1575_v36 = vld [vmem:[#allocation5 + $0x60] sm:$0xff]  ;;  %v1577_v37 = vld [vmem:[#allocation5 + $0x68] sm:$0xff] }
  0x32   :  { %4820 = vst [vmem:[#allocation12_spill] sm:$0xff] %v1571_v34  ;;  %v1579_v38 = vld [vmem:[#allocation5 + $0x70] sm:$0xff]  ;;  %v1587_v42 = vld [vmem:[#allocation2 + $0xa8] sm:$0xff]  ;;  %v1591_v44 = vld [vmem:[#allocation2 + $0xb8] sm:$0xff] }
  0x33   :  { %v1589_v43 = vld [vmem:[#allocation2 + $0xb0] sm:$0xff]  ;;  %4823 = vst [vmem:[#allocation15_spill] sm:$0xff] %v1591_v44  ;;  %v1593_v45 = vld [vmem:[#allocation5 + $0x78] sm:$0xff]  ;;  %v1595_v46 = vld [vmem:[#allocation5 + $0x80] sm:$0xff] }
  0x34   :  { %4822 = vst [vmem:[#allocation14_spill] sm:$0xff] %v1589_v43  ;;  %v1597_v47 = vld [vmem:[#allocation5 + $0x88] sm:$0xff]  ;;  %v1607_v52 = vld [vmem:[#allocation2 + $0xc0] sm:$0xff]  ;;  %v1611_v54 = vld [vmem:[#allocation2 + $0xd0] sm:$0xff] }
  0x35   :  { %4824 = vst [vmem:[#allocation16_spill] sm:$0xff] %v1597_v47  ;;  %v1609_v53 = vld [vmem:[#allocation2 + $0xc8] sm:$0xff]  ;;  %4826 = vst [vmem:[#allocation18_spill] sm:$0xff] %v1611_v54  ;;  %v1613_v55 = vld [vmem:[#allocation5 + $0x90] sm:$0xff] }
  0x36   :  { %4827 = vst [vmem:[#allocation19_spill] sm:$0xff] %v1613_v55  ;;  %v1615_v56 = vld [vmem:[#allocation5 + $0x98] sm:$0xff]  ;;  %v1617_v57 = vld [vmem:[#allocation5 + $0xa0] sm:$0xff]  ;;  %v1631_v0 = vld [vmem:[#allocation2 + $0xe8] sm:$0xff] }
  0x37   :  { %4828 = vst [vmem:[#allocation20_spill] sm:$0xff] %v1615_v56  ;;  %4829 = vst [vmem:[#allocation21_spill] sm:$0xff] %v1617_v57  ;;  %v1627_v62 = vld [vmem:[#allocation2 + $0xd8] sm:$0xff]  ;;  %v1629_v63 = vld [vmem:[#allocation2 + $0xe0] sm:$0xff] }
  0x38   :  { %4831 = vst [vmem:[#allocation23_spill] sm:$0xff] %v1631_v0  ;;  %v1633_v1 = vld [vmem:[#allocation5 + $0xa8] sm:$0xff]  ;;  %v1635_v2 = vld [vmem:[#allocation5 + $0xb0] sm:$0xff]  ;;  %v1637_v3 = vld [vmem:[#allocation5 + $0xb8] sm:$0xff] }
  0x39   :  { %4832 = vst [vmem:[#allocation24_spill] sm:$0xff] %v1635_v2  ;;  %4833 = vst [vmem:[#allocation25_spill] sm:$0xff] %v1637_v3  ;;  %v1647_v11 = vld [vmem:[#allocation2 + $0xf0] sm:$0xff]  ;;  %v1649_v15 = vld [vmem:[#allocation2 + $0xf8] sm:$0xff] }
  0x3a   :  { %v1651_v16 = vld [vmem:[#allocation2 + $0x100] sm:$0xff]  ;;  %v1655_v18 = vld [vmem:[#allocation5 + $0xc8] sm:$0xff]  ;;  %v1657_v25 = vld [vmem:[#allocation5 + $0xd0] sm:$0xff]  ;;  %4839 = vst [vmem:[#allocation31_spill] sm:$0xff] %v1665_v4 }
  0x3b   :  { %4835 = vst [vmem:[#allocation27_spill] sm:$0xff] %v1651_v16  ;;  %v1653_v17 = vld [vmem:[#allocation5 + $0xc0] sm:$0xff]  ;;  %4837 = vst [vmem:[#allocation29_spill] sm:$0xff] %v1655_v18  ;;  %v1667_v60 = vld [vmem:[#allocation2 + $0x108] sm:$0xff] }
  0x3c   :  { %4836 = vst [vmem:[#allocation28_spill] sm:$0xff] %v1653_v17  ;;  %4838 = vst [vmem:[#allocation30_spill] sm:$0xff] %v1657_v25  ;;  %v1669_v59 = vld [vmem:[#allocation2 + $0x110] sm:$0xff]  ;;  %v1671_v58 = vld [vmem:[#allocation2 + $0x118] sm:$0xff] }
  0x3d   :  { %4840 = vst [vmem:[#allocation32_spill] sm:$0xff] %v1671_v58  ;;  %v1673_v50 = vld [vmem:[#allocation5 + $0xd8] sm:$0xff]  ;;  %v1675_v49 = vld [vmem:[#allocation5 + $0xe0] sm:$0xff]  ;;  %v1677_v48 = vld [vmem:[#allocation5 + $0xe8] sm:$0xff] }
  0x3e   :  { %4841 = vst [vmem:[#allocation33_spill] sm:$0xff] %v1673_v50  ;;  %4842 = vst [vmem:[#allocation34_spill] sm:$0xff] %v1675_v49  ;;  %v1687_v4 = vld [vmem:[#allocation2 + $0x120] sm:$0xff]  ;;  %v1689_v7 = vld [vmem:[#allocation2 + $0x128] sm:$0xff] }
  0x3f   :  { %4843 = vst [vmem:[#allocation35_spill] sm:$0xff] %v1677_v48  ;;  %4844 = vst [vmem:[#allocation36_spill] sm:$0xff] %v1685_v5  ;;  %v1691_v61 = vld [vmem:[#allocation2 + $0x130] sm:$0xff]  ;;  %v1695_v47 = vld [vmem:[#allocation5 + $0xf8] sm:$0xff] }
  0x40   :  { %4845 = vst [vmem:[#allocation37_spill] sm:$0xff] %v1691_v61  ;;  %v1693_v51 = vld [vmem:[#allocation5 + $0xf0] sm:$0xff]  ;;  %4847 = vst [vmem:[#allocation39_spill] sm:$0xff] %v1695_v47  ;;  %v1697_v28 = vld [vmem:[#allocation5 + $0x100] sm:$0xff] }
  0x41   :  { %4846 = vst [vmem:[#allocation38_spill] sm:$0xff] %v1693_v51  ;;  %4848 = vst [vmem:[#allocation40_spill] sm:$0xff] %v1697_v28  ;;  %v1707_v5 = vld [vmem:[#allocation2 + $0x138] sm:$0xff]  ;;  %v1709_v57 = vld [vmem:[#allocation2 + $0x140] sm:$0xff] }
  0x42   :  { %4849 = vst [vmem:[#allocation41_spill] sm:$0xff] %v1705_v6  ;;  %v1711_v35 = vld [vmem:[#allocation2 + $0x148] sm:$0xff]  ;;  %v1715_v34 = vld [vmem:[#allocation5 + $0x110] sm:$0xff]  ;;  %v1717_v55 = vld [vmem:[#allocation5 + $0x118] sm:$0xff]  ;;  %v1728_v6 = vand.u32 2147483647, %v4854_v32  ;;  %v4860_v32 = vsub.f32 %v1528_v9, %v1552_v23 }
  0x43   :  { %4850 = vst [vmem:[#allocation42_spill] sm:$0xff] %v1711_v35  ;;  %v1713_v56 = vld [vmem:[#allocation5 + $0x108] sm:$0xff]  ;;  %4852 = vst [vmem:[#allocation44_spill] sm:$0xff] %v1715_v34  ;;  %v1730_v3 = vld [vmem:[#allocation2 + $0x150] sm:$0xff] }
  0x44   :  { %4851 = vst [vmem:[#allocation43_spill] sm:$0xff] %v1713_v56  ;;  %4853 = vst [vmem:[#allocation45_spill] sm:$0xff] %v1717_v55  ;;  %v1732_v44 = vld [vmem:[#allocation2 + $0x158] sm:$0xff]  ;;  %v1734_v2 = vld [vmem:[#allocation2 + $0x160] sm:$0xff]  ;;  %v1751_v40 = vand.u32 2147483647, %v4860_v32  ;;  %v4866_v32 = vsub.f32 %v1530_v10, %v1554_v24 }
  0x45   :  { %4855 = vst [vmem:[#allocation46_spill] sm:$0xff] %v1728_v6  ;;  %4856 = vst [vmem:[#allocation47_spill] sm:$0xff] %v1734_v2  ;;  %v1736_v43 = vld [vmem:[#allocation5 + $0x120] sm:$0xff]  ;;  %v1738_v39 = vld [vmem:[#allocation5 + $0x128] sm:$0xff] }
  0x46   :  { %4857 = vst [vmem:[#allocation48_spill] sm:$0xff] %v1736_v43  ;;  %4858 = vst [vmem:[#allocation49_spill] sm:$0xff] %v1738_v39  ;;  %v1740_v17 = vld [vmem:[#allocation5 + $0x130] sm:$0xff]  ;;  %v1753_v6 = vld [vmem:[#allocation2 + $0x168] sm:$0xff]  ;;  %v1774_v8 = vand.u32 2147483647, %v4866_v32  ;;  %v4872_v32 = vsub.f32 %v1532_v12, %v1562_v29 }
  0x47   :  { %4859 = vst [vmem:[#allocation50_spill] sm:$0xff] %v1740_v17  ;;  %4861 = vst [vmem:[#allocation51_spill] sm:$0xff] %v1751_v40  ;;  %v1755_v25 = vld [vmem:[#allocation2 + $0x170] sm:$0xff]  ;;  %v1757_v54 = vld [vmem:[#allocation2 + $0x178] sm:$0xff] }
  0x48   :  { %4862 = vst [vmem:[#allocation52_spill] sm:$0xff] %v1757_v54  ;;  %v1759_v18 = vld [vmem:[#allocation5 + $0x138] sm:$0xff]  ;;  %v1761_v41 = vld [vmem:[#allocation5 + $0x140] sm:$0xff]  ;;  %v1763_v50 = vld [vmem:[#allocation5 + $0x148] sm:$0xff]  ;;  %v1797_v9 = vand.u32 2147483647, %v4872_v32  ;;  %v4878_v32 = vsub.f32 %v1534_v13, %v1564_v30 }
  0x49   :  { %4863 = vst [vmem:[#allocation53_spill] sm:$0xff] %v1759_v18  ;;  %4864 = vst [vmem:[#allocation54_spill] sm:$0xff] %v1761_v41  ;;  %v1776_v40 = vld [vmem:[#allocation2 + $0x180] sm:$0xff]  ;;  %v1778_v48 = vld [vmem:[#allocation2 + $0x188] sm:$0xff] }
  0x4a   :  { %4865 = vst [vmem:[#allocation55_spill] sm:$0xff] %v1763_v50  ;;  %4867 = vst [vmem:[#allocation56_spill] sm:$0xff] %v1774_v8  ;;  %v1780_v0 = vld [vmem:[#allocation2 + $0x190] sm:$0xff]  ;;  %v1784_v22 = vld [vmem:[#allocation5 + $0x158] sm:$0xff]  ;;  %v1820_v10 = vand.u32 2147483647, %v4878_v32  ;;  %v4886_v32 = vsub.f32 %v1536_v14, %v1566_v31 }
  0x4b   :  { %4868 = vst [vmem:[#allocation57_spill] sm:$0xff] %v1780_v0  ;;  %v1782_v49 = vld [vmem:[#allocation5 + $0x150] sm:$0xff]  ;;  %4870 = vst [vmem:[#allocation59_spill] sm:$0xff] %v1784_v22  ;;  %v1786_v51 = vld [vmem:[#allocation5 + $0x160] sm:$0xff] }
  0x4c   :  { %4869 = vst [vmem:[#allocation58_spill] sm:$0xff] %v1782_v49  ;;  %4871 = vst [vmem:[#allocation60_spill] sm:$0xff] %v1786_v51  ;;  %v1799_v8 = vld [vmem:[#allocation2 + $0x198] sm:$0xff]  ;;  %v1801_v28 = vld [vmem:[#allocation2 + $0x1a0] sm:$0xff]  ;;  %v1843_v12 = vand.u32 2147483647, %v4886_v32  ;;  %v4893_v32 = vsub.f32 %v1544_v19, %v1575_v36 }
  0x4d   :  { %4873 = vst [vmem:[#allocation61_spill] sm:$0xff] %v1797_v9  ;;  %v1803_v16 = vld [vmem:[#allocation2 + $0x1a8] sm:$0xff]  ;;  %v1807_v23 = vld [vmem:[#allocation5 + $0x170] sm:$0xff]  ;;  %v1809_v56 = vld [vmem:[#allocation5 + $0x178] sm:$0xff] }
  0x4e   :  { %4874 = vst [vmem:[#allocation62_spill] sm:$0xff] %v1803_v16  ;;  %v1805_v47 = vld [vmem:[#allocation5 + $0x168] sm:$0xff]  ;;  %4876 = vst [vmem:[#allocation64_spill] sm:$0xff] %v1807_v23  ;;  %v1822_v9 = vld [vmem:[#allocation2 + $0x1b0] sm:$0xff]  ;;  %v1866_v13 = vand.u32 2147483647, %v4893_v32  ;;  %v4901_v32 = vsub.f32 %v1546_v20, %v1577_v37 }
  0x4f   :  { %4875 = vst [vmem:[#allocation63_spill] sm:$0xff] %v1805_v47  ;;  %4877 = vst [vmem:[#allocation65_spill] sm:$0xff] %v1809_v56  ;;  %v1824_v55 = vld [vmem:[#allocation2 + $0x1b8] sm:$0xff]  ;;  %v1826_v58 = vld [vmem:[#allocation2 + $0x1c0] sm:$0xff] }
  0x50   :  { %4879 = vst [vmem:[#allocation66_spill] sm:$0xff] %v1820_v10  ;;  %4880 = vst [vmem:[#allocation67_spill] sm:$0xff] %v1822_v9  ;;  %v1828_v34 = vld [vmem:[#allocation5 + $0x180] sm:$0xff]  ;;  %v1830_v24 = vld [vmem:[#allocation5 + $0x188] sm:$0xff]  ;;  %v1889_v14 = vand.u32 2147483647, %v4901_v32  ;;  %v4909_v32 = vsub.f32 %v1548_v21, %v1579_v38 }
  0x51   :  { %4881 = vst [vmem:[#allocation68_spill] sm:$0xff] %v1824_v55  ;;  %4882 = vst [vmem:[#allocation69_spill] sm:$0xff] %v1826_v58  ;;  %v1832_v43 = vld [vmem:[#allocation5 + $0x190] sm:$0xff]  ;;  %v1845_v10 = vld [vmem:[#allocation2 + $0x1c8] sm:$0xff] }
  0x52   :  { %4883 = vst [vmem:[#allocation70_spill] sm:$0xff] %v1828_v34  ;;  %4884 = vst [vmem:[#allocation71_spill] sm:$0xff] %v1830_v24  ;;  %v1847_v17 = vld [vmem:[#allocation2 + $0x1d0] sm:$0xff]  ;;  %v1849_v61 = vld [vmem:[#allocation2 + $0x1d8] sm:$0xff]  ;;  %v1912_v19 = vand.u32 2147483647, %v4909_v32  ;;  %v4915_v32 = vsub.f32 %v1556_v26, %v1593_v45 }
  0x53   :  { %4885 = vst [vmem:[#allocation72_spill] sm:$0xff] %v1832_v43  ;;  %4887 = vst [vmem:[#allocation73_spill] sm:$0xff] %v1843_v12  ;;  %v1851_v39 = vld [vmem:[#allocation5 + $0x198] sm:$0xff]  ;;  %v1853_v29 = vld [vmem:[#allocation5 + $0x1a0] sm:$0xff] }
  0x54   :  { %4888 = vst [vmem:[#allocation74_spill] sm:$0xff] %v1847_v17  ;;  %4889 = vst [vmem:[#allocation75_spill] sm:$0xff] %v1849_v61  ;;  %v1855_v18 = vld [vmem:[#allocation5 + $0x1a8] sm:$0xff]  ;;  %v1868_v12 = vld [vmem:[#allocation2 + $0x1e0] sm:$0xff]  ;;  %v1935_v20 = vand.u32 2147483647, %v4915_v32  ;;  %v4923_v32 = vsub.f32 %v1558_v27, %v1595_v46 }
  0x55   :  { %4890 = vst [vmem:[#allocation76_spill] sm:$0xff] %v1851_v39  ;;  %4891 = vst [vmem:[#allocation77_spill] sm:$0xff] %v1853_v29  ;;  %v1870_v50 = vld [vmem:[#allocation2 + $0x1e8] sm:$0xff]  ;;  %v1872_v35 = vld [vmem:[#allocation2 + $0x1f0] sm:$0xff] }
  0x56   :  { %4892 = vst [vmem:[#allocation78_spill] sm:$0xff] %v1855_v18  ;;  %4894 = vst [vmem:[#allocation79_spill] sm:$0xff] %v1866_v13  ;;  %v1874_v41 = vld [vmem:[#allocation5 + $0x1b0] sm:$0xff]  ;;  %v1876_v30 = vld [vmem:[#allocation5 + $0x1b8] sm:$0xff]  ;;  %v1958_v21 = vand.u32 2147483647, %v4923_v32 }
  0x57   :  { %4895 = vst [vmem:[#allocation80_spill] sm:$0xff] %v1868_v12  ;;  %4896 = vst [vmem:[#allocation81_spill] sm:$0xff] %v1870_v50  ;;  %v1878_v49 = vld [vmem:[#allocation5 + $0x1c0] sm:$0xff]  ;;  %v1891_v13 = vld [vmem:[#allocation2 + $0x1f8] sm:$0xff] }
  0x58   :  { %4897 = vst [vmem:[#allocation82_spill] sm:$0xff] %v1872_v35  ;;  %4898 = vst [vmem:[#allocation83_spill] sm:$0xff] %v1874_v41  ;;  %v1893_v51 = vld [vmem:[#allocation2 + $0x200] sm:$0xff]  ;;  %v1895_v2 = vld [vmem:[#allocation2 + $0x208] sm:$0xff] }
  0x59   :  { %4899 = vst [vmem:[#allocation84_spill] sm:$0xff] %v1876_v30  ;;  %4900 = vst [vmem:[#allocation85_spill] sm:$0xff] %v1878_v49  ;;  %v1897_v22 = vld [vmem:[#allocation5 + $0x1c8] sm:$0xff]  ;;  %v1899_v31 = vld [vmem:[#allocation5 + $0x1d0] sm:$0xff] }
  0x5a   :  { %4902 = vst [vmem:[#allocation86_spill] sm:$0xff] %v1889_v14  ;;  %4903 = vst [vmem:[#allocation87_spill] sm:$0xff] %v1891_v13  ;;  %v1901_v47 = vld [vmem:[#allocation5 + $0x1d8] sm:$0xff]  ;;  %v1914_v14 = vld [vmem:[#allocation2 + $0x210] sm:$0xff] }
  0x5b   :  { %4904 = vst [vmem:[#allocation88_spill] sm:$0xff] %v1893_v51  ;;  %4905 = vst [vmem:[#allocation89_spill] sm:$0xff] %v1895_v2  ;;  %v1916_v56 = vld [vmem:[#allocation2 + $0x218] sm:$0xff]  ;;  %v1918_v54 = vld [vmem:[#allocation2 + $0x220] sm:$0xff] }
  0x5c   :  { %4906 = vst [vmem:[#allocation90_spill] sm:$0xff] %v1897_v22  ;;  %4907 = vst [vmem:[#allocation91_spill] sm:$0xff] %v1899_v31  ;;  %v1920_v23 = vld [vmem:[#allocation5 + $0x1e0] sm:$0xff]  ;;  %v1922_v36 = vld [vmem:[#allocation5 + $0x1e8] sm:$0xff] }
  0x5d   :  { %4908 = vst [vmem:[#allocation92_spill] sm:$0xff] %v1901_v47  ;;  %4910 = vst [vmem:[#allocation93_spill] sm:$0xff] %v1912_v19  ;;  %v1924_v34 = vld [vmem:[#allocation5 + $0x1f0] sm:$0xff]  ;;  %v1937_v19 = vld [vmem:[#allocation2 + $0x228] sm:$0xff] }
  0x5e   :  { %4911 = vst [vmem:[#allocation94_spill] sm:$0xff] %v1918_v54  ;;  %4912 = vst [vmem:[#allocation95_spill] sm:$0xff] %v1920_v23  ;;  %v1939_v43 = vld [vmem:[#allocation2 + $0x230] sm:$0xff]  ;;  %v1941_v0 = vld [vmem:[#allocation2 + $0x238] sm:$0xff] }
  0x5f   :  { %4913 = vst [vmem:[#allocation96_spill] sm:$0xff] %v1922_v36  ;;  %4914 = vst [vmem:[#allocation97_spill] sm:$0xff] %v1924_v34  ;;  %v1943_v24 = vld [vmem:[#allocation5 + $0x1f8] sm:$0xff]  ;;  %v1945_v37 = vld [vmem:[#allocation5 + $0x200] sm:$0xff] }
  0x60   :  { %4916 = vst [vmem:[#allocation98_spill] sm:$0xff] %v1935_v20  ;;  %4917 = vst [vmem:[#allocation99_spill] sm:$0xff] %v1937_v19  ;;  %v1947_v39 = vld [vmem:[#allocation5 + $0x208] sm:$0xff]  ;;  %v1960_v20 = vld [vmem:[#allocation2 + $0x240] sm:$0xff] }
  0x61   :  { %4918 = vst [vmem:[#allocation100_spill] sm:$0xff] %v1939_v43  ;;  %4919 = vst [vmem:[#allocation101_spill] sm:$0xff] %v1941_v0  ;;  %v1962_v18 = vld [vmem:[#allocation2 + $0x248] sm:$0xff]  ;;  %v1964_v16 = vld [vmem:[#allocation2 + $0x250] sm:$0xff] }
  0x62   :  { %4920 = vst [vmem:[#allocation102_spill] sm:$0xff] %v1943_v24  ;;  %4921 = vst [vmem:[#allocation103_spill] sm:$0xff] %v1945_v37  ;;  %v1966_v29 = vld [vmem:[#allocation5 + $0x210] sm:$0xff]  ;;  %v1968_v38 = vld [vmem:[#allocation5 + $0x218] sm:$0xff] }
  0x63   :  { %4922 = vst [vmem:[#allocation104_spill] sm:$0xff] %v1947_v39  ;;  %4924 = vst [vmem:[#allocation105_spill] sm:$0xff] %v1958_v21  ;;  %v1970_v41 = vld [vmem:[#allocation5 + $0x220] sm:$0xff]  ;;  %v4932_v26 = vld [vmem:[#allocation16_spill] sm:$0xff] }
  0x64   :  { %4925 = vst [vmem:[#allocation106_spill] sm:$0xff] %v1960_v20  ;;  %4926 = vst [vmem:[#allocation107_spill] sm:$0xff] %v1962_v18  ;;  %v4931_v32 = vld [vmem:[#allocation11_spill] sm:$0xff]  ;;  %v1983_v58 = vld [vmem:[#allocation2 + $0x258] sm:$0xff] }
  0x65   :  { %4927 = vst [vmem:[#allocation108_spill] sm:$0xff] %v1964_v16  ;;  %4928 = vst [vmem:[#allocation109_spill] sm:$0xff] %v1966_v29  ;;  %v4933_v21 = vsub.f32 %v4931_v32, %v4932_v26  ;;  %v1985_v30 = vld [vmem:[#allocation2 + $0x260] sm:$0xff]  ;;  %v1987_v55 = vld [vmem:[#allocation2 + $0x268] sm:$0xff] }
  0x66   :  { %4929 = vst [vmem:[#allocation110_spill] sm:$0xff] %v1968_v38  ;;  %4930 = vst [vmem:[#allocation111_spill] sm:$0xff] %v1970_v41  ;;  %v1989_v9 = vld [vmem:[#allocation5 + $0x228] sm:$0xff]  ;;  %v1991_v45 = vld [vmem:[#allocation5 + $0x230] sm:$0xff] }
  0x67   :  { %v1981_v49 = vand.u32 2147483647, %v4933_v21  ;;  %4935 = vst [vmem:[#allocation16_spill] sm:$0xff] %v1983_v58  ;;  %4936 = vst [vmem:[#allocation112_spill] sm:$0xff] %v1985_v30  ;;  %v1993_v22 = vld [vmem:[#allocation5 + $0x238] sm:$0xff]  ;;  %v4941_v32 = vld [vmem:[#allocation19_spill] sm:$0xff] }
  0x68   :  { %4937 = vst [vmem:[#allocation113_spill] sm:$0xff] %v1987_v55  ;;  %4938 = vst [vmem:[#allocation114_spill] sm:$0xff] %v1989_v9  ;;  %v4942_v27 = vsub.f32 %v1569_v33, %v4941_v32  ;;  %v2006_v47 = vld [vmem:[#allocation2 + $0x270] sm:$0xff]  ;;  %v2008_v61 = vld [vmem:[#allocation2 + $0x278] sm:$0xff] }
  0x69   :  { %4934 = vst [vmem:[#allocation11_spill] sm:$0xff] %v1981_v49  ;;  %4939 = vst [vmem:[#allocation115_spill] sm:$0xff] %v1991_v45  ;;  %v2010_v31 = vld [vmem:[#allocation2 + $0x280] sm:$0xff]  ;;  %v2014_v46 = vld [vmem:[#allocation5 + $0x248] sm:$0xff] }
  0x6a   :  { %4940 = vst [vmem:[#allocation116_spill] sm:$0xff] %v1993_v22  ;;  %v2004_v49 = vand.u32 2147483647, %v4942_v27  ;;  %4944 = vst [vmem:[#allocation117_spill] sm:$0xff] %v2006_v47  ;;  %v2012_v17 = vld [vmem:[#allocation5 + $0x240] sm:$0xff]  ;;  %v2016_v23 = vld [vmem:[#allocation5 + $0x250] sm:$0xff] }
  0x6b   :  { %4945 = vst [vmem:[#allocation118_spill] sm:$0xff] %v2008_v61  ;;  %4946 = vst [vmem:[#allocation119_spill] sm:$0xff] %v2010_v31  ;;  %v4950_v32 = vld [vmem:[#allocation12_spill] sm:$0xff]  ;;  %v2031_v36 = vld [vmem:[#allocation2 + $0x290] sm:$0xff] }
  0x6c   :  { %4943 = vst [vmem:[#allocation19_spill] sm:$0xff] %v2004_v49  ;;  %4947 = vst [vmem:[#allocation120_spill] sm:$0xff] %v2012_v17  ;;  %v4951_v26 = vld [vmem:[#allocation20_spill] sm:$0xff]  ;;  %v2033_v50 = vld [vmem:[#allocation2 + $0x298] sm:$0xff] }
  0x6d   :  { %4948 = vst [vmem:[#allocation121_spill] sm:$0xff] %v2014_v46  ;;  %4949 = vst [vmem:[#allocation122_spill] sm:$0xff] %v2016_v23  ;;  %v4952_v49 = vsub.f32 %v4950_v32, %v4951_v26  ;;  %v2029_v35 = vld [vmem:[#allocation2 + $0x288] sm:$0xff]  ;;  %v2035_v12 = vld [vmem:[#allocation5 + $0x258] sm:$0xff] }
  0x6e   :  { %4954 = vst [vmem:[#allocation20_spill] sm:$0xff] %v2029_v35  ;;  %4955 = vst [vmem:[#allocation123_spill] sm:$0xff] %v2031_v36  ;;  %v2037_v21 = vld [vmem:[#allocation5 + $0x260] sm:$0xff]  ;;  %v2039_v24 = vld [vmem:[#allocation5 + $0x268] sm:$0xff] }
  0x6f   :  { %v2027_v34 = vand.u32 2147483647, %v4952_v49  ;;  %4956 = vst [vmem:[#allocation124_spill] sm:$0xff] %v2033_v50  ;;  %4957 = vst [vmem:[#allocation125_spill] sm:$0xff] %v2035_v12  ;;  %v4960_v32 = vld [vmem:[#allocation13_spill] sm:$0xff]  ;;  %v2052_v2 = vld [vmem:[#allocation2 + $0x2a0] sm:$0xff] }
  0x70   :  { %4958 = vst [vmem:[#allocation126_spill] sm:$0xff] %v2037_v21  ;;  %4959 = vst [vmem:[#allocation127_spill] sm:$0xff] %v2039_v24  ;;  %v4961_v33 = vld [vmem:[#allocation21_spill] sm:$0xff]  ;;  %v2054_v37 = vld [vmem:[#allocation2 + $0x2a8] sm:$0xff] }
  0x71   :  { %4953 = vst [vmem:[#allocation12_spill] sm:$0xff] %v2027_v34  ;;  %v4962_v34 = vsub.f32 %v4960_v32, %v4961_v33  ;;  %4964 = vst [vmem:[#allocation21_spill] sm:$0xff] %v2052_v2  ;;  %v2056_v51 = vld [vmem:[#allocation2 + $0x2b0] sm:$0xff]  ;;  %v2060_v27 = vld [vmem:[#allocation5 + $0x278] sm:$0xff]  ;;  %v4970_v32 = vsub.f32 %v1587_v42, %v1633_v1 }
  0x72   :  { %4965 = vst [vmem:[#allocation128_spill] sm:$0xff] %v2054_v37  ;;  %4966 = vst [vmem:[#allocation129_spill] sm:$0xff] %v2056_v51  ;;  %v2058_v13 = vld [vmem:[#allocation5 + $0x270] sm:$0xff]  ;;  %v2062_v29 = vld [vmem:[#allocation5 + $0x280] sm:$0xff] }
  0x73   :  { %v2050_v39 = vand.u32 2147483647, %v4962_v34  ;;  %4967 = vst [vmem:[#allocation130_spill] sm:$0xff] %v2058_v13  ;;  %4968 = vst [vmem:[#allocation131_spill] sm:$0xff] %v2060_v27  ;;  %v2073_v26 = vand.u32 2147483647, %v4970_v32 }
  0x74   :  { %4969 = vst [vmem:[#allocation132_spill] sm:$0xff] %v2062_v29  ;;  %v2077_v41 = vld [vmem:[#allocation2 + $0x2c0] sm:$0xff]  ;;  %v2079_v54 = vld [vmem:[#allocation2 + $0x2c8] sm:$0xff]  ;;  %v2083_v49 = vld [vmem:[#allocation5 + $0x290] sm:$0xff] }
  0x75   :  { %4963 = vst [vmem:[#allocation13_spill] sm:$0xff] %v2050_v39  ;;  %4971 = vst [vmem:[#allocation133_spill] sm:$0xff] %v2073_v26  ;;  %v2075_v39 = vld [vmem:[#allocation2 + $0x2b8] sm:$0xff]  ;;  %v2081_v38 = vld [vmem:[#allocation5 + $0x288] sm:$0xff] }
  0x76   :  { %4972 = vst [vmem:[#allocation134_spill] sm:$0xff] %v2075_v39  ;;  %4973 = vst [vmem:[#allocation135_spill] sm:$0xff] %v2079_v54  ;;  %v2085_v9 = vld [vmem:[#allocation5 + $0x298] sm:$0xff]  ;;  %v4978_v33 = vld [vmem:[#allocation24_spill] sm:$0xff] }
  0x77   :  { %4974 = vst [vmem:[#allocation136_spill] sm:$0xff] %v2081_v38  ;;  %4975 = vst [vmem:[#allocation137_spill] sm:$0xff] %v2083_v49  ;;  %v4977_v32 = vld [vmem:[#allocation14_spill] sm:$0xff]  ;;  %v2098_v0 = vld [vmem:[#allocation2 + $0x2d0] sm:$0xff] }
  0x78   :  { %4976 = vst [vmem:[#allocation138_spill] sm:$0xff] %v2085_v9  ;;  %v4979_v26 = vsub.f32 %v4977_v32, %v4978_v33  ;;  %4981 = vst [vmem:[#allocation24_spill] sm:$0xff] %v2098_v0  ;;  %v2100_v45 = vld [vmem:[#allocation2 + $0x2d8] sm:$0xff]  ;;  %v2102_v43 = vld [vmem:[#allocation2 + $0x2e0] sm:$0xff] }
  0x79   :  { %4982 = vst [vmem:[#allocation139_spill] sm:$0xff] %v2100_v45  ;;  %4983 = vst [vmem:[#allocation140_spill] sm:$0xff] %v2102_v43  ;;  %v2104_v19 = vld [vmem:[#allocation5 + $0x2a0] sm:$0xff]  ;;  %v2106_v34 = vld [vmem:[#allocation5 + $0x2a8] sm:$0xff] }
  0x7a   :  { %v2096_v22 = vand.u32 2147483647, %v4979_v26  ;;  %4984 = vst [vmem:[#allocation141_spill] sm:$0xff] %v2104_v19  ;;  %4985 = vst [vmem:[#allocation142_spill] sm:$0xff] %v2106_v34  ;;  %v2108_v17 = vld [vmem:[#allocation5 + $0x2b0] sm:$0xff]  ;;  %v4987_v32 = vld [vmem:[#allocation15_spill] sm:$0xff] }
  0x7b   :  { %4986 = vst [vmem:[#allocation143_spill] sm:$0xff] %v2108_v17  ;;  %v4988_v42 = vld [vmem:[#allocation25_spill] sm:$0xff]  ;;  %v2121_v16 = vld [vmem:[#allocation2 + $0x2e8] sm:$0xff]  ;;  %v2125_v18 = vld [vmem:[#allocation2 + $0x2f8] sm:$0xff] }
  0x7c   :  { %4980 = vst [vmem:[#allocation14_spill] sm:$0xff] %v2096_v22  ;;  %v4989_v22 = vsub.f32 %v4987_v32, %v4988_v42  ;;  %4991 = vst [vmem:[#allocation25_spill] sm:$0xff] %v2121_v16  ;;  %v2123_v46 = vld [vmem:[#allocation2 + $0x2f0] sm:$0xff]  ;;  %v2127_v20 = vld [vmem:[#allocation5 + $0x2b8] sm:$0xff] }
  0x7d   :  { %4992 = vst [vmem:[#allocation144_spill] sm:$0xff] %v2123_v46  ;;  %4993 = vst [vmem:[#allocation145_spill] sm:$0xff] %v2125_v18  ;;  %v2129_v1 = vld [vmem:[#allocation5 + $0x2c0] sm:$0xff]  ;;  %v2131_v12 = vld [vmem:[#allocation5 + $0x2c8] sm:$0xff] }
  0x7e   :  { %v2119_v23 = vand.u32 2147483647, %v4989_v22  ;;  %4994 = vst [vmem:[#allocation146_spill] sm:$0xff] %v2127_v20  ;;  %4995 = vst [vmem:[#allocation147_spill] sm:$0xff] %v2131_v12  ;;  %v4996_v32 = vld [vmem:[#allocation28_spill] sm:$0xff]  ;;  %v2144_v24 = vld [vmem:[#allocation2 + $0x300] sm:$0xff] }
  0x7f   :  { %v4997_v33 = vsub.f32 %v1607_v52, %v4996_v32  ;;  %v2146_v55 = vld [vmem:[#allocation2 + $0x308] sm:$0xff]  ;;  %v2148_v21 = vld [vmem:[#allocation2 + $0x310] sm:$0xff]  ;;  %v2152_v26 = vld [vmem:[#allocation5 + $0x2d8] sm:$0xff] }
  0x80   :  { %4990 = vst [vmem:[#allocation15_spill] sm:$0xff] %v2119_v23  ;;  %4998 = vst [vmem:[#allocation28_spill] sm:$0xff] %v2146_v55  ;;  %v2150_v30 = vld [vmem:[#allocation5 + $0x2d0] sm:$0xff]  ;;  %v2154_v13 = vld [vmem:[#allocation5 + $0x2e0] sm:$0xff] }
  0x81   :  { %v2142_v23 = vand.u32 2147483647, %v4997_v33  ;;  %4999 = vst [vmem:[#allocation148_spill] sm:$0xff] %v2148_v21  ;;  %5000 = vst [vmem:[#allocation149_spill] sm:$0xff] %v2150_v30  ;;  %v5003_v32 = vld [vmem:[#allocation29_spill] sm:$0xff]  ;;  %v2167_v31 = vld [vmem:[#allocation2 + $0x318] sm:$0xff] }
  0x82   :  { %5001 = vst [vmem:[#allocation150_spill] sm:$0xff] %v2152_v26  ;;  %5002 = vst [vmem:[#allocation151_spill] sm:$0xff] %v2154_v13  ;;  %v5004_v42 = vsub.f32 %v1609_v53, %v5003_v32  ;;  %v2169_v27 = vld [vmem:[#allocation2 + $0x320] sm:$0xff]  ;;  %v2171_v61 = vld [vmem:[#allocation2 + $0x328] sm:$0xff] }
  0x83   :  { %5005 = vst [vmem:[#allocation29_spill] sm:$0xff] %v2167_v31  ;;  %5006 = vst [vmem:[#allocation152_spill] sm:$0xff] %v2169_v27  ;;  %v2173_v47 = vld [vmem:[#allocation5 + $0x2e8] sm:$0xff]  ;;  %v2175_v22 = vld [vmem:[#allocation5 + $0x2f0] sm:$0xff] }
  0x84   :  { %v2165_v29 = vand.u32 2147483647, %v5004_v42  ;;  %5007 = vst [vmem:[#allocation153_spill] sm:$0xff] %v2171_v61  ;;  %5008 = vst [vmem:[#allocation154_spill] sm:$0xff] %v2173_v47  ;;  %v2177_v38 = vld [vmem:[#allocation5 + $0x2f8] sm:$0xff]  ;;  %v2190_v49 = vld [vmem:[#allocation2 + $0x330] sm:$0xff] }
  0x85   :  { %5009 = vst [vmem:[#allocation155_spill] sm:$0xff] %v2175_v22  ;;  %5010 = vst [vmem:[#allocation156_spill] sm:$0xff] %v2177_v38  ;;  %v5011_v32 = vld [vmem:[#allocation18_spill] sm:$0xff]  ;;  %v2194_v35 = vld [vmem:[#allocation2 + $0x340] sm:$0xff] }
  0x86   :  { %v5012_v52 = vld [vmem:[#allocation30_spill] sm:$0xff]  ;;  %5017 = vst [vmem:[#allocation158_spill] sm:$0xff] %v2194_v35  ;;  %v2196_v58 = vld [vmem:[#allocation5 + $0x300] sm:$0xff]  ;;  %v2198_v33 = vld [vmem:[#allocation5 + $0x308] sm:$0xff] }
  0x87   :  { %v5013_v9 = vsub.f32 %v5011_v32, %v5012_v52  ;;  %5015 = vst [vmem:[#allocation30_spill] sm:$0xff] %v2190_v49  ;;  %v2192_v36 = vld [vmem:[#allocation2 + $0x338] sm:$0xff]  ;;  %5018 = vst [vmem:[#allocation159_spill] sm:$0xff] %v2198_v33  ;;  %v2200_v19 = vld [vmem:[#allocation5 + $0x310] sm:$0xff] }
  0x88   :  { %5016 = vst [vmem:[#allocation157_spill] sm:$0xff] %v2192_v36  ;;  %5019 = vst [vmem:[#allocation160_spill] sm:$0xff] %v2200_v19  ;;  %v5020_v32 = vld [vmem:[#allocation33_spill] sm:$0xff]  ;;  %v2213_v17 = vld [vmem:[#allocation2 + $0x348] sm:$0xff] }
  0x89   :  { %v2188_v50 = vand.u32 2147483647, %v5013_v9  ;;  %v5021_v53 = vsub.f32 %v1627_v62, %v5020_v32  ;;  %5023 = vst [vmem:[#allocation161_spill] sm:$0xff] %v2213_v17  ;;  %v2215_v51 = vld [vmem:[#allocation2 + $0x350] sm:$0xff]  ;;  %v2217_v34 = vld [vmem:[#allocation2 + $0x358] sm:$0xff]  ;;  %v2221_v42 = vld [vmem:[#allocation5 + $0x320] sm:$0xff] }
  0x8a   :  { %5024 = vst [vmem:[#allocation162_spill] sm:$0xff] %v2215_v51  ;;  %5025 = vst [vmem:[#allocation163_spill] sm:$0xff] %v2217_v34  ;;  %v2219_v37 = vld [vmem:[#allocation5 + $0x318] sm:$0xff]  ;;  %v2223_v20 = vld [vmem:[#allocation5 + $0x328] sm:$0xff] }
  0x8b   :  { %5014 = vst [vmem:[#allocation18_spill] sm:$0xff] %v2188_v50  ;;  %v2211_v50 = vand.u32 2147483647, %v5021_v53  ;;  %5026 = vst [vmem:[#allocation164_spill] sm:$0xff] %v2219_v37  ;;  %v5029_v32 = vld [vmem:[#allocation34_spill] sm:$0xff]  ;;  %v2236_v39 = vld [vmem:[#allocation2 + $0x360] sm:$0xff] }
  0x8c   :  { %5027 = vst [vmem:[#allocation165_spill] sm:$0xff] %v2221_v42  ;;  %5028 = vst [vmem:[#allocation166_spill] sm:$0xff] %v2223_v20  ;;  %v5030_v52 = vsub.f32 %v1629_v63, %v5029_v32  ;;  %v2238_v12 = vld [vmem:[#allocation2 + $0x368] sm:$0xff]  ;;  %v2240_v54 = vld [vmem:[#allocation2 + $0x370] sm:$0xff] }
  0x8d   :  { %5022 = vst [vmem:[#allocation33_spill] sm:$0xff] %v2211_v50  ;;  %5032 = vst [vmem:[#allocation167_spill] sm:$0xff] %v2236_v39  ;;  %v2242_v2 = vld [vmem:[#allocation5 + $0x330] sm:$0xff]  ;;  %v2244_v9 = vld [vmem:[#allocation5 + $0x338] sm:$0xff] }
  0x8e   :  { %v2234_v50 = vand.u32 2147483647, %v5030_v52  ;;  %5033 = vst [vmem:[#allocation168_spill] sm:$0xff] %v2238_v12  ;;  %5034 = vst [vmem:[#allocation169_spill] sm:$0xff] %v2240_v54  ;;  %v2246_v30 = vld [vmem:[#allocation5 + $0x340] sm:$0xff]  ;;  %v2259_v43 = vld [vmem:[#allocation2 + $0x378] sm:$0xff] }
  0x8f   :  { %5035 = vst [vmem:[#allocation170_spill] sm:$0xff] %v2242_v2  ;;  %5036 = vst [vmem:[#allocation171_spill] sm:$0xff] %v2244_v9  ;;  %v5038_v32 = vld [vmem:[#allocation23_spill] sm:$0xff]  ;;  %v2263_v45 = vld [vmem:[#allocation2 + $0x388] sm:$0xff] }
  0x90   :  { %5031 = vst [vmem:[#allocation34_spill] sm:$0xff] %v2234_v50  ;;  %5037 = vst [vmem:[#allocation172_spill] sm:$0xff] %v2246_v30  ;;  %v5039_v62 = vld [vmem:[#allocation35_spill] sm:$0xff]  ;;  %v2265_v0 = vld [vmem:[#allocation5 + $0x348] sm:$0xff] }
  0x91   :  { %v5040_v50 = vsub.f32 %v5038_v32, %v5039_v62  ;;  %5042 = vst [vmem:[#allocation35_spill] sm:$0xff] %v2259_v43  ;;  %v2261_v26 = vld [vmem:[#allocation2 + $0x380] sm:$0xff]  ;;  %5043 = vst [vmem:[#allocation173_spill] sm:$0xff] %v2263_v45  ;;  %v2267_v53 = vld [vmem:[#allocation5 + $0x350] sm:$0xff] }
  0x92   :  { %5044 = vst [vmem:[#allocation174_spill] sm:$0xff] %v2265_v0  ;;  %5045 = vst [vmem:[#allocation175_spill] sm:$0xff] %v2267_v53  ;;  %v2269_v47 = vld [vmem:[#allocation5 + $0x358] sm:$0xff]  ;;  %v2282_v38 = vld [vmem:[#allocation2 + $0x390] sm:$0xff] }
  0x93   :  { %v2257_v13 = vand.u32 2147483647, %v5040_v50  ;;  %5046 = vst [vmem:[#allocation176_spill] sm:$0xff] %v2269_v47  ;;  %v5047_v32 = vld [vmem:[#allocation38_spill] sm:$0xff]  ;;  %5050 = vst [vmem:[#allocation177_spill] sm:$0xff] %v2282_v38  ;;  %v2286_v22 = vld [vmem:[#allocation2 + $0x3a0] sm:$0xff] }
  0x94   :  { %v5048_v63 = vsub.f32 %v1647_v11, %v5047_v32  ;;  %v2284_v18 = vld [vmem:[#allocation2 + $0x398] sm:$0xff]  ;;  %5052 = vst [vmem:[#allocation179_spill] sm:$0xff] %v2286_v22  ;;  %v2288_v46 = vld [vmem:[#allocation5 + $0x360] sm:$0xff]  ;;  %v2290_v52 = vld [vmem:[#allocation5 + $0x368] sm:$0xff] }
  0x95   :  { %5041 = vst [vmem:[#allocation23_spill] sm:$0xff] %v2257_v13  ;;  %5051 = vst [vmem:[#allocation178_spill] sm:$0xff] %v2284_v18  ;;  %v2292_v16 = vld [vmem:[#allocation5 + $0x370] sm:$0xff]  ;;  %v5056_v32 = vld [vmem:[#allocation39_spill] sm:$0xff] }
  0x96   :  { %v2280_v13 = vand.u32 2147483647, %v5048_v63  ;;  %5053 = vst [vmem:[#allocation180_spill] sm:$0xff] %v2288_v46  ;;  %5054 = vst [vmem:[#allocation181_spill] sm:$0xff] %v2290_v52  ;;  %v5057_v62 = vsub.f32 %v1649_v15, %v5056_v32  ;;  %v2305_v19 = vld [vmem:[#allocation2 + $0x3a8] sm:$0xff]  ;;  %v2307_v21 = vld [vmem:[#allocation2 + $0x3b0] sm:$0xff] }
  0x97   :  { %5055 = vst [vmem:[#allocation182_spill] sm:$0xff] %v2292_v16  ;;  %5059 = vst [vmem:[#allocation183_spill] sm:$0xff] %v2305_v19  ;;  %v2309_v33 = vld [vmem:[#allocation2 + $0x3b8] sm:$0xff]  ;;  %v2313_v50 = vld [vmem:[#allocation5 + $0x380] sm:$0xff] }
  0x98   :  { %5049 = vst [vmem:[#allocation38_spill] sm:$0xff] %v2280_v13  ;;  %v2303_v13 = vand.u32 2147483647, %v5057_v62  ;;  %5060 = vst [vmem:[#allocation184_spill] sm:$0xff] %v2307_v21  ;;  %v2311_v55 = vld [vmem:[#allocation5 + $0x378] sm:$0xff]  ;;  %v2315_v37 = vld [vmem:[#allocation5 + $0x388] sm:$0xff] }
  0x99   :  { %5061 = vst [vmem:[#allocation185_spill] sm:$0xff] %v2309_v33  ;;  %5062 = vst [vmem:[#allocation186_spill] sm:$0xff] %v2311_v55  ;;  %v5065_v32 = vld [vmem:[#allocation27_spill] sm:$0xff]  ;;  %v5066_v11 = vld [vmem:[#allocation40_spill] sm:$0xff] }
  0x9a   :  { %5058 = vst [vmem:[#allocation39_spill] sm:$0xff] %v2303_v13  ;;  %5063 = vst [vmem:[#allocation187_spill] sm:$0xff] %v2313_v50  ;;  %v5067_v13 = vsub.f32 %v5065_v32, %v5066_v11  ;;  %v2328_v61 = vld [vmem:[#allocation2 + $0x3c0] sm:$0xff]  ;;  %v2330_v42 = vld [vmem:[#allocation2 + $0x3c8] sm:$0xff] }
  0x9b   :  { %5064 = vst [vmem:[#allocation188_spill] sm:$0xff] %v2315_v37  ;;  %5068 = vst [vmem:[#allocation27_spill] sm:$0xff] %v2330_v42  ;;  %v2332_v27 = vld [vmem:[#allocation2 + $0x3d0] sm:$0xff]  ;;  %v2336_v63 = vld [vmem:[#allocation5 + $0x398] sm:$0xff] }
  0x9c   :  { %v2326_v20 = vand.u32 2147483647, %v5067_v13  ;;  %5069 = vst [vmem:[#allocation40_spill] sm:$0xff] %v2332_v27  ;;  %v2334_v31 = vld [vmem:[#allocation5 + $0x390] sm:$0xff]  ;;  %5071 = vst [vmem:[#allocation190_spill] sm:$0xff] %v2336_v63  ;;  %v2338_v2 = vld [vmem:[#allocation5 + $0x3a0] sm:$0xff] }
  0x9d   :  { %5070 = vst [vmem:[#allocation189_spill] sm:$0xff] %v2334_v31  ;;  %5072 = vst [vmem:[#allocation191_spill] sm:$0xff] %v2338_v2  ;;  %v5073_v32 = vld [vmem:[#allocation43_spill] sm:$0xff]  ;;  %v2351_v36 = vld [vmem:[#allocation2 + $0x3d8] sm:$0xff] }
  0x9e   :  { %v5074_v62 = vsub.f32 %v1667_v60, %v5073_v32  ;;  %5075 = vst [vmem:[#allocation43_spill] sm:$0xff] %v2351_v36  ;;  %v2353_v49 = vld [vmem:[#allocation2 + $0x3e0] sm:$0xff]  ;;  %v2355_v30 = vld [vmem:[#allocation2 + $0x3e8] sm:$0xff]  ;;  %v2359_v15 = vld [vmem:[#allocation5 + $0x3b0] sm:$0xff] }
  0x9f   :  { %5076 = vst [vmem:[#allocation192_spill] sm:$0xff] %v2353_v49  ;;  %5077 = vst [vmem:[#allocation193_spill] sm:$0xff] %v2355_v30  ;;  %v2357_v35 = vld [vmem:[#allocation5 + $0x3a8] sm:$0xff]  ;;  %v2361_v0 = vld [vmem:[#allocation5 + $0x3b8] sm:$0xff] }
  0xa0   :  { %v2349_v9 = vand.u32 2147483647, %v5074_v62  ;;  %5078 = vst [vmem:[#allocation194_spill] sm:$0xff] %v2357_v35  ;;  %5079 = vst [vmem:[#allocation195_spill] sm:$0xff] %v2359_v15  ;;  %v5081_v32 = vld [vmem:[#allocation44_spill] sm:$0xff]  ;;  %v2374_v34 = vld [vmem:[#allocation2 + $0x3f0] sm:$0xff] }
  0xa1   :  { %5080 = vst [vmem:[#allocation196_spill] sm:$0xff] %v2361_v0  ;;  %v5082_v11 = vsub.f32 %v1669_v59, %v5081_v32  ;;  %5084 = vst [vmem:[#allocation197_spill] sm:$0xff] %v2374_v34  ;;  %v2376_v53 = vld [vmem:[#allocation2 + $0x3f8] sm:$0xff]  ;;  %v2378_v51 = vld [vmem:[#allocation2 + $0x400] sm:$0xff] }
  0xa2   :  { %5085 = vst [vmem:[#allocation198_spill] sm:$0xff] %v2376_v53  ;;  %5086 = vst [vmem:[#allocation199_spill] sm:$0xff] %v2378_v51  ;;  %v2380_v17 = vld [vmem:[#allocation5 + $0x3c0] sm:$0xff]  ;;  %v2382_v13 = vld [vmem:[#allocation5 + $0x3c8] sm:$0xff] }
  0xa3   :  { %v2372_v47 = vand.u32 2147483647, %v5082_v11  ;;  %5087 = vst [vmem:[#allocation200_spill] sm:$0xff] %v2382_v13  ;;  %v2384_v46 = vld [vmem:[#allocation5 + $0x3d0] sm:$0xff]  ;;  %v5089_v32 = vld [vmem:[#allocation32_spill] sm:$0xff]  ;;  %v2401_v12 = vld [vmem:[#allocation2 + $0x418] sm:$0xff] }
  0xa4   :  { %5088 = vst [vmem:[#allocation201_spill] sm:$0xff] %v2384_v46  ;;  %v5090_v60 = vld [vmem:[#allocation45_spill] sm:$0xff]  ;;  %v2397_v54 = vld [vmem:[#allocation2 + $0x408] sm:$0xff]  ;;  %5095 = vst [vmem:[#allocation203_spill] sm:$0xff] %v2401_v12 }
  0xa5   :  { %5083 = vst [vmem:[#allocation44_spill] sm:$0xff] %v2372_v47  ;;  %v5091_v47 = vsub.f32 %v5089_v32, %v5090_v60  ;;  %5093 = vst [vmem:[#allocation45_spill] sm:$0xff] %v2397_v54  ;;  %v2399_v52 = vld [vmem:[#allocation2 + $0x410] sm:$0xff]  ;;  %v2403_v39 = vld [vmem:[#allocation5 + $0x3d8] sm:$0xff] }
  0xa6   :  { %5094 = vst [vmem:[#allocation202_spill] sm:$0xff] %v2399_v52  ;;  %5096 = vst [vmem:[#allocation204_spill] sm:$0xff] %v2403_v39  ;;  %v2405_v62 = vld [vmem:[#allocation5 + $0x3e0] sm:$0xff]  ;;  %v2407_v55 = vld [vmem:[#allocation5 + $0x3e8] sm:$0xff] }
  0xa7   :  { %v2395_v16 = vand.u32 2147483647, %v5091_v47  ;;  %5097 = vst [vmem:[#allocation205_spill] sm:$0xff] %v2405_v62  ;;  %5098 = vst [vmem:[#allocation206_spill] sm:$0xff] %v2407_v55  ;;  %v5099_v32 = vld [vmem:[#allocation48_spill] sm:$0xff]  ;;  %v2420_v43 = vld [vmem:[#allocation2 + $0x420] sm:$0xff] }
  0xa8   :  { %v5100_v59 = vsub.f32 %v1687_v4, %v5099_v32  ;;  %5102 = vst [vmem:[#allocation207_spill] sm:$0xff] %v2420_v43  ;;  %v2422_v37 = vld [vmem:[#allocation2 + $0x428] sm:$0xff]  ;;  %v2424_v45 = vld [vmem:[#allocation2 + $0x430] sm:$0xff]  ;;  %v2428_v11 = vld [vmem:[#allocation5 + $0x3f8] sm:$0xff] }
  0xa9   :  { %5092 = vst [vmem:[#allocation32_spill] sm:$0xff] %v2395_v16  ;;  %5103 = vst [vmem:[#allocation208_spill] sm:$0xff] %v2422_v37  ;;  %v2426_v50 = vld [vmem:[#allocation5 + $0x3f0] sm:$0xff]  ;;  %v2430_v31 = vld [vmem:[#allocation5 + $0x400] sm:$0xff] }
  0xaa   :  { %v2418_v16 = vand.u32 2147483647, %v5100_v59  ;;  %5104 = vst [vmem:[#allocation209_spill] sm:$0xff] %v2424_v45  ;;  %5105 = vst [vmem:[#allocation210_spill] sm:$0xff] %v2426_v50  ;;  %v5108_v32 = vld [vmem:[#allocation49_spill] sm:$0xff]  ;;  %v2443_v2 = vld [vmem:[#allocation2 + $0x438] sm:$0xff] }
  0xab   :  { %5106 = vst [vmem:[#allocation211_spill] sm:$0xff] %v2428_v11  ;;  %5107 = vst [vmem:[#allocation212_spill] sm:$0xff] %v2430_v31  ;;  %v5109_v60 = vsub.f32 %v1689_v7, %v5108_v32  ;;  %v2445_v22 = vld [vmem:[#allocation2 + $0x440] sm:$0xff]  ;;  %v2447_v63 = vld [vmem:[#allocation2 + $0x448] sm:$0xff] }
  0xac   :  { %5101 = vst [vmem:[#allocation48_spill] sm:$0xff] %v2418_v16  ;;  %5111 = vst [vmem:[#allocation213_spill] sm:$0xff] %v2443_v2  ;;  %v2449_v18 = vld [vmem:[#allocation5 + $0x408] sm:$0xff]  ;;  %v2451_v47 = vld [vmem:[#allocation5 + $0x410] sm:$0xff] }
  0xad   :  { %v2441_v16 = vand.u32 2147483647, %v5109_v60  ;;  %5112 = vst [vmem:[#allocation214_spill] sm:$0xff] %v2447_v63  ;;  %5113 = vst [vmem:[#allocation215_spill] sm:$0xff] %v2449_v18  ;;  %v2453_v35 = vld [vmem:[#allocation5 + $0x418] sm:$0xff]  ;;  %v5116_v32 = vld [vmem:[#allocation37_spill] sm:$0xff] }
  0xae   :  { %5114 = vst [vmem:[#allocation216_spill] sm:$0xff] %v2451_v47  ;;  %5115 = vst [vmem:[#allocation217_spill] sm:$0xff] %v2453_v35  ;;  %v5117_v4 = vld [vmem:[#allocation50_spill] sm:$0xff]  ;;  %v2466_v33 = vld [vmem:[#allocation2 + $0x450] sm:$0xff] }
  0xaf   :  { %5110 = vst [vmem:[#allocation49_spill] sm:$0xff] %v2441_v16  ;;  %v5118_v16 = vsub.f32 %v5116_v32, %v5117_v4  ;;  %5120 = vst [vmem:[#allocation50_spill] sm:$0xff] %v2466_v33  ;;  %v2468_v15 = vld [vmem:[#allocation2 + $0x458] sm:$0xff]  ;;  %v2470_v21 = vld [vmem:[#allocation2 + $0x460] sm:$0xff] }
  0xb0   :  { %5121 = vst [vmem:[#allocation218_spill] sm:$0xff] %v2468_v15  ;;  %5122 = vst [vmem:[#allocation219_spill] sm:$0xff] %v2470_v21  ;;  %v2472_v19 = vld [vmem:[#allocation5 + $0x420] sm:$0xff]  ;;  %v2474_v59 = vld [vmem:[#allocation5 + $0x428] sm:$0xff] }
  0xb1   :  { %v2464_v0 = vand.u32 2147483647, %v5118_v16  ;;  %5123 = vst [vmem:[#allocation220_spill] sm:$0xff] %v2472_v19  ;;  %5124 = vst [vmem:[#allocation221_spill] sm:$0xff] %v2474_v59  ;;  %v2476_v38 = vld [vmem:[#allocation5 + $0x430] sm:$0xff]  ;;  %v2489_v46 = vld [vmem:[#allocation2 + $0x468] sm:$0xff] }
  0xb2   :  { %5125 = vst [vmem:[#allocation222_spill] sm:$0xff] %v2476_v38  ;;  %v5126_v32 = vld [vmem:[#allocation53_spill] sm:$0xff]  ;;  %5129 = vst [vmem:[#allocation223_spill] sm:$0xff] %v2489_v46  ;;  %v2493_v13 = vld [vmem:[#allocation2 + $0x478] sm:$0xff] }
  0xb3   :  { %5119 = vst [vmem:[#allocation37_spill] sm:$0xff] %v2464_v0  ;;  %v5127_v7 = vsub.f32 %v1707_v5, %v5126_v32  ;;  %v2491_v27 = vld [vmem:[#allocation2 + $0x470] sm:$0xff]  ;;  %5131 = vst [vmem:[#allocation225_spill] sm:$0xff] %v2493_v13  ;;  %v2495_v42 = vld [vmem:[#allocation5 + $0x438] sm:$0xff] }
  0xb4   :  { %5130 = vst [vmem:[#allocation224_spill] sm:$0xff] %v2491_v27  ;;  %5132 = vst [vmem:[#allocation226_spill] sm:$0xff] %v2495_v42  ;;  %v2497_v60 = vld [vmem:[#allocation5 + $0x440] sm:$0xff]  ;;  %v2499_v39 = vld [vmem:[#allocation5 + $0x448] sm:$0xff] }
  0xb5   :  { %v2487_v0 = vand.u32 2147483647, %v5127_v7  ;;  %5133 = vst [vmem:[#allocation227_spill] sm:$0xff] %v2497_v60  ;;  %5134 = vst [vmem:[#allocation228_spill] sm:$0xff] %v2499_v39  ;;  %v5135_v32 = vld [vmem:[#allocation54_spill] sm:$0xff]  ;;  %v2512_v55 = vld [vmem:[#allocation2 + $0x480] sm:$0xff] }
  0xb6   :  { %v5136_v4 = vsub.f32 %v1709_v57, %v5135_v32  ;;  %v2514_v30 = vld [vmem:[#allocation2 + $0x488] sm:$0xff]  ;;  %v2516_v62 = vld [vmem:[#allocation2 + $0x490] sm:$0xff]  ;;  %v2520_v16 = vld [vmem:[#allocation5 + $0x458] sm:$0xff] }
  0xb7   :  { %5128 = vst [vmem:[#allocation53_spill] sm:$0xff] %v2487_v0  ;;  %5137 = vst [vmem:[#allocation54_spill] sm:$0xff] %v2514_v30  ;;  %v2518_v49 = vld [vmem:[#allocation5 + $0x450] sm:$0xff]  ;;  %v2522_v50 = vld [vmem:[#allocation5 + $0x460] sm:$0xff] }
  0xb8   :  { %v2510_v0 = vand.u32 2147483647, %v5136_v4  ;;  %5138 = vst [vmem:[#allocation229_spill] sm:$0xff] %v2516_v62  ;;  %5139 = vst [vmem:[#allocation230_spill] sm:$0xff] %v2518_v49  ;;  %v5142_v32 = vld [vmem:[#allocation42_spill] sm:$0xff]  ;;  %v5143_v7 = vld [vmem:[#allocation55_spill] sm:$0xff] }
  0xb9   :  { %5140 = vst [vmem:[#allocation231_spill] sm:$0xff] %v2520_v16  ;;  %5141 = vst [vmem:[#allocation232_spill] sm:$0xff] %v2522_v50  ;;  %v5144_v11 = vsub.f32 %v5142_v32, %v5143_v7  ;;  %v2535_v34 = vld [vmem:[#allocation2 + $0x498] sm:$0xff]  ;;  %v2537_v36 = vld [vmem:[#allocation2 + $0x4a0] sm:$0xff] }
  0xba   :  { %5145 = vst [vmem:[#allocation42_spill] sm:$0xff] %v2535_v34  ;;  %5146 = vst [vmem:[#allocation55_spill] sm:$0xff] %v2537_v36  ;;  %v2539_v31 = vld [vmem:[#allocation2 + $0x4a8] sm:$0xff]  ;;  %v2543_v5 = vld [vmem:[#allocation5 + $0x470] sm:$0xff] }
  0xbb   :  { %v2533_v53 = vand.u32 2147483647, %v5144_v11  ;;  %5147 = vst [vmem:[#allocation233_spill] sm:$0xff] %v2539_v31  ;;  %v2541_v51 = vld [vmem:[#allocation5 + $0x468] sm:$0xff]  ;;  %5149 = vst [vmem:[#allocation235_spill] sm:$0xff] %v2543_v5  ;;  %v2545_v18 = vld [vmem:[#allocation5 + $0x478] sm:$0xff] }
  0xbc   :  { %5148 = vst [vmem:[#allocation234_spill] sm:$0xff] %v2541_v51  ;;  %5150 = vst [vmem:[#allocation236_spill] sm:$0xff] %v2545_v18  ;;  %v5151_v32 = vld [vmem:[#allocation58_spill] sm:$0xff]  ;;  %v2558_v12 = vld [vmem:[#allocation2 + $0x4b0] sm:$0xff] }
  0xbd   :  { %v5152_v57 = vsub.f32 %v1730_v3, %v5151_v32  ;;  %5154 = vst [vmem:[#allocation237_spill] sm:$0xff] %v2558_v12  ;;  %v2560_v47 = vld [vmem:[#allocation2 + $0x4b8] sm:$0xff]  ;;  %v2562_v52 = vld [vmem:[#allocation2 + $0x4c0] sm:$0xff]  ;;  %v2566_v4 = vld [vmem:[#allocation5 + $0x488] sm:$0xff] }
  0xbe   :  { %5155 = vst [vmem:[#allocation238_spill] sm:$0xff] %v2560_v47  ;;  %5156 = vst [vmem:[#allocation239_spill] sm:$0xff] %v2562_v52  ;;  %v2564_v54 = vld [vmem:[#allocation5 + $0x480] sm:$0xff]  ;;  %v2568_v19 = vld [vmem:[#allocation5 + $0x490] sm:$0xff] }
  0xbf   :  { %v2556_v35 = vand.u32 2147483647, %v5152_v57  ;;  %5157 = vst [vmem:[#allocation240_spill] sm:$0xff] %v2566_v4  ;;  %5158 = vst [vmem:[#allocation241_spill] sm:$0xff] %v2568_v19  ;;  %v5159_v32 = vld [vmem:[#allocation59_spill] sm:$0xff]  ;;  %v2581_v38 = vld [vmem:[#allocation2 + $0x4c8] sm:$0xff] }
  0xc0   :  { %v5160_v7 = vsub.f32 %v1732_v44, %v5159_v32  ;;  %5162 = vst [vmem:[#allocation242_spill] sm:$0xff] %v2581_v38  ;;  %v2583_v45 = vld [vmem:[#allocation2 + $0x4d0] sm:$0xff]  ;;  %v2585_v59 = vld [vmem:[#allocation2 + $0x4d8] sm:$0xff]  ;;  %v2589_v11 = vld [vmem:[#allocation5 + $0x4a0] sm:$0xff] }
  0xc1   :  { %5153 = vst [vmem:[#allocation58_spill] sm:$0xff] %v2556_v35  ;;  %5163 = vst [vmem:[#allocation243_spill] sm:$0xff] %v2583_v45  ;;  %v2587_v37 = vld [vmem:[#allocation5 + $0x498] sm:$0xff]  ;;  %v2591_v42 = vld [vmem:[#allocation5 + $0x4a8] sm:$0xff] }
  0xc2   :  { %v2579_v35 = vand.u32 2147483647, %v5160_v7  ;;  %5164 = vst [vmem:[#allocation244_spill] sm:$0xff] %v2585_v59  ;;  %5165 = vst [vmem:[#allocation245_spill] sm:$0xff] %v2587_v37  ;;  %v5168_v32 = vld [vmem:[#allocation47_spill] sm:$0xff]  ;;  %v5169_v3 = vld [vmem:[#allocation60_spill] sm:$0xff] }
  0xc3   :  { %5166 = vst [vmem:[#allocation246_spill] sm:$0xff] %v2589_v11  ;;  %5167 = vst [vmem:[#allocation247_spill] sm:$0xff] %v2591_v42  ;;  %v2604_v43 = vld [vmem:[#allocation2 + $0x4e0] sm:$0xff]  ;;  %v2606_v39 = vld [vmem:[#allocation2 + $0x4e8] sm:$0xff] }
  0xc4   :  { %5161 = vst [vmem:[#allocation59_spill] sm:$0xff] %v2579_v35  ;;  %v5170_v35 = vsub.f32 %v5168_v32, %v5169_v3  ;;  %5172 = vst [vmem:[#allocation60_spill] sm:$0xff] %v2604_v43  ;;  %v2608_v63 = vld [vmem:[#allocation2 + $0x4f0] sm:$0xff]  ;;  %v2612_v57 = vld [vmem:[#allocation5 + $0x4b8] sm:$0xff] }
  0xc5   :  { %5173 = vst [vmem:[#allocation248_spill] sm:$0xff] %v2606_v39  ;;  %5174 = vst [vmem:[#allocation249_spill] sm:$0xff] %v2608_v63  ;;  %v2610_v60 = vld [vmem:[#allocation5 + $0x4b0] sm:$0xff]  ;;  %v2614_v49 = vld [vmem:[#allocation5 + $0x4c0] sm:$0xff] }
  0xc6   :  { %v2602_v2 = vand.u32 2147483647, %v5170_v35  ;;  %5175 = vst [vmem:[#allocation250_spill] sm:$0xff] %v2610_v60  ;;  %5176 = vst [vmem:[#allocation251_spill] sm:$0xff] %v2612_v57  ;;  %v5178_v32 = vld [vmem:[#allocation63_spill] sm:$0xff]  ;;  %v2627_v50 = vld [vmem:[#allocation2 + $0x4f8] sm:$0xff] }
  0xc7   :  { %5177 = vst [vmem:[#allocation252_spill] sm:$0xff] %v2614_v49  ;;  %v5179_v44 = vsub.f32 %v1753_v6, %v5178_v32  ;;  %5181 = vst [vmem:[#allocation253_spill] sm:$0xff] %v2627_v50  ;;  %v2629_v21 = vld [vmem:[#allocation2 + $0x500] sm:$0xff]  ;;  %v2631_v16 = vld [vmem:[#allocation2 + $0x508] sm:$0xff] }
  0xc8   :  { %5171 = vst [vmem:[#allocation47_spill] sm:$0xff] %v2602_v2  ;;  %5182 = vst [vmem:[#allocation254_spill] sm:$0xff] %v2629_v21  ;;  %v2633_v15 = vld [vmem:[#allocation5 + $0x4c8] sm:$0xff]  ;;  %v2635_v7 = vld [vmem:[#allocation5 + $0x4d0] sm:$0xff] }
  0xc9   :  { %v2625_v2 = vand.u32 2147483647, %v5179_v44  ;;  %5183 = vst [vmem:[#allocation255_spill] sm:$0xff] %v2631_v16  ;;  %5184 = vst [vmem:[#allocation256_spill] sm:$0xff] %v2633_v15  ;;  %v2637_v51 = vld [vmem:[#allocation5 + $0x4d8] sm:$0xff]  ;;  %v5187_v32 = vld [vmem:[#allocation64_spill] sm:$0xff] }
  0xca   :  { %5185 = vst [vmem:[#allocation257_spill] sm:$0xff] %v2635_v7  ;;  %5186 = vst [vmem:[#allocation258_spill] sm:$0xff] %v2637_v51  ;;  %v5188_v3 = vsub.f32 %v1755_v25, %v5187_v32  ;;  %v2650_v18 = vld [vmem:[#allocation2 + $0x510] sm:$0xff]  ;;  %v2652_v13 = vld [vmem:[#allocation2 + $0x518] sm:$0xff] }
  0xcb   :  { %5180 = vst [vmem:[#allocation63_spill] sm:$0xff] %v2625_v2  ;;  %5190 = vst [vmem:[#allocation259_spill] sm:$0xff] %v2650_v18  ;;  %v2654_v5 = vld [vmem:[#allocation2 + $0x520] sm:$0xff]  ;;  %v2658_v35 = vld [vmem:[#allocation5 + $0x4e8] sm:$0xff] }
  0xcc   :  { %v2648_v2 = vand.u32 2147483647, %v5188_v3  ;;  %5191 = vst [vmem:[#allocation260_spill] sm:$0xff] %v2652_v13  ;;  %5192 = vst [vmem:[#allocation261_spill] sm:$0xff] %v2654_v5  ;;  %v2656_v27 = vld [vmem:[#allocation5 + $0x4e0] sm:$0xff]  ;;  %v2660_v46 = vld [vmem:[#allocation5 + $0x4f0] sm:$0xff] }
  0xcd   :  { %5193 = vst [vmem:[#allocation262_spill] sm:$0xff] %v2656_v27  ;;  %5194 = vst [vmem:[#allocation263_spill] sm:$0xff] %v2658_v35  ;;  %v5196_v32 = vld [vmem:[#allocation52_spill] sm:$0xff]  ;;  %v5197_v6 = vld [vmem:[#allocation65_spill] sm:$0xff] }
  0xce   :  { %5189 = vst [vmem:[#allocation64_spill] sm:$0xff] %v2648_v2  ;;  %5195 = vst [vmem:[#allocation264_spill] sm:$0xff] %v2660_v46  ;;  %v5198_v2 = vsub.f32 %v5196_v32, %v5197_v6  ;;  %v2673_v62 = vld [vmem:[#allocation2 + $0x528] sm:$0xff]  ;;  %v2675_v33 = vld [vmem:[#allocation2 + $0x530] sm:$0xff] }
  0xcf   :  { %5200 = vst [vmem:[#allocation65_spill] sm:$0xff] %v2673_v62  ;;  %5201 = vst [vmem:[#allocation265_spill] sm:$0xff] %v2675_v33  ;;  %v2677_v4 = vld [vmem:[#allocation2 + $0x538] sm:$0xff]  ;;  %v2681_v44 = vld [vmem:[#allocation5 + $0x500] sm:$0xff] }
  0xd0   :  { %v2671_v19 = vand.u32 2147483647, %v5198_v2  ;;  %5202 = vst [vmem:[#allocation266_spill] sm:$0xff] %v2677_v4  ;;  %v2679_v30 = vld [vmem:[#allocation5 + $0x4f8] sm:$0xff]  ;;  %5204 = vst [vmem:[#allocation268_spill] sm:$0xff] %v2681_v44  ;;  %v2683_v37 = vld [vmem:[#allocation5 + $0x508] sm:$0xff] }
  0xd1   :  { %5203 = vst [vmem:[#allocation267_spill] sm:$0xff] %v2679_v30  ;;  %5205 = vst [vmem:[#allocation269_spill] sm:$0xff] %v2683_v37  ;;  %v5206_v32 = vld [vmem:[#allocation70_spill] sm:$0xff]  ;;  %v2696_v42 = vld [vmem:[#allocation2 + $0x540] sm:$0xff] }
  0xd2   :  { %5199 = vst [vmem:[#allocation52_spill] sm:$0xff] %v2671_v19  ;;  %v5207_v25 = vsub.f32 %v1776_v40, %v5206_v32  ;;  %5208 = vst [vmem:[#allocation70_spill] sm:$0xff] %v2696_v42  ;;  %v2698_v31 = vld [vmem:[#allocation2 + $0x548] sm:$0xff]  ;;  %v2700_v11 = vld [vmem:[#allocation2 + $0x550] sm:$0xff] }
  0xd3   :  { %5209 = vst [vmem:[#allocation270_spill] sm:$0xff] %v2698_v31  ;;  %5210 = vst [vmem:[#allocation271_spill] sm:$0xff] %v2700_v11  ;;  %v2702_v36 = vld [vmem:[#allocation5 + $0x510] sm:$0xff]  ;;  %v2704_v3 = vld [vmem:[#allocation5 + $0x518] sm:$0xff] }
  0xd4   :  { %v2694_v19 = vand.u32 2147483647, %v5207_v25  ;;  %5211 = vst [vmem:[#allocation272_spill] sm:$0xff] %v2702_v36  ;;  %5212 = vst [vmem:[#allocation273_spill] sm:$0xff] %v2704_v3  ;;  %v2706_v60 = vld [vmem:[#allocation5 + $0x520] sm:$0xff]  ;;  %v2719_v47 = vld [vmem:[#allocation2 + $0x558] sm:$0xff] }
  0xd5   :  { %5213 = vst [vmem:[#allocation274_spill] sm:$0xff] %v2706_v60  ;;  %v5214_v32 = vld [vmem:[#allocation71_spill] sm:$0xff]  ;;  %v2723_v34 = vld [vmem:[#allocation2 + $0x568] sm:$0xff]  ;;  %v2727_v6 = vld [vmem:[#allocation5 + $0x530] sm:$0xff] }
  0xd6   :  { %v5215_v2 = vsub.f32 %v1778_v48, %v5214_v32  ;;  %5216 = vst [vmem:[#allocation71_spill] sm:$0xff] %v2719_v47  ;;  %v2721_v12 = vld [vmem:[#allocation2 + $0x560] sm:$0xff]  ;;  %5218 = vst [vmem:[#allocation276_spill] sm:$0xff] %v2723_v34  ;;  %v2725_v49 = vld [vmem:[#allocation5 + $0x528] sm:$0xff] }
  0xd7   :  { %5217 = vst [vmem:[#allocation275_spill] sm:$0xff] %v2721_v12  ;;  %5219 = vst [vmem:[#allocation277_spill] sm:$0xff] %v2725_v49  ;;  %v2729_v15 = vld [vmem:[#allocation5 + $0x538] sm:$0xff]  ;;  %v5222_v32 = vld [vmem:[#allocation57_spill] sm:$0xff] }
  0xd8   :  { %v2717_v57 = vand.u32 2147483647, %v5215_v2  ;;  %5220 = vst [vmem:[#allocation278_spill] sm:$0xff] %v2727_v6  ;;  %5221 = vst [vmem:[#allocation279_spill] sm:$0xff] %v2729_v15  ;;  %v5223_v40 = vld [vmem:[#allocation72_spill] sm:$0xff]  ;;  %v2742_v7 = vld [vmem:[#allocation2 + $0x570] sm:$0xff] }
  0xd9   :  { %v5224_v51 = vsub.f32 %v5222_v32, %v5223_v40  ;;  %5226 = vst [vmem:[#allocation72_spill] sm:$0xff] %v2742_v7  ;;  %v2744_v45 = vld [vmem:[#allocation2 + $0x578] sm:$0xff]  ;;  %v2746_v38 = vld [vmem:[#allocation2 + $0x580] sm:$0xff]  ;;  %v2750_v25 = vld [vmem:[#allocation5 + $0x548] sm:$0xff] }
  0xda   :  { %5227 = vst [vmem:[#allocation280_spill] sm:$0xff] %v2744_v45  ;;  %5228 = vst [vmem:[#allocation281_spill] sm:$0xff] %v2746_v38  ;;  %v2748_v52 = vld [vmem:[#allocation5 + $0x540] sm:$0xff]  ;;  %v2752_v27 = vld [vmem:[#allocation5 + $0x550] sm:$0xff] }
  0xdb   :  { %v2740_v59 = vand.u32 2147483647, %v5224_v51  ;;  %5229 = vst [vmem:[#allocation282_spill] sm:$0xff] %v2748_v52  ;;  %5230 = vst [vmem:[#allocation283_spill] sm:$0xff] %v2750_v25  ;;  %v5232_v32 = vld [vmem:[#allocation76_spill] sm:$0xff]  ;;  %v2767_v63 = vld [vmem:[#allocation2 + $0x590] sm:$0xff] }
  0xdc   :  { %5231 = vst [vmem:[#allocation284_spill] sm:$0xff] %v2752_v27  ;;  %v5233_v48 = vsub.f32 %v1799_v8, %v5232_v32  ;;  %v2765_v46 = vld [vmem:[#allocation2 + $0x588] sm:$0xff]  ;;  %5236 = vst [vmem:[#allocation286_spill] sm:$0xff] %v2767_v63  ;;  %v2769_v35 = vld [vmem:[#allocation2 + $0x598] sm:$0xff] }
  0xdd   :  { %5225 = vst [vmem:[#allocation57_spill] sm:$0xff] %v2740_v59  ;;  %5235 = vst [vmem:[#allocation285_spill] sm:$0xff] %v2765_v46  ;;  %v2771_v39 = vld [vmem:[#allocation5 + $0x558] sm:$0xff]  ;;  %v2773_v2 = vld [vmem:[#allocation5 + $0x560] sm:$0xff] }
  0xde   :  { %v2763_v59 = vand.u32 2147483647, %v5233_v48  ;;  %5237 = vst [vmem:[#allocation287_spill] sm:$0xff] %v2769_v35  ;;  %5238 = vst [vmem:[#allocation288_spill] sm:$0xff] %v2771_v39  ;;  %v2775_v30 = vld [vmem:[#allocation5 + $0x568] sm:$0xff]  ;;  %v5241_v32 = vld [vmem:[#allocation77_spill] sm:$0xff] }
  0xdf   :  { %5239 = vst [vmem:[#allocation289_spill] sm:$0xff] %v2773_v2  ;;  %5240 = vst [vmem:[#allocation290_spill] sm:$0xff] %v2775_v30  ;;  %v5242_v40 = vsub.f32 %v1801_v28, %v5241_v32  ;;  %v2788_v50 = vld [vmem:[#allocation2 + $0x5a0] sm:$0xff]  ;;  %v2790_v43 = vld [vmem:[#allocation2 + $0x5a8] sm:$0xff] }
  0xe0   :  { %5234 = vst [vmem:[#allocation76_spill] sm:$0xff] %v2763_v59  ;;  %5244 = vst [vmem:[#allocation291_spill] sm:$0xff] %v2788_v50  ;;  %v2792_v37 = vld [vmem:[#allocation2 + $0x5b0] sm:$0xff]  ;;  %v2796_v51 = vld [vmem:[#allocation5 + $0x578] sm:$0xff] }
  0xe1   :  { %v2786_v59 = vand.u32 2147483647, %v5242_v40  ;;  %5245 = vst [vmem:[#allocation292_spill] sm:$0xff] %v2790_v43  ;;  %5246 = vst [vmem:[#allocation293_spill] sm:$0xff] %v2792_v37  ;;  %v2794_v16 = vld [vmem:[#allocation5 + $0x570] sm:$0xff]  ;;  %v2798_v36 = vld [vmem:[#allocation5 + $0x580] sm:$0xff] }
  0xe2   :  { %5247 = vst [vmem:[#allocation294_spill] sm:$0xff] %v2794_v16  ;;  %5248 = vst [vmem:[#allocation295_spill] sm:$0xff] %v2796_v51  ;;  %v5250_v32 = vld [vmem:[#allocation62_spill] sm:$0xff]  ;;  %v2813_v3 = vld [vmem:[#allocation2 + $0x5c0] sm:$0xff] }
  0xe3   :  { %5243 = vst [vmem:[#allocation77_spill] sm:$0xff] %v2786_v59  ;;  %5249 = vst [vmem:[#allocation296_spill] sm:$0xff] %v2798_v36  ;;  %v5251_v8 = vld [vmem:[#allocation78_spill] sm:$0xff]  ;;  %v2815_v13 = vld [vmem:[#allocation2 + $0x5c8] sm:$0xff] }
  0xe4   :  { %v5252_v59 = vsub.f32 %v5250_v32, %v5251_v8  ;;  %v2811_v5 = vld [vmem:[#allocation2 + $0x5b8] sm:$0xff]  ;;  %5255 = vst [vmem:[#allocation297_spill] sm:$0xff] %v2813_v3  ;;  %5256 = vst [vmem:[#allocation298_spill] sm:$0xff] %v2815_v13  ;;  %v2817_v18 = vld [vmem:[#allocation5 + $0x588] sm:$0xff] }
  0xe5   :  { %5254 = vst [vmem:[#allocation78_spill] sm:$0xff] %v2811_v5  ;;  %5257 = vst [vmem:[#allocation299_spill] sm:$0xff] %v2817_v18  ;;  %v2819_v48 = vld [vmem:[#allocation5 + $0x590] sm:$0xff]  ;;  %v2821_v49 = vld [vmem:[#allocation5 + $0x598] sm:$0xff] }
  0xe6   :  { %v2809_v60 = vand.u32 2147483647, %v5252_v59  ;;  %5258 = vst [vmem:[#allocation300_spill] sm:$0xff] %v2819_v48  ;;  %5259 = vst [vmem:[#allocation301_spill] sm:$0xff] %v2821_v49  ;;  %v5260_v32 = vld [vmem:[#allocation67_spill] sm:$0xff]  ;;  %v2834_v4 = vld [vmem:[#allocation2 + $0x5d0] sm:$0xff] }
  0xe7   :  { %v5261_v28 = vld [vmem:[#allocation83_spill] sm:$0xff]  ;;  %v2836_v6 = vld [vmem:[#allocation2 + $0x5d8] sm:$0xff]  ;;  %v2842_v40 = vld [vmem:[#allocation5 + $0x5a8] sm:$0xff] }
  0xe8   :  { %5253 = vst [vmem:[#allocation62_spill] sm:$0xff] %v2809_v60  ;;  %v5262_v60 = vsub.f32 %v5260_v32, %v5261_v28  ;;  %5264 = vst [vmem:[#allocation83_spill] sm:$0xff] %v2834_v4  ;;  %v2838_v33 = vld [vmem:[#allocation2 + $0x5e0] sm:$0xff]  ;;  %v2844_v52 = vld [vmem:[#allocation5 + $0x5b0] sm:$0xff] }
  0xe9   :  { %5265 = vst [vmem:[#allocation302_spill] sm:$0xff] %v2836_v6  ;;  %5266 = vst [vmem:[#allocation303_spill] sm:$0xff] %v2838_v33  ;;  %v2840_v62 = vld [vmem:[#allocation5 + $0x5a0] sm:$0xff]  ;;  %v5270_v32 = vld [vmem:[#allocation68_spill] sm:$0xff] }
  0xea   :  { %v2832_v15 = vand.u32 2147483647, %v5262_v60  ;;  %5267 = vst [vmem:[#allocation304_spill] sm:$0xff] %v2840_v62  ;;  %5268 = vst [vmem:[#allocation305_spill] sm:$0xff] %v2842_v40  ;;  %v5271_v8 = vld [vmem:[#allocation84_spill] sm:$0xff]  ;;  %v2859_v25 = vld [vmem:[#allocation2 + $0x5f0] sm:$0xff] }
  0xeb   :  { %5269 = vst [vmem:[#allocation306_spill] sm:$0xff] %v2844_v52  ;;  %v2857_v11 = vld [vmem:[#allocation2 + $0x5e8] sm:$0xff]  ;;  %5275 = vst [vmem:[#allocation307_spill] sm:$0xff] %v2859_v25  ;;  %v2861_v31 = vld [vmem:[#allocation2 + $0x5f8] sm:$0xff] }
  0xec   :  { %5263 = vst [vmem:[#allocation67_spill] sm:$0xff] %v2832_v15  ;;  %v5272_v15 = vsub.f32 %v5270_v32, %v5271_v8  ;;  %5274 = vst [vmem:[#allocation84_spill] sm:$0xff] %v2857_v11  ;;  %v2863_v42 = vld [vmem:[#allocation5 + $0x5b8] sm:$0xff]  ;;  %v2865_v59 = vld [vmem:[#allocation5 + $0x5c0] sm:$0xff] }
  0xed   :  { %5276 = vst [vmem:[#allocation308_spill] sm:$0xff] %v2861_v31  ;;  %5277 = vst [vmem:[#allocation309_spill] sm:$0xff] %v2863_v42  ;;  %v2867_v39 = vld [vmem:[#allocation5 + $0x5c8] sm:$0xff]  ;;  %v5280_v32 = vld [vmem:[#allocation69_spill] sm:$0xff] }
  0xee   :  { %v2855_v27 = vand.u32 2147483647, %v5272_v15  ;;  %5278 = vst [vmem:[#allocation310_spill] sm:$0xff] %v2865_v59  ;;  %5279 = vst [vmem:[#allocation311_spill] sm:$0xff] %v2867_v39  ;;  %v5281_v28 = vld [vmem:[#allocation85_spill] sm:$0xff]  ;;  %v2880_v34 = vld [vmem:[#allocation2 + $0x600] sm:$0xff] }
  0xef   :  { %5283 = vst [vmem:[#allocation69_spill] sm:$0xff] %v2880_v34  ;;  %v2882_v2 = vld [vmem:[#allocation2 + $0x608] sm:$0xff]  ;;  %v2884_v12 = vld [vmem:[#allocation2 + $0x610] sm:$0xff]  ;;  %v2888_v60 = vld [vmem:[#allocation5 + $0x5d8] sm:$0xff] }
  0xf0   :  { %5273 = vst [vmem:[#allocation68_spill] sm:$0xff] %v2855_v27  ;;  %v5282_v27 = vsub.f32 %v5280_v32, %v5281_v28  ;;  %5284 = vst [vmem:[#allocation85_spill] sm:$0xff] %v2882_v2  ;;  %v2886_v47 = vld [vmem:[#allocation5 + $0x5d0] sm:$0xff]  ;;  %v2890_v16 = vld [vmem:[#allocation5 + $0x5e0] sm:$0xff] }
  0xf1   :  { %5285 = vst [vmem:[#allocation312_spill] sm:$0xff] %v2884_v12  ;;  %5286 = vst [vmem:[#allocation313_spill] sm:$0xff] %v2886_v47  ;;  %v5289_v32 = vld [vmem:[#allocation90_spill] sm:$0xff]  ;;  %v2905_v7 = vld [vmem:[#allocation2 + $0x620] sm:$0xff] }
  0xf2   :  { %v2878_v30 = vand.u32 2147483647, %v5282_v27  ;;  %5287 = vst [vmem:[#allocation314_spill] sm:$0xff] %v2888_v60  ;;  %5288 = vst [vmem:[#allocation315_spill] sm:$0xff] %v2890_v16  ;;  %v5290_v15 = vsub.f32 %v1845_v10, %v5289_v32  ;;  %v2903_v45 = vld [vmem:[#allocation2 + $0x618] sm:$0xff]  ;;  %v2907_v36 = vld [vmem:[#allocation2 + $0x628] sm:$0xff] }
  0xf3   :  { %5291 = vst [vmem:[#allocation90_spill] sm:$0xff] %v2903_v45  ;;  %5292 = vst [vmem:[#allocation316_spill] sm:$0xff] %v2905_v7  ;;  %v2909_v38 = vld [vmem:[#allocation5 + $0x5e8] sm:$0xff]  ;;  %v2911_v8 = vld [vmem:[#allocation5 + $0x5f0] sm:$0xff] }
  0xf4   :  { %v2901_v51 = vand.u32 2147483647, %v5290_v15  ;;  %5293 = vst [vmem:[#allocation317_spill] sm:$0xff] %v2907_v36  ;;  %5294 = vst [vmem:[#allocation318_spill] sm:$0xff] %v2909_v38  ;;  %v2913_v18 = vld [vmem:[#allocation5 + $0x5f8] sm:$0xff]  ;;  %v5298_v28 = vld [vmem:[#allocation91_spill] sm:$0xff] }
  0xf5   :  { %5295 = vst [vmem:[#allocation319_spill] sm:$0xff] %v2911_v8  ;;  %5296 = vst [vmem:[#allocation320_spill] sm:$0xff] %v2913_v18  ;;  %v5297_v32 = vld [vmem:[#allocation74_spill] sm:$0xff]  ;;  %v2926_v48 = vld [vmem:[#allocation2 + $0x630] sm:$0xff] }
  0xf6   :  { %v5299_v49 = vsub.f32 %v5297_v32, %v5298_v28  ;;  %5301 = vst [vmem:[#allocation91_spill] sm:$0xff] %v2926_v48  ;;  %v2928_v63 = vld [vmem:[#allocation2 + $0x638] sm:$0xff]  ;;  %v2930_v46 = vld [vmem:[#allocation2 + $0x640] sm:$0xff]  ;;  %v2934_v27 = vld [vmem:[#allocation5 + $0x608] sm:$0xff] }
  0xf7   :  { %5302 = vst [vmem:[#allocation321_spill] sm:$0xff] %v2928_v63  ;;  %5303 = vst [vmem:[#allocation322_spill] sm:$0xff] %v2930_v46  ;;  %v2932_v44 = vld [vmem:[#allocation5 + $0x600] sm:$0xff]  ;;  %v2936_v62 = vld [vmem:[#allocation5 + $0x610] sm:$0xff] }
  0xf8   :  { %v2924_v35 = vand.u32 2147483647, %v5299_v49  ;;  %5304 = vst [vmem:[#allocation323_spill] sm:$0xff] %v2932_v44  ;;  %5305 = vst [vmem:[#allocation324_spill] sm:$0xff] %v2934_v27  ;;  %v5307_v32 = vld [vmem:[#allocation75_spill] sm:$0xff]  ;;  %v5308_v10 = vld [vmem:[#allocation92_spill] sm:$0xff] }
  0xf9   :  { %5306 = vst [vmem:[#allocation325_spill] sm:$0xff] %v2936_v62  ;;  %v2949_v37 = vld [vmem:[#allocation2 + $0x648] sm:$0xff]  ;;  %v2951_v40 = vld [vmem:[#allocation2 + $0x650] sm:$0xff]  ;;  %v2953_v43 = vld [vmem:[#allocation2 + $0x658] sm:$0xff] }
  0xfa   :  { %5300 = vst [vmem:[#allocation74_spill] sm:$0xff] %v2924_v35  ;;  %v5309_v35 = vsub.f32 %v5307_v32, %v5308_v10  ;;  %5311 = vst [vmem:[#allocation92_spill] sm:$0xff] %v2951_v40  ;;  %v2955_v50 = vld [vmem:[#allocation5 + $0x618] sm:$0xff]  ;;  %v2957_v15 = vld [vmem:[#allocation5 + $0x620] sm:$0xff] }
  0xfb   :  { %5312 = vst [vmem:[#allocation326_spill] sm:$0xff] %v2953_v43  ;;  %5313 = vst [vmem:[#allocation327_spill] sm:$0xff] %v2955_v50  ;;  %v2959_v42 = vld [vmem:[#allocation5 + $0x628] sm:$0xff]  ;;  %v5317_v28 = vld [vmem:[#allocation95_spill] sm:$0xff] }
  0xfc   :  { %v2947_v52 = vand.u32 2147483647, %v5309_v35  ;;  %5314 = vst [vmem:[#allocation328_spill] sm:$0xff] %v2957_v15  ;;  %5315 = vst [vmem:[#allocation329_spill] sm:$0xff] %v2959_v42  ;;  %v5316_v32 = vld [vmem:[#allocation80_spill] sm:$0xff]  ;;  %v2972_v39 = vld [vmem:[#allocation2 + $0x660] sm:$0xff] }
  0xfd   :  { %5320 = vst [vmem:[#allocation95_spill] sm:$0xff] %v2972_v39  ;;  %v2974_v13 = vld [vmem:[#allocation2 + $0x668] sm:$0xff]  ;;  %v2976_v59 = vld [vmem:[#allocation2 + $0x670] sm:$0xff]  ;;  %v2980_v49 = vld [vmem:[#allocation5 + $0x638] sm:$0xff] }
  0xfe   :  { %5310 = vst [vmem:[#allocation75_spill] sm:$0xff] %v2947_v52  ;;  %v5318_v52 = vsub.f32 %v5316_v32, %v5317_v28  ;;  %5321 = vst [vmem:[#allocation330_spill] sm:$0xff] %v2974_v13  ;;  %v2978_v3 = vld [vmem:[#allocation5 + $0x630] sm:$0xff]  ;;  %v2982_v47 = vld [vmem:[#allocation5 + $0x640] sm:$0xff] }
  0xff   :  { %5322 = vst [vmem:[#allocation331_spill] sm:$0xff] %v2976_v59  ;;  %5323 = vst [vmem:[#allocation332_spill] sm:$0xff] %v2978_v3  ;;  %v5326_v32 = vld [vmem:[#allocation81_spill] sm:$0xff]  ;;  %v5327_v10 = vld [vmem:[#allocation96_spill] sm:$0xff] }
 0x100   :  { %v2970_v5 = vand.u32 2147483647, %v5318_v52  ;;  %5324 = vst [vmem:[#allocation333_spill] sm:$0xff] %v2980_v49  ;;  %5325 = vst [vmem:[#allocation334_spill] sm:$0xff] %v2982_v47  ;;  %v2995_v33 = vld [vmem:[#allocation2 + $0x678] sm:$0xff]  ;;  %v2997_v60 = vld [vmem:[#allocation2 + $0x680] sm:$0xff] }
 0x101   :  { %5330 = vst [vmem:[#allocation96_spill] sm:$0xff] %v2995_v33  ;;  %v2999_v6 = vld [vmem:[#allocation2 + $0x688] sm:$0xff]  ;;  %v3003_v35 = vld [vmem:[#allocation5 + $0x650] sm:$0xff]  ;;  %v3005_v38 = vld [vmem:[#allocation5 + $0x658] sm:$0xff] }
 0x102   :  { %5319 = vst [vmem:[#allocation80_spill] sm:$0xff] %v2970_v5  ;;  %v5328_v5 = vsub.f32 %v5326_v32, %v5327_v10  ;;  %v3001_v4 = vld [vmem:[#allocation5 + $0x648] sm:$0xff]  ;;  %5332 = vst [vmem:[#allocation336_spill] sm:$0xff] %v3003_v35  ;;  %v5334_v32 = vld [vmem:[#allocation82_spill] sm:$0xff] }
 0x103   :  { %5331 = vst [vmem:[#allocation335_spill] sm:$0xff] %v3001_v4  ;;  %5333 = vst [vmem:[#allocation337_spill] sm:$0xff] %v3005_v38  ;;  %v5335_v28 = vld [vmem:[#allocation97_spill] sm:$0xff]  ;;  %v3020_v8 = vld [vmem:[#allocation2 + $0x698] sm:$0xff] }
 0x104   :  { %v2993_v16 = vand.u32 2147483647, %v5328_v5  ;;  %v3018_v31 = vld [vmem:[#allocation2 + $0x690] sm:$0xff]  ;;  %5339 = vst [vmem:[#allocation338_spill] sm:$0xff] %v3020_v8  ;;  %v3022_v25 = vld [vmem:[#allocation2 + $0x6a0] sm:$0xff]  ;;  %v3026_v52 = vld [vmem:[#allocation5 + $0x668] sm:$0xff] }
 0x105   :  { %5338 = vst [vmem:[#allocation97_spill] sm:$0xff] %v3018_v31  ;;  %5340 = vst [vmem:[#allocation339_spill] sm:$0xff] %v3022_v25  ;;  %v3024_v11 = vld [vmem:[#allocation5 + $0x660] sm:$0xff]  ;;  %v3028_v44 = vld [vmem:[#allocation5 + $0x670] sm:$0xff] }
 0x106   :  { %5329 = vst [vmem:[#allocation81_spill] sm:$0xff] %v2993_v16  ;;  %v5336_v16 = vsub.f32 %v5334_v32, %v5335_v28  ;;  %5341 = vst [vmem:[#allocation340_spill] sm:$0xff] %v3024_v11  ;;  %v5344_v32 = vld [vmem:[#allocation87_spill] sm:$0xff]  ;;  %v5345_v10 = vld [vmem:[#allocation102_spill] sm:$0xff] }
 0x107   :  { %5342 = vst [vmem:[#allocation341_spill] sm:$0xff] %v3026_v52  ;;  %5343 = vst [vmem:[#allocation342_spill] sm:$0xff] %v3028_v44  ;;  %v3041_v12 = vld [vmem:[#allocation2 + $0x6a8] sm:$0xff]  ;;  %v3043_v27 = vld [vmem:[#allocation2 + $0x6b0] sm:$0xff] }
 0x108   :  { %v3016_v18 = vand.u32 2147483647, %v5336_v16  ;;  %5348 = vst [vmem:[#allocation102_spill] sm:$0xff] %v3041_v12  ;;  %5349 = vst [vmem:[#allocation343_spill] sm:$0xff] %v3043_v27  ;;  %v3045_v2 = vld [vmem:[#allocation2 + $0x6b8] sm:$0xff]  ;;  %v3049_v5 = vld [vmem:[#allocation5 + $0x680] sm:$0xff] }
 0x109   :  { %5350 = vst [vmem:[#allocation344_spill] sm:$0xff] %v3045_v2  ;;  %v3047_v34 = vld [vmem:[#allocation5 + $0x678] sm:$0xff]  ;;  %v3051_v50 = vld [vmem:[#allocation5 + $0x688] sm:$0xff]  ;;  %v5354_v28 = vld [vmem:[#allocation103_spill] sm:$0xff] }
 0x10a   :  { %5337 = vst [vmem:[#allocation82_spill] sm:$0xff] %v3016_v18  ;;  %v5346_v18 = vsub.f32 %v5344_v32, %v5345_v10  ;;  %5351 = vst [vmem:[#allocation345_spill] sm:$0xff] %v3047_v34  ;;  %v5353_v32 = vld [vmem:[#allocation88_spill] sm:$0xff]  ;;  %v3064_v36 = vld [vmem:[#allocation2 + $0x6c0] sm:$0xff] }
 0x10b   :  { %5352 = vst [vmem:[#allocation346_spill] sm:$0xff] %v3051_v50  ;;  %5356 = vst [vmem:[#allocation88_spill] sm:$0xff] %v3064_v36  ;;  %v3066_v15 = vld [vmem:[#allocation2 + $0x6c8] sm:$0xff]  ;;  %v3068_v7 = vld [vmem:[#allocation2 + $0x6d0] sm:$0xff] }
 0x10c   :  { %v3039_v62 = vand.u32 2147483647, %v5346_v18  ;;  %5357 = vst [vmem:[#allocation103_spill] sm:$0xff] %v3066_v15  ;;  %5358 = vst [vmem:[#allocation347_spill] sm:$0xff] %v3068_v7  ;;  %v3070_v45 = vld [vmem:[#allocation5 + $0x690] sm:$0xff]  ;;  %v3072_v16 = vld [vmem:[#allocation5 + $0x698] sm:$0xff] }
 0x10d   :  { %5359 = vst [vmem:[#allocation348_spill] sm:$0xff] %v3070_v45  ;;  %5360 = vst [vmem:[#allocation349_spill] sm:$0xff] %v3072_v16  ;;  %v3074_v3 = vld [vmem:[#allocation5 + $0x6a0] sm:$0xff]  ;;  %v5363_v18 = vld [vmem:[#allocation104_spill] sm:$0xff] }
 0x10e   :  { %5347 = vst [vmem:[#allocation87_spill] sm:$0xff] %v3039_v62  ;;  %v5355_v62 = vsub.f32 %v5353_v32, %v5354_v28  ;;  %5361 = vst [vmem:[#allocation350_spill] sm:$0xff] %v3074_v3  ;;  %v5362_v32 = vld [vmem:[#allocation89_spill] sm:$0xff]  ;;  %v3087_v48 = vld [vmem:[#allocation2 + $0x6d8] sm:$0xff] }
 0x10f   :  { %v5364_v49 = vsub.f32 %v5362_v32, %v5363_v18  ;;  %5365 = vst [vmem:[#allocation89_spill] sm:$0xff] %v3087_v48  ;;  %v3089_v47 = vld [vmem:[#allocation2 + $0x6e0] sm:$0xff]  ;;  %v3091_v46 = vld [vmem:[#allocation5 + $0x6a8] sm:$0xff]  ;;  %v3093_v21 = vld [vmem:[#allocation5 + $0x6b0] sm:$0xff] }
 0x110   :  { %v3062_v42 = vand.u32 2147483647, %v5355_v62  ;;  %5366 = vst [vmem:[#allocation104_spill] sm:$0xff] %v3089_v47  ;;  %5367 = vst [vmem:[#allocation351_spill] sm:$0xff] %v3091_v46  ;;  %v3095_v10 = vld [vmem:[#allocation5 + $0x6b8] sm:$0xff]  ;;  %v5370_v18 = vld [vmem:[#allocation109_spill] sm:$0xff] }
 0x111   :  { %v3085_v63 = vand.u32 2147483647, %v5364_v49  ;;  %5368 = vst [vmem:[#allocation352_spill] sm:$0xff] %v3093_v21  ;;  %5369 = vst [vmem:[#allocation353_spill] sm:$0xff] %v3095_v10  ;;  %v5371_v32 = vsub.f32 %v1914_v14, %v5370_v18  ;;  %v3108_v43 = vld [vmem:[#allocation2 + $0x6e8] sm:$0xff]  ;;  %v3110_v35 = vld [vmem:[#allocation2 + $0x6f0] sm:$0xff] }
 0x112   :  { %5373 = vst [vmem:[#allocation354_spill] sm:$0xff] %v3108_v43  ;;  %5374 = vst [vmem:[#allocation355_spill] sm:$0xff] %v3110_v35  ;;  %v3112_v40 = vld [vmem:[#allocation2 + $0x6f8] sm:$0xff]  ;;  %v3114_v4 = vld [vmem:[#allocation5 + $0x6c0] sm:$0xff] }
 0x113   :  { %v3106_v38 = vand.u32 2147483647, %v5371_v32  ;;  %5375 = vst [vmem:[#allocation356_spill] sm:$0xff] %v3112_v40  ;;  %5376 = vst [vmem:[#allocation357_spill] sm:$0xff] %v3114_v4  ;;  %v3116_v28 = vld [vmem:[#allocation5 + $0x6c8] sm:$0xff]  ;;  %v3118_v11 = vld [vmem:[#allocation5 + $0x6d0] sm:$0xff] }
 0x114   :  { %5377 = vst [vmem:[#allocation358_spill] sm:$0xff] %v3116_v28  ;;  %5378 = vst [vmem:[#allocation359_spill] sm:$0xff] %v3118_v11  ;;  %v5379_v32 = vld [vmem:[#allocation110_spill] sm:$0xff]  ;;  %v3131_v59 = vld [vmem:[#allocation2 + $0x700] sm:$0xff] }
 0x115   :  { %5372 = vst [vmem:[#allocation109_spill] sm:$0xff] %v3106_v38  ;;  %v5380_v62 = vsub.f32 %v1916_v56, %v5379_v32  ;;  %5382 = vst [vmem:[#allocation360_spill] sm:$0xff] %v3131_v59  ;;  %v3133_v52 = vld [vmem:[#allocation2 + $0x708] sm:$0xff]  ;;  %v3135_v13 = vld [vmem:[#allocation5 + $0x6d8] sm:$0xff] }
 0x116   :  { %5383 = vst [vmem:[#allocation361_spill] sm:$0xff] %v3133_v52  ;;  %5384 = vst [vmem:[#allocation362_spill] sm:$0xff] %v3135_v13  ;;  %v3137_v39 = vld [vmem:[#allocation5 + $0x6e0] sm:$0xff]  ;;  %v5386_v56 = vld [vmem:[#allocation94_spill] sm:$0xff] }
 0x117   :  { %v3129_v44 = vand.u32 2147483647, %v5380_v62  ;;  %5385 = vst [vmem:[#allocation363_spill] sm:$0xff] %v3137_v39  ;;  %v5387_v62 = vld [vmem:[#allocation111_spill] sm:$0xff]  ;;  %v3150_v33 = vld [vmem:[#allocation2 + $0x710] sm:$0xff]  ;;  %v3154_v38 = vld [vmem:[#allocation5 + $0x6e8] sm:$0xff] }
 0x118   :  { %v5388_v32 = vsub.f32 %v5386_v56, %v5387_v62  ;;  %5390 = vst [vmem:[#allocation111_spill] sm:$0xff] %v3150_v33  ;;  %5392 = vst [vmem:[#allocation365_spill] sm:$0xff] %v3154_v38  ;;  %v3156_v50 = vld [vmem:[#allocation5 + $0x6f0] sm:$0xff]  ;;  %v3158_v49 = vld [vmem:[#allocation5 + $0x6f8] sm:$0xff] }
 0x119   :  { %5381 = vst [vmem:[#allocation110_spill] sm:$0xff] %v3129_v44  ;;  %v3152_v44 = vld [vmem:[#allocation2 + $0x718] sm:$0xff]  ;;  %5393 = vst [vmem:[#allocation366_spill] sm:$0xff] %v3156_v50  ;;  %v5395_v62 = vld [vmem:[#allocation99_spill] sm:$0xff] }
 0x11a   :  { %v3148_v34 = vand.u32 2147483647, %v5388_v32  ;;  %5391 = vst [vmem:[#allocation364_spill] sm:$0xff] %v3152_v44  ;;  %5394 = vst [vmem:[#allocation367_spill] sm:$0xff] %v3158_v49  ;;  %v5396_v32 = vld [vmem:[#allocation114_spill] sm:$0xff]  ;;  %v3171_v16 = vld [vmem:[#allocation2 + $0x720] sm:$0xff] }
 0x11b   :  { %v5397_v3 = vsub.f32 %v5395_v62, %v5396_v32  ;;  %5399 = vst [vmem:[#allocation114_spill] sm:$0xff] %v3171_v16  ;;  %v3173_v8 = vld [vmem:[#allocation2 + $0x728] sm:$0xff]  ;;  %v3175_v45 = vld [vmem:[#allocation5 + $0x700] sm:$0xff]  ;;  %v3190_v2 = vld [vmem:[#allocation2 + $0x730] sm:$0xff] }
 0x11c   :  { %5389 = vst [vmem:[#allocation94_spill] sm:$0xff] %v3148_v34  ;;  %5400 = vst [vmem:[#allocation368_spill] sm:$0xff] %v3173_v8  ;;  %v3177_v31 = vld [vmem:[#allocation5 + $0x708] sm:$0xff]  ;;  %v3192_v21 = vld [vmem:[#allocation2 + $0x738] sm:$0xff] }
 0x11d   :  { %v3169_v25 = vand.u32 2147483647, %v5397_v3  ;;  %5401 = vst [vmem:[#allocation369_spill] sm:$0xff] %v3175_v45  ;;  %5402 = vst [vmem:[#allocation370_spill] sm:$0xff] %v3177_v31  ;;  %v5403_v62 = vld [vmem:[#allocation100_spill] sm:$0xff]  ;;  %v5404_v3 = vld [vmem:[#allocation115_spill] sm:$0xff] }
 0x11e   :  { %v5405_v32 = vsub.f32 %v5403_v62, %v5404_v3  ;;  %5407 = vst [vmem:[#allocation115_spill] sm:$0xff] %v3190_v2  ;;  %5408 = vst [vmem:[#allocation371_spill] sm:$0xff] %v3192_v21  ;;  %v3194_v27 = vld [vmem:[#allocation2 + $0x740] sm:$0xff]  ;;  %v3196_v46 = vld [vmem:[#allocation5 + $0x710] sm:$0xff] }
 0x11f   :  { %5398 = vst [vmem:[#allocation99_spill] sm:$0xff] %v3169_v25  ;;  %5409 = vst [vmem:[#allocation372_spill] sm:$0xff] %v3196_v46  ;;  %v3198_v14 = vld [vmem:[#allocation5 + $0x718] sm:$0xff]  ;;  %v5411_v11 = vld [vmem:[#allocation101_spill] sm:$0xff] }
 0x120   :  { %v3188_v10 = vand.u32 2147483647, %v5405_v32  ;;  %5410 = vst [vmem:[#allocation373_spill] sm:$0xff] %v3198_v14  ;;  %v5412_v62 = vld [vmem:[#allocation116_spill] sm:$0xff]  ;;  %v5415_v7 = vld [vmem:[#allocation17_spill] sm:$0xff]  ;;  %v3215_v28 = vld [vmem:[#allocation5 + $0x720] sm:$0xff] }
 0x121   :  { %v5413_v3 = vsub.f32 %v5411_v11, %v5412_v62  ;;  %v5416_v12 = vld [vmem:[#allocation56_spill] sm:$0xff]  ;;  %v3213_v34 = vld [vmem:[#allocation2 + $0x750] sm:$0xff]  ;;  %5418 = vst [vmem:[#allocation17_spill] sm:$0xff] %v3215_v28  ;;  %v5420_v62 = vld [vmem:[#allocation22_spill] sm:$0xff] }
 0x122   :  { %5406 = vst [vmem:[#allocation100_spill] sm:$0xff] %v3188_v10  ;;  %v1104_v10 = vadd.f32 %v5416_v12, %v5415_v7  ;;  %v3211_v25 = vld [vmem:[#allocation2 + $0x748] sm:$0xff]  ;;  %5417 = vst [vmem:[#allocation116_spill] sm:$0xff] %v3213_v34  ;;  %v3227_v7 = vld [vmem:[#allocation2 + $0x758] sm:$0xff] }
 0x123   :  { %v3207_v32 = vand.u32 2147483647, %v5413_v3  ;;  %v3217_v15 = vld [vmem:[#allocation5 + $0x728] sm:$0xff]  ;;  %v5421_v3 = vld [vmem:[#allocation61_spill] sm:$0xff]  ;;  %5422 = vst [vmem:[#allocation22_spill] sm:$0xff] %v3227_v7  ;;  %v3229_v39 = vld [vmem:[#allocation2 + $0x760] sm:$0xff] }
 0x124   :  { %5419 = vst [vmem:[#allocation56_spill] sm:$0xff] %v3217_v15  ;;  %v1135_v12 = vadd.f32 %v5421_v3, %v5420_v62  ;;  %5423 = vst [vmem:[#allocation61_spill] sm:$0xff] %v3229_v39  ;;  %v3231_v47 = vld [vmem:[#allocation5 + $0x730] sm:$0xff]  ;;  %v3233_v13 = vld [vmem:[#allocation5 + $0x738] sm:$0xff] }
 0x125   :  { %5414 = vst [vmem:[#allocation101_spill] sm:$0xff] %v3207_v32  ;;  %5424 = vst [vmem:[#allocation374_spill] sm:$0xff] %v3231_v47  ;;  %v3235_v48 = vld [vmem:[#allocation5 + $0x740] sm:$0xff]  ;;  %v5426_v11 = vld [vmem:[#allocation106_spill] sm:$0xff] }
 0x126   :  { %5425 = vst [vmem:[#allocation375_spill] sm:$0xff] %v3233_v13  ;;  %v5427_v49 = vld [vmem:[#allocation120_spill] sm:$0xff]  ;;  %v5429_v3 = vld [vmem:[#allocation105_spill] sm:$0xff]  ;;  %v5434_v31 = vld [vmem:[#allocation107_spill] sm:$0xff] }
 0x127   :  { %v5428_v40 = vsub.f32 %v5426_v11, %v5427_v49  ;;  %v1105_v50 = vadd.f32 %v1104_v10, %v5429_v3  ;;  %v3247_v35 = vld [vmem:[#allocation2 + $0x768] sm:$0xff]  ;;  %v3249_v38 = vld [vmem:[#allocation2 + $0x770] sm:$0xff]  ;;  %v5437_v10 = vld [vmem:[#allocation11_spill] sm:$0xff] }
 0x128   :  { %5430 = vst [vmem:[#allocation106_spill] sm:$0xff] %v3247_v35  ;;  %5431 = vst [vmem:[#allocation120_spill] sm:$0xff] %v3249_v38  ;;  %v3251_v43 = vld [vmem:[#allocation5 + $0x748] sm:$0xff]  ;;  %v3253_v32 = vld [vmem:[#allocation5 + $0x750] sm:$0xff]  ;;  %v1136_v3 = vadd.f32 %v1135_v12, %v5437_v10 }
 0x129   :  { %v3244_v62 = vand.u32 2147483647, %v5428_v40  ;;  %5432 = vst [vmem:[#allocation105_spill] sm:$0xff] %v3251_v43  ;;  %5433 = vst [vmem:[#allocation376_spill] sm:$0xff] %v3253_v32  ;;  %v5435_v49 = vld [vmem:[#allocation121_spill] sm:$0xff]  ;;  %v3265_v52 = vld [vmem:[#allocation2 + $0x778] sm:$0xff]  ;;  %v1106_v10 = vadd.f32 %v1105_v50, %v2142_v23 }
 0x12a   :  { %v5436_v40 = vsub.f32 %v5434_v31, %v5435_v49  ;;  %5438 = vst [vmem:[#allocation107_spill] sm:$0xff] %v3265_v52  ;;  %v3267_v45 = vld [vmem:[#allocation2 + $0x780] sm:$0xff]  ;;  %v3269_v59 = vld [vmem:[#allocation2 + $0x788] sm:$0xff]  ;;  %v3271_v4 = vld [vmem:[#allocation5 + $0x758] sm:$0xff] }
 0x12b   :  { %5439 = vst [vmem:[#allocation121_spill] sm:$0xff] %v3271_v4  ;;  %v3273_v36 = vld [vmem:[#allocation5 + $0x760] sm:$0xff]  ;;  %v5441_v49 = vld [vmem:[#allocation108_spill] sm:$0xff]  ;;  %v3285_v14 = vld [vmem:[#allocation2 + $0x790] sm:$0xff] }
 0x12c   :  { %v3262_v11 = vand.u32 2147483647, %v5436_v40  ;;  %5440 = vst [vmem:[#allocation11_spill] sm:$0xff] %v3273_v36  ;;  %v5442_v40 = vld [vmem:[#allocation122_spill] sm:$0xff]  ;;  %v3289_v46 = vld [vmem:[#allocation5 + $0x768] sm:$0xff]  ;;  %v3291_v33 = vld [vmem:[#allocation5 + $0x770] sm:$0xff] }
 0x12d   :  { %v5443_v18 = vsub.f32 %v5441_v49, %v5442_v40  ;;  %5445 = vst [vmem:[#allocation122_spill] sm:$0xff] %v3285_v14  ;;  %v3287_v44 = vld [vmem:[#allocation2 + $0x798] sm:$0xff]  ;;  %5447 = vst [vmem:[#allocation378_spill] sm:$0xff] %v3289_v46  ;;  %v1137_v49 = vadd.f32 %v1136_v3, %v2165_v29  ;;  %v3300_v23 = vld [vmem:[#allocation2 + $0x7a0] sm:$0xff]  ;;  %v1107_v3 = vadd.f32 %v1106_v10, %v2326_v20 }
 0x12e   :  { %5446 = vst [vmem:[#allocation377_spill] sm:$0xff] %v3287_v44  ;;  %5448 = vst [vmem:[#allocation379_spill] sm:$0xff] %v3291_v33  ;;  %v3302_v50 = vld [vmem:[#allocation2 + $0x7a8] sm:$0xff]  ;;  %v3304_v40 = vld [vmem:[#allocation5 + $0x778] sm:$0xff] }
 0x12f   :  { %v3282_v12 = vand.u32 2147483647, %v5443_v18  ;;  %5449 = vst [vmem:[#allocation380_spill] sm:$0xff] %v3300_v23  ;;  %5450 = vst [vmem:[#allocation381_spill] sm:$0xff] %v3302_v50  ;;  %v3306_v15 = vld [vmem:[#allocation5 + $0x780] sm:$0xff]  ;;  %v3308_v8 = vld [vmem:[#allocation5 + $0x788] sm:$0xff]  ;;  %v1138_v20 = vadd.f32 %v1137_v49, %v2349_v9  ;;  %v1108_v49 = vadd.f32 %v1107_v3, %v2510_v0 }
 0x130   :  { %5451 = vst [vmem:[#allocation382_spill] sm:$0xff] %v3304_v40  ;;  %v5452_v13 = vld [vmem:[#allocation16_spill] sm:$0xff]  ;;  %v5453_v18 = vld [vmem:[#allocation125_spill] sm:$0xff]  ;;  %v3322_v2 = vld [vmem:[#allocation2 + $0x7b8] sm:$0xff] }
 0x131   :  { %5444 = vst [vmem:[#allocation108_spill] sm:$0xff] %v3282_v12  ;;  %v5454_v21 = vsub.f32 %v5452_v13, %v5453_v18  ;;  %v3320_v47 = vld [vmem:[#allocation2 + $0x7b0] sm:$0xff]  ;;  %5457 = vst [vmem:[#allocation383_spill] sm:$0xff] %v3322_v2  ;;  %v3326_v16 = vld [vmem:[#allocation5 + $0x798] sm:$0xff] }
 0x132   :  { %5456 = vst [vmem:[#allocation125_spill] sm:$0xff] %v3320_v47  ;;  %v3324_v28 = vld [vmem:[#allocation5 + $0x790] sm:$0xff]  ;;  %5459 = vst [vmem:[#allocation385_spill] sm:$0xff] %v3326_v16  ;;  %v5460_v32 = vld [vmem:[#allocation112_spill] sm:$0xff] }
 0x133   :  { %v3317_v29 = vand.u32 2147483647, %v5454_v21  ;;  %5458 = vst [vmem:[#allocation384_spill] sm:$0xff] %v3324_v28  ;;  %v5461_v13 = vld [vmem:[#allocation126_spill] sm:$0xff]  ;;  %v3338_v10 = vld [vmem:[#allocation2 + $0x7c0] sm:$0xff]  ;;  %v3340_v34 = vld [vmem:[#allocation2 + $0x7c8] sm:$0xff] }
 0x134   :  { %v5462_v21 = vsub.f32 %v5460_v32, %v5461_v13  ;;  %v3344_v12 = vld [vmem:[#allocation5 + $0x7a0] sm:$0xff]  ;;  %v3346_v43 = vld [vmem:[#allocation5 + $0x7a8] sm:$0xff]  ;;  %v5466_v13 = vld [vmem:[#allocation113_spill] sm:$0xff] }
 0x135   :  { %5455 = vst [vmem:[#allocation16_spill] sm:$0xff] %v3317_v29  ;;  %v3342_v29 = vld [vmem:[#allocation2 + $0x7d0] sm:$0xff]  ;;  %5464 = vst [vmem:[#allocation126_spill] sm:$0xff] %v3344_v12  ;;  %v3358_v36 = vld [vmem:[#allocation2 + $0x7d8] sm:$0xff] }
 0x136   :  { %v3335_v18 = vand.u32 2147483647, %v5462_v21  ;;  %5463 = vst [vmem:[#allocation112_spill] sm:$0xff] %v3342_v29  ;;  %5465 = vst [vmem:[#allocation386_spill] sm:$0xff] %v3346_v43  ;;  %v5467_v21 = vld [vmem:[#allocation127_spill] sm:$0xff]  ;;  %v3362_v4 = vld [vmem:[#allocation5 + $0x7b0] sm:$0xff] }
 0x137   :  { %v5468_v56 = vsub.f32 %v5466_v13, %v5467_v21  ;;  %5469 = vst [vmem:[#allocation113_spill] sm:$0xff] %v3358_v36  ;;  %v3360_v39 = vld [vmem:[#allocation2 + $0x7e0] sm:$0xff]  ;;  %5471 = vst [vmem:[#allocation387_spill] sm:$0xff] %v3362_v4  ;;  %v3364_v7 = vld [vmem:[#allocation5 + $0x7b8] sm:$0xff]  ;;  %v1139_v13 = vadd.f32 %v1138_v20, %v2533_v53 }
 0x138   :  { %5470 = vst [vmem:[#allocation127_spill] sm:$0xff] %v3360_v39  ;;  %5472 = vst [vmem:[#allocation388_spill] sm:$0xff] %v3364_v7  ;;  %v3373_v0 = vld [vmem:[#allocation5 + $0x7c0] sm:$0xff]  ;;  %v3375_v3 = vld [vmem:[#allocation5 + $0x7c8] sm:$0xff] }
 0x139   :  { %v3355_v9 = vand.u32 2147483647, %v5468_v56  ;;  %v3377_v21 = vld [vmem:[#allocation5 + $0x7d0] sm:$0xff]  ;;  %v5475_v52 = vld [vmem:[#allocation130_spill] sm:$0xff]  ;;  %v1109_v56 = vadd.f32 %v1108_v49, %v2694_v19  ;;  %v3389_v53 = vld [vmem:[#allocation2 + $0x7e8] sm:$0xff] }
 0x13a   :  { %5473 = vst [vmem:[#allocation389_spill] sm:$0xff] %v3377_v21  ;;  %v5474_v40 = vld [vmem:[#allocation117_spill] sm:$0xff]  ;;  %v3391_v20 = vld [vmem:[#allocation5 + $0x7d8] sm:$0xff]  ;;  %v3393_v46 = vld [vmem:[#allocation5 + $0x7e0] sm:$0xff] }
 0x13b   :  { %v5476_v32 = vsub.f32 %v5474_v40, %v5475_v52  ;;  %5477 = vst [vmem:[#allocation117_spill] sm:$0xff] %v3389_v53  ;;  %5478 = vst [vmem:[#allocation130_spill] sm:$0xff] %v3391_v20  ;;  %v5480_v31 = vld [vmem:[#allocation118_spill] sm:$0xff]  ;;  %v5481_v16 = vld [vmem:[#allocation131_spill] sm:$0xff]  ;;  %v1140_v40 = vadd.f32 %v1139_v13, %v2717_v57 }
 0x13c   :  { %5479 = vst [vmem:[#allocation390_spill] sm:$0xff] %v3393_v46  ;;  %v5482_v44 = vsub.f32 %v5480_v31, %v5481_v16  ;;  %v3405_v19 = vld [vmem:[#allocation2 + $0x7f0] sm:$0xff]  ;;  %v5486_v33 = vld [vmem:[#allocation119_spill] sm:$0xff]  ;;  %v5487_v43 = vld [vmem:[#allocation132_spill] sm:$0xff] }
 0x13d   :  { %v3386_v38 = vand.u32 2147483647, %v5476_v32  ;;  %5483 = vst [vmem:[#allocation118_spill] sm:$0xff] %v3405_v19  ;;  %v3407_v32 = vld [vmem:[#allocation5 + $0x7e8] sm:$0xff]  ;;  %v3409_v49 = vld [vmem:[#allocation5 + $0x7f0] sm:$0xff]  ;;  %v5488_v50 = vsub.f32 %v5486_v33, %v5487_v43  ;;  %v3419_v31 = vld [vmem:[#allocation2 + $0x7f8] sm:$0xff]  ;;  %v1141_v35 = vadd.f32 %v1140_v40, %v2901_v51 }
 0x13e   :  { %v3402_v52 = vand.u32 2147483647, %v5482_v44  ;;  %5484 = vst [vmem:[#allocation131_spill] sm:$0xff] %v3407_v32  ;;  %5485 = vst [vmem:[#allocation391_spill] sm:$0xff] %v3409_v49  ;;  %v1110_v44 = vadd.f32 %v1109_v56, %v2878_v30  ;;  %v3421_v57 = vld [vmem:[#allocation5 + $0x7f8] sm:$0xff]  ;;  %v5491_v33 = vld [vmem:[#allocation20_spill] sm:$0xff] }
 0x13f   :  { %v920_v16 = vand.u32 2147483647, %v5488_v50  ;;  %5489 = vst [vmem:[#allocation119_spill] sm:$0xff] %v3419_v31  ;;  %5490 = vst [vmem:[#allocation132_spill] sm:$0xff] %v3421_v57  ;;  %v5492_v50 = vld [vmem:[#allocation136_spill] sm:$0xff]  ;;  %v5494_v21 = vld [vmem:[#allocation123_spill] sm:$0xff]  ;;  %v1142_v43 = vadd.f32 %v1141_v35, %v3085_v63 }
 0x140   :  { %v5493_v56 = vsub.f32 %v5491_v33, %v5492_v50  ;;  %v1111_v13 = vadd.f32 %v1110_v44, %v3062_v42  ;;  %v5495_v51 = vld [vmem:[#allocation137_spill] sm:$0xff]  ;;  %v5497_v33 = vld [vmem:[#allocation124_spill] sm:$0xff]  ;;  %v5498_v50 = vld [vmem:[#allocation138_spill] sm:$0xff]  ;;  %v5500_v44 = vsub.f32 %v2077_v41, %v2129_v1 }
 0x141   :  { %v5496_v40 = vsub.f32 %v5494_v21, %v5495_v51  ;;  %v5501_v49 = vld [vmem:[#allocation21_spill] sm:$0xff]  ;;  %v5504_v63 = vld [vmem:[#allocation128_spill] sm:$0xff]  ;;  %v5505_v35 = vld [vmem:[#allocation142_spill] sm:$0xff]  ;;  %v1143_v31 = vadd.f32 %v1142_v43, %v3262_v11 }
 0x142   :  { %v921_v7 = vand.u32 2147483647, %v5493_v56  ;;  %v5499_v56 = vsub.f32 %v5497_v33, %v5498_v50  ;;  %v928_v12 = vand.u32 2147483647, %v5500_v44  ;;  %v1112_v28 = vadd.f32 %v1111_v13, %v3244_v62  ;;  %v5502_v21 = vld [vmem:[#allocation141_spill] sm:$0xff]  ;;  %v5507_v57 = vld [vmem:[#allocation135_spill] sm:$0xff] }
 0x143   :  { %v3445_v29 = vand.u32 2147483647, %v5496_v40  ;;  %v5503_v51 = vsub.f32 %v5501_v49, %v5502_v21  ;;  %v5506_v19 = vsub.f32 %v5504_v63, %v5505_v35  ;;  %v5508_v33 = vld [vmem:[#allocation147_spill] sm:$0xff]  ;;  %v5510_v41 = vld [vmem:[#allocation129_spill] sm:$0xff]  ;;  %v5513_v13 = vld [vmem:[#allocation134_spill] sm:$0xff] }
 0x144   :  { %v3453_v42 = vand.u32 2147483647, %v5499_v56  ;;  %v5509_v50 = vsub.f32 %v5507_v57, %v5508_v33  ;;  %v5511_v1 = vld [vmem:[#allocation143_spill] sm:$0xff]  ;;  %v5514_v49 = vld [vmem:[#allocation146_spill] sm:$0xff]  ;;  %v1113_v35 = vadd.f32 %v1112_v28, %v920_v16  ;;  %v5517_v32 = vld [vmem:[#allocation24_spill] sm:$0xff] }
 0x145   :  { %v3462_v40 = vand.u32 2147483647, %v5503_v51  ;;  %v3467_v30 = vand.u32 2147483647, %v5506_v19  ;;  %v5512_v44 = vsub.f32 %v5510_v41, %v5511_v1  ;;  %v5515_v21 = vsub.f32 %v5513_v13, %v5514_v49  ;;  %v5518_v57 = vld [vmem:[#allocation149_spill] sm:$0xff]  ;;  %v5520_v11 = vld [vmem:[#allocation139_spill] sm:$0xff] }
 0x146   :  { %v929_v56 = vand.u32 2147483647, %v5509_v50  ;;  %v5516_v19 = vsub.f32 %v2144_v24, %v2196_v58  ;;  %v5519_v33 = vsub.f32 %v5517_v32, %v5518_v57  ;;  %v5521_v43 = vld [vmem:[#allocation150_spill] sm:$0xff]  ;;  %v5524_v53 = vld [vmem:[#allocation159_spill] sm:$0xff]  ;;  %v5526_v46 = vld [vmem:[#allocation140_spill] sm:$0xff] }
 0x147   :  { %v3476_v62 = vand.u32 2147483647, %v5512_v44  ;;  %v3481_v51 = vand.u32 2147483647, %v5515_v21  ;;  %v5522_v41 = vsub.f32 %v5520_v11, %v5521_v43  ;;  %v5523_v44 = vld [vmem:[#allocation28_spill] sm:$0xff]  ;;  %v1144_v21 = vadd.f32 %v1143_v31, %v921_v7  ;;  %v5527_v39 = vld [vmem:[#allocation151_spill] sm:$0xff] }
 0x148   :  { %v936_v63 = vand.u32 2147483647, %v5516_v19  ;;  %v3489_v50 = vand.u32 2147483647, %v5519_v33  ;;  %v5525_v13 = vsub.f32 %v5523_v44, %v5524_v53  ;;  %v5528_v58 = vsub.f32 %v5526_v46, %v5527_v39  ;;  %v5529_v28 = vld [vmem:[#allocation25_spill] sm:$0xff]  ;;  %v5530_v16 = vld [vmem:[#allocation154_spill] sm:$0xff] }
 0x149   :  { %v3494_v1 = vand.u32 2147483647, %v5522_v41  ;;  %v5531_v32 = vsub.f32 %v5529_v28, %v5530_v16  ;;  %v5532_v57 = vld [vmem:[#allocation158_spill] sm:$0xff]  ;;  %v5533_v33 = vld [vmem:[#allocation172_spill] sm:$0xff]  ;;  %v1114_v41 = vadd.f32 %v1113_v35, %v928_v12  ;;  %v5536_v36 = vld [vmem:[#allocation155_spill] sm:$0xff] }
 0x14a   :  { %v937_v49 = vand.u32 2147483647, %v5525_v13  ;;  %v3502_v24 = vand.u32 2147483647, %v5528_v58  ;;  %v5534_v11 = vsub.f32 %v5532_v57, %v5533_v33  ;;  %v5535_v20 = vld [vmem:[#allocation144_spill] sm:$0xff]  ;;  %v5538_v7 = vld [vmem:[#allocation145_spill] sm:$0xff] }
 0x14b   :  { %v3507_v19 = vand.u32 2147483647, %v5531_v32  ;;  %v5537_v53 = vsub.f32 %v5535_v20, %v5536_v36  ;;  %v5539_v31 = vld [vmem:[#allocation156_spill] sm:$0xff]  ;;  %v5541_v13 = vld [vmem:[#allocation161_spill] sm:$0xff]  ;;  %v5542_v58 = vld [vmem:[#allocation174_spill] sm:$0xff]  ;;  %v1145_v32 = vadd.f32 %v1144_v21, %v929_v56 }
 0x14c   :  { %v944_v43 = vand.u32 2147483647, %v5534_v11  ;;  %v5540_v39 = vsub.f32 %v5538_v7, %v5539_v31  ;;  %v5543_v28 = vsub.f32 %v5541_v13, %v5542_v58  ;;  %v5544_v2 = vld [vmem:[#allocation148_spill] sm:$0xff]  ;;  %v5547_v12 = vld [vmem:[#allocation29_spill] sm:$0xff]  ;;  %v5550_v11 = vld [vmem:[#allocation187_spill] sm:$0xff]  ;;  %v1115_v31 = vadd.f32 %v1114_v41, %v936_v63 }
 0x14d   :  { %v3515_v44 = vand.u32 2147483647, %v5537_v53  ;;  %v5545_v4 = vld [vmem:[#allocation160_spill] sm:$0xff]  ;;  %v5551_v53 = vsub.f32 %v2261_v26, %v5550_v11  ;;  %v5553_v47 = vld [vmem:[#allocation165_spill] sm:$0xff]  ;;  %v5556_v21 = vld [vmem:[#allocation166_spill] sm:$0xff] }
 0x14e   :  { %v3520_v46 = vand.u32 2147483647, %v5540_v39  ;;  %v945_v16 = vand.u32 2147483647, %v5543_v28  ;;  %v5546_v57 = vsub.f32 %v5544_v2, %v5545_v4  ;;  %v5548_v35 = vld [vmem:[#allocation164_spill] sm:$0xff]  ;;  %v5555_v56 = vld [vmem:[#allocation153_spill] sm:$0xff] }
 0x14f   :  { %v5549_v36 = vsub.f32 %v5547_v12, %v5548_v35  ;;  %v952_v7 = vand.u32 2147483647, %v5551_v53  ;;  %v5552_v39 = vld [vmem:[#allocation152_spill] sm:$0xff]  ;;  %v5557_v4 = vsub.f32 %v5555_v56, %v5556_v21  ;;  %v5558_v28 = vld [vmem:[#allocation173_spill] sm:$0xff]  ;;  %v5561_v23 = vld [vmem:[#allocation30_spill] sm:$0xff]  ;;  %v1116_v56 = vadd.f32 %v1115_v31, %v944_v43 }
 0x150   :  { %v3528_v33 = vand.u32 2147483647, %v5546_v57  ;;  %v5554_v13 = vsub.f32 %v5552_v39, %v5553_v47  ;;  %v5559_v57 = vld [vmem:[#allocation188_spill] sm:$0xff]  ;;  %v5562_v14 = vld [vmem:[#allocation170_spill] sm:$0xff]  ;;  %v5565_v63 = vld [vmem:[#allocation157_spill] sm:$0xff]  ;;  %v5569_v39 = vsub.f32 %v2328_v61, %v2380_v17 }
 0x151   :  { %v3533_v20 = vand.u32 2147483647, %v5549_v36  ;;  %v3546_v2 = vand.u32 2147483647, %v5557_v4  ;;  %v5560_v12 = vsub.f32 %v5558_v28, %v5559_v57  ;;  %v1146_v36 = vadd.f32 %v1145_v32, %v937_v49  ;;  %v5566_v41 = vld [vmem:[#allocation171_spill] sm:$0xff]  ;;  %v5570_v21 = vld [vmem:[#allocation162_spill] sm:$0xff] }
 0x152   :  { %v3541_v58 = vand.u32 2147483647, %v5554_v13  ;;  %v5563_v26 = vsub.f32 %v5561_v23, %v5562_v14  ;;  %v5567_v47 = vsub.f32 %v5565_v63, %v5566_v41  ;;  %v960_v13 = vand.u32 2147483647, %v5569_v39  ;;  %v5571_v4 = vld [vmem:[#allocation175_spill] sm:$0xff]  ;;  %v5575_v32 = vld [vmem:[#allocation176_spill] sm:$0xff] }
 0x153   :  { %v953_v35 = vand.u32 2147483647, %v5560_v12  ;;  %v5572_v28 = vsub.f32 %v5570_v21, %v5571_v4  ;;  %v5574_v49 = vld [vmem:[#allocation163_spill] sm:$0xff]  ;;  %v5585_v43 = vld [vmem:[#allocation168_spill] sm:$0xff]  ;;  %v5586_v31 = vld [vmem:[#allocation181_spill] sm:$0xff] }
 0x154   :  { %v3554_v11 = vand.u32 2147483647, %v5563_v26  ;;  %v3559_v53 = vand.u32 2147483647, %v5567_v47  ;;  %v5576_v14 = vsub.f32 %v5574_v49, %v5575_v32  ;;  %v5578_v12 = vld [vmem:[#allocation27_spill] sm:$0xff]  ;;  %v5579_v26 = vld [vmem:[#allocation200_spill] sm:$0xff]  ;;  %v1147_v47 = vadd.f32 %v1146_v36, %v945_v16 }
 0x155   :  { %v3567_v57 = vand.u32 2147483647, %v5572_v28  ;;  %v5580_v63 = vsub.f32 %v5578_v12, %v5579_v26  ;;  %v5587_v39 = vsub.f32 %v5585_v43, %v5586_v31  ;;  %v5589_v4 = vld [vmem:[#allocation199_spill] sm:$0xff]  ;;  %v5590_v28 = vld [vmem:[#allocation212_spill] sm:$0xff]  ;;  %v5596_v36 = vld [vmem:[#allocation186_spill] sm:$0xff] }
 0x156   :  { %5564 = vst [vmem:[#allocation20_spill] sm:$0xff] %v3554_v11  ;;  %5568 = vst [vmem:[#allocation136_spill] sm:$0xff] %v3559_v53  ;;  %v3572_v23 = vand.u32 2147483647, %v5576_v14  ;;  %v5581_v53 = vld [vmem:[#allocation167_spill] sm:$0xff]  ;;  %v5582_v11 = vld [vmem:[#allocation180_spill] sm:$0xff]  ;;  %v5591_v49 = vsub.f32 %v5589_v4, %v5590_v28  ;;  %v1117_v14 = vadd.f32 %v1116_v56, %v952_v7 }
 0x157   :  { %5573 = vst [vmem:[#allocation123_spill] sm:$0xff] %v3567_v57  ;;  %v961_v41 = vand.u32 2147483647, %v5580_v63  ;;  %v5583_v61 = vsub.f32 %v5581_v53, %v5582_v11  ;;  %v3585_v21 = vand.u32 2147483647, %v5587_v39  ;;  %v5593_v57 = vld [vmem:[#allocation182_spill] sm:$0xff]  ;;  %v1148_v39 = vadd.f32 %v1147_v47, %v953_v35 }
 0x158   :  { %5577 = vst [vmem:[#allocation137_spill] sm:$0xff] %v3572_v23  ;;  %v968_v32 = vand.u32 2147483647, %v5591_v49  ;;  %v5592_v23 = vld [vmem:[#allocation169_spill] sm:$0xff]  ;;  %v5595_v16 = vld [vmem:[#allocation35_spill] sm:$0xff]  ;;  %v5606_v7 = vld [vmem:[#allocation178_spill] sm:$0xff] }
 0x159   :  { %v3580_v17 = vand.u32 2147483647, %v5583_v61  ;;  %5588 = vst [vmem:[#allocation138_spill] sm:$0xff] %v3585_v21  ;;  %v5594_v12 = vsub.f32 %v5592_v23, %v5593_v57  ;;  %v5597_v11 = vsub.f32 %v5595_v16, %v5596_v36  ;;  %v5599_v63 = vld [vmem:[#allocation45_spill] sm:$0xff]  ;;  %v5600_v61 = vld [vmem:[#allocation215_spill] sm:$0xff]  ;;  %v5607_v56 = vld [vmem:[#allocation190_spill] sm:$0xff]  ;;  %v1118_v36 = vadd.f32 %v1117_v14, %v960_v13 }
 0x15a   :  { %v5601_v43 = vsub.f32 %v5599_v63, %v5600_v61  ;;  %v5602_v21 = vld [vmem:[#allocation177_spill] sm:$0xff]  ;;  %v5608_v57 = vsub.f32 %v5606_v7, %v5607_v56  ;;  %v5610_v49 = vld [vmem:[#allocation227_spill] sm:$0xff]  ;;  %v5616_v47 = vld [vmem:[#allocation194_spill] sm:$0xff] }
 0x15b   :  { %5584 = vst [vmem:[#allocation124_spill] sm:$0xff] %v3580_v17  ;;  %v3593_v26 = vand.u32 2147483647, %v5594_v12  ;;  %v3598_v53 = vand.u32 2147483647, %v5597_v11  ;;  %v5603_v17 = vld [vmem:[#allocation189_spill] sm:$0xff]  ;;  %v5611_v12 = vsub.f32 %v2445_v22, %v5610_v49 }
 0x15c   :  { %v969_v31 = vand.u32 2147483647, %v5601_v43  ;;  %v5604_v4 = vsub.f32 %v5602_v21, %v5603_v17  ;;  %v3611_v23 = vand.u32 2147483647, %v5608_v57  ;;  %v5612_v11 = vld [vmem:[#allocation179_spill] sm:$0xff]  ;;  %v5618_v43 = vld [vmem:[#allocation214_spill] sm:$0xff]  ;;  %v1149_v57 = vadd.f32 %v1148_v39, %v961_v41 }
 0x15d   :  { %5598 = vst [vmem:[#allocation21_spill] sm:$0xff] %v3598_v53  ;;  %v976_v16 = vand.u32 2147483647, %v5611_v12  ;;  %v5613_v53 = vld [vmem:[#allocation191_spill] sm:$0xff]  ;;  %v5625_v13 = vld [vmem:[#allocation185_spill] sm:$0xff]  ;;  %v5626_v14 = vld [vmem:[#allocation196_spill] sm:$0xff] }
 0x15e   :  { %v3606_v28 = vand.u32 2147483647, %v5604_v4  ;;  %5609 = vst [vmem:[#allocation128_spill] sm:$0xff] %v3611_v23  ;;  %v5614_v63 = vsub.f32 %v5612_v11, %v5613_v53  ;;  %v5615_v35 = vld [vmem:[#allocation183_spill] sm:$0xff]  ;;  %v5619_v4 = vld [vmem:[#allocation228_spill] sm:$0xff]  ;;  %v5627_v53 = vsub.f32 %v5625_v13, %v5626_v14  ;;  %v5629_v11 = vsub.f32 %v2512_v55, %v2564_v54 }
 0x15f   :  { %v5617_v17 = vsub.f32 %v5615_v35, %v5616_v47  ;;  %v5620_v7 = vsub.f32 %v5618_v43, %v5619_v4  ;;  %v5621_v23 = vld [vmem:[#allocation184_spill] sm:$0xff]  ;;  %v1119_v35 = vadd.f32 %v1118_v36, %v968_v32  ;;  %v5634_v41 = vld [vmem:[#allocation43_spill] sm:$0xff]  ;;  %v5645_v32 = vld [vmem:[#allocation193_spill] sm:$0xff] }
 0x160   :  { %5605 = vst [vmem:[#allocation141_spill] sm:$0xff] %v3606_v28  ;;  %v3619_v61 = vand.u32 2147483647, %v5614_v63  ;;  %v5622_v28 = vld [vmem:[#allocation195_spill] sm:$0xff]  ;;  %v3637_v12 = vand.u32 2147483647, %v5627_v53  ;;  %v1150_v53 = vadd.f32 %v1149_v57, %v969_v31 }
 0x161   :  { %v3624_v21 = vand.u32 2147483647, %v5617_v17  ;;  %v977_v56 = vand.u32 2147483647, %v5620_v7  ;;  %v5623_v22 = vsub.f32 %v5621_v23, %v5622_v28  ;;  %v984_v63 = vand.u32 2147483647, %v5629_v11 }
 0x162   :  { %5628 = vst [vmem:[#allocation135_spill] sm:$0xff] %v3637_v12  ;;  %v5630_v47 = vld [vmem:[#allocation40_spill] sm:$0xff]  ;;  %v5631_v17 = vld [vmem:[#allocation201_spill] sm:$0xff]  ;;  %v5638_v7 = vld [vmem:[#allocation54_spill] sm:$0xff] }
 0x163   :  { %v3632_v49 = vand.u32 2147483647, %v5623_v22  ;;  %v5632_v43 = vsub.f32 %v5630_v47, %v5631_v17  ;;  %v5635_v39 = vld [vmem:[#allocation204_spill] sm:$0xff]  ;;  %v5646_v36 = vld [vmem:[#allocation206_spill] sm:$0xff]  ;;  %v5649_v17 = vld [vmem:[#allocation239_spill] sm:$0xff] }
 0x164   :  { %v5636_v28 = vsub.f32 %v5634_v41, %v5635_v39  ;;  %v5639_v22 = vld [vmem:[#allocation240_spill] sm:$0xff]  ;;  %v5647_v11 = vsub.f32 %v5645_v32, %v5646_v36  ;;  %v5656_v31 = vld [vmem:[#allocation198_spill] sm:$0xff]  ;;  %v5657_v57 = vld [vmem:[#allocation211_spill] sm:$0xff] }
 0x165   :  { %5624 = vst [vmem:[#allocation142_spill] sm:$0xff] %v3632_v49  ;;  %v3645_v4 = vand.u32 2147483647, %v5632_v43  ;;  %v5640_v13 = vsub.f32 %v5638_v7, %v5639_v22  ;;  %v5641_v12 = vld [vmem:[#allocation192_spill] sm:$0xff]  ;;  %v5642_v49 = vld [vmem:[#allocation205_spill] sm:$0xff] }
 0x166   :  { %v3650_v23 = vand.u32 2147483647, %v5636_v28  ;;  %v5643_v54 = vsub.f32 %v5641_v12, %v5642_v49  ;;  %v3663_v47 = vand.u32 2147483647, %v5647_v11  ;;  %v5650_v43 = vld [vmem:[#allocation252_spill] sm:$0xff]  ;;  %v1120_v28 = vadd.f32 %v1119_v35, %v976_v16  ;;  %v5667_v16 = vld [vmem:[#allocation203_spill] sm:$0xff] }
 0x167   :  { %5633 = vst [vmem:[#allocation147_spill] sm:$0xff] %v3645_v4  ;;  %v985_v14 = vand.u32 2147483647, %v5640_v13  ;;  %v5651_v41 = vsub.f32 %v5649_v17, %v5650_v43  ;;  %v5653_v4 = vld [vmem:[#allocation210_spill] sm:$0xff]  ;;  %v5658_v49 = vsub.f32 %v5656_v31, %v5657_v57  ;;  %v1151_v11 = vadd.f32 %v1150_v53, %v977_v56  ;;  %v5668_v35 = vld [vmem:[#allocation217_spill] sm:$0xff]  ;;  %v5678_v56 = vld [vmem:[#allocation208_spill] sm:$0xff] }
 0x168   :  { %5637 = vst [vmem:[#allocation129_spill] sm:$0xff] %v3650_v23  ;;  %v3658_v55 = vand.u32 2147483647, %v5643_v54  ;;  %5648 = vst [vmem:[#allocation134_spill] sm:$0xff] %v3663_v47  ;;  %v5652_v23 = vld [vmem:[#allocation197_spill] sm:$0xff]  ;;  %v5660_v13 = vld [vmem:[#allocation242_spill] sm:$0xff] }
 0x169   :  { %v992_v39 = vand.u32 2147483647, %v5651_v41  ;;  %v5654_v7 = vsub.f32 %v5652_v23, %v5653_v4  ;;  %v3676_v12 = vand.u32 2147483647, %v5658_v49  ;;  %v5661_v54 = vld [vmem:[#allocation256_spill] sm:$0xff]  ;;  %v5663_v47 = vld [vmem:[#allocation202_spill] sm:$0xff]  ;;  %v5669_v4 = vsub.f32 %v5667_v16, %v5668_v35 }
 0x16a   :  { %5644 = vst [vmem:[#allocation143_spill] sm:$0xff] %v3658_v55  ;;  %v5662_v32 = vsub.f32 %v5660_v13, %v5661_v54  ;;  %v5664_v55 = vld [vmem:[#allocation216_spill] sm:$0xff]  ;;  %v5671_v41 = vld [vmem:[#allocation254_spill] sm:$0xff]  ;;  %v1121_v49 = vadd.f32 %v1120_v28, %v984_v63  ;;  %v5679_v53 = vld [vmem:[#allocation221_spill] sm:$0xff] }
 0x16b   :  { %v3671_v22 = vand.u32 2147483647, %v5654_v7  ;;  %5659 = vst [vmem:[#allocation24_spill] sm:$0xff] %v3676_v12  ;;  %v5665_v17 = vsub.f32 %v5663_v47, %v5664_v55  ;;  %v3689_v23 = vand.u32 2147483647, %v5669_v4  ;;  %v5672_v7 = vld [vmem:[#allocation268_spill] sm:$0xff]  ;;  %v5680_v55 = vsub.f32 %v5678_v56, %v5679_v53 }
 0x16c   :  { %v993_v36 = vand.u32 2147483647, %v5662_v32  ;;  %v5673_v31 = vsub.f32 %v5671_v41, %v5672_v7  ;;  %v5674_v12 = vld [vmem:[#allocation207_spill] sm:$0xff]  ;;  %v1152_v4 = vadd.f32 %v1151_v11, %v985_v14  ;;  %v5689_v63 = vld [vmem:[#allocation213_spill] sm:$0xff]  ;;  %v5690_v28 = vld [vmem:[#allocation226_spill] sm:$0xff] }
 0x16d   :  { %5655 = vst [vmem:[#allocation146_spill] sm:$0xff] %v3671_v22  ;;  %v3684_v43 = vand.u32 2147483647, %v5665_v17  ;;  %5670 = vst [vmem:[#allocation139_spill] sm:$0xff] %v3689_v23  ;;  %v5675_v22 = vld [vmem:[#allocation220_spill] sm:$0xff]  ;;  %v5682_v32 = vld [vmem:[#allocation255_spill] sm:$0xff] }
 0x16e   :  { %v1000_v57 = vand.u32 2147483647, %v5673_v31  ;;  %v5676_v13 = vsub.f32 %v5674_v12, %v5675_v22  ;;  %v3702_v47 = vand.u32 2147483647, %v5680_v55  ;;  %v5683_v17 = vld [vmem:[#allocation269_spill] sm:$0xff]  ;;  %v5691_v22 = vsub.f32 %v5689_v63, %v5690_v28  ;;  %v5693_v31 = vld [vmem:[#allocation70_spill] sm:$0xff] }
 0x16f   :  { %5666 = vst [vmem:[#allocation149_spill] sm:$0xff] %v3684_v43  ;;  %v5684_v16 = vsub.f32 %v5682_v32, %v5683_v17  ;;  %v5685_v23 = vld [vmem:[#allocation209_spill] sm:$0xff]  ;;  %v5686_v43 = vld [vmem:[#allocation222_spill] sm:$0xff]  ;;  %v1122_v55 = vadd.f32 %v1121_v49, %v992_v39  ;;  %v5701_v11 = vld [vmem:[#allocation231_spill] sm:$0xff] }
 0x170   :  { %v3697_v54 = vand.u32 2147483647, %v5676_v13  ;;  %5681 = vst [vmem:[#allocation28_spill] sm:$0xff] %v3702_v47  ;;  %v5687_v41 = vsub.f32 %v5685_v23, %v5686_v43  ;;  %v3715_v12 = vand.u32 2147483647, %v5691_v22  ;;  %v5694_v13 = vld [vmem:[#allocation282_spill] sm:$0xff]  ;;  %v1153_v22 = vadd.f32 %v1152_v4, %v993_v36 }
 0x171   :  { %v1001_v35 = vand.u32 2147483647, %v5684_v16  ;;  %v5695_v56 = vsub.f32 %v5693_v31, %v5694_v13  ;;  %v5696_v47 = vld [vmem:[#allocation50_spill] sm:$0xff]  ;;  %v5711_v39 = vld [vmem:[#allocation223_spill] sm:$0xff]  ;;  %v5722_v36 = vld [vmem:[#allocation225_spill] sm:$0xff] }
 0x172   :  { %5677 = vst [vmem:[#allocation150_spill] sm:$0xff] %v3697_v54  ;;  %v3710_v7 = vand.u32 2147483647, %v5687_v41  ;;  %5692 = vst [vmem:[#allocation140_spill] sm:$0xff] %v3715_v12  ;;  %v5697_v54 = vld [vmem:[#allocation230_spill] sm:$0xff]  ;;  %v5705_v41 = vld [vmem:[#allocation283_spill] sm:$0xff] }
 0x173   :  { %v1008_v53 = vand.u32 2147483647, %v5695_v56  ;;  %v5698_v32 = vsub.f32 %v5696_v47, %v5697_v54  ;;  %v5700_v14 = vld [vmem:[#allocation218_spill] sm:$0xff]  ;;  %v5707_v12 = vld [vmem:[#allocation219_spill] sm:$0xff]  ;;  %v5715_v56 = vld [vmem:[#allocation281_spill] sm:$0xff] }
 0x174   :  { %5688 = vst [vmem:[#allocation159_spill] sm:$0xff] %v3710_v7  ;;  %v5702_v43 = vsub.f32 %v5700_v14, %v5701_v11  ;;  %v5704_v16 = vld [vmem:[#allocation270_spill] sm:$0xff]  ;;  %v5708_v7 = vld [vmem:[#allocation232_spill] sm:$0xff] }
 0x175   :  { %v3723_v17 = vand.u32 2147483647, %v5698_v32  ;;  %v5706_v63 = vsub.f32 %v5704_v16, %v5705_v41  ;;  %v5709_v31 = vsub.f32 %v5707_v12, %v5708_v7  ;;  %v5712_v49 = vld [vmem:[#allocation234_spill] sm:$0xff]  ;;  %v5716_v32 = vld [vmem:[#allocation296_spill] sm:$0xff] }
 0x176   :  { %v3728_v23 = vand.u32 2147483647, %v5702_v43  ;;  %v5713_v54 = vsub.f32 %v5711_v39, %v5712_v49  ;;  %v5717_v14 = vsub.f32 %v5715_v56, %v5716_v32  ;;  %v1123_v43 = vadd.f32 %v1122_v55, %v1000_v57  ;;  %v5723_v4 = vld [vmem:[#allocation236_spill] sm:$0xff]  ;;  %v5733_v57 = vld [vmem:[#allocation42_spill] sm:$0xff]  ;;  %v5734_v55 = vld [vmem:[#allocation245_spill] sm:$0xff] }
 0x177   :  { %5699 = vst [vmem:[#allocation151_spill] sm:$0xff] %v3723_v17  ;;  %v1009_v28 = vand.u32 2147483647, %v5706_v63  ;;  %v3736_v13 = vand.u32 2147483647, %v5709_v31  ;;  %v5719_v17 = vld [vmem:[#allocation235_spill] sm:$0xff]  ;;  %v5724_v7 = vsub.f32 %v5722_v36, %v5723_v4 }
 0x178   :  { %5703 = vst [vmem:[#allocation25_spill] sm:$0xff] %v3728_v23  ;;  %v3741_v47 = vand.u32 2147483647, %v5713_v54  ;;  %v1016_v11 = vand.u32 2147483647, %v5717_v14  ;;  %v5718_v23 = vld [vmem:[#allocation224_spill] sm:$0xff]  ;;  %v1154_v54 = vadd.f32 %v1153_v22, %v1001_v35 }
 0x179   :  { %5710 = vst [vmem:[#allocation154_spill] sm:$0xff] %v3736_v13  ;;  %v5720_v16 = vsub.f32 %v5718_v23, %v5719_v17  ;;  %v3754_v12 = vand.u32 2147483647, %v5724_v7  ;;  %v5726_v63 = vld [vmem:[#allocation285_spill] sm:$0xff]  ;;  %v5727_v31 = vld [vmem:[#allocation299_spill] sm:$0xff]  ;;  %v5735_v17 = vsub.f32 %v5733_v57, %v5734_v55  ;;  %v1124_v7 = vadd.f32 %v1123_v43, %v1008_v53  ;;  %v5755_v53 = vld [vmem:[#allocation238_spill] sm:$0xff] }
 0x17a   :  { %5714 = vst [vmem:[#allocation158_spill] sm:$0xff] %v3741_v47  ;;  %v5728_v39 = vsub.f32 %v5726_v63, %v5727_v31  ;;  %v5729_v47 = vld [vmem:[#allocation229_spill] sm:$0xff]  ;;  %v5745_v22 = vld [vmem:[#allocation247_spill] sm:$0xff] }
 0x17b   :  { %v3749_v41 = vand.u32 2147483647, %v5720_v16  ;;  %5725 = vst [vmem:[#allocation144_spill] sm:$0xff] %v3754_v12  ;;  %v5730_v13 = vld [vmem:[#allocation241_spill] sm:$0xff]  ;;  %v3767_v23 = vand.u32 2147483647, %v5735_v17  ;;  %v1155_v17 = vadd.f32 %v1154_v54, %v1009_v28 }
 0x17c   :  { %v1017_v49 = vand.u32 2147483647, %v5728_v39  ;;  %v5731_v56 = vsub.f32 %v5729_v47, %v5730_v13  ;;  %v5737_v14 = vld [vmem:[#allocation297_spill] sm:$0xff]  ;;  %v5738_v16 = vld [vmem:[#allocation310_spill] sm:$0xff]  ;;  %v5740_v12 = vld [vmem:[#allocation55_spill] sm:$0xff] }
 0x17d   :  { %5721 = vst [vmem:[#allocation172_spill] sm:$0xff] %v3749_v41  ;;  %5736 = vst [vmem:[#allocation145_spill] sm:$0xff] %v3767_v23  ;;  %v5739_v36 = vsub.f32 %v5737_v14, %v5738_v16  ;;  %v5741_v41 = vld [vmem:[#allocation246_spill] sm:$0xff]  ;;  %v5744_v35 = vld [vmem:[#allocation233_spill] sm:$0xff] }
 0x17e   :  { %v3762_v32 = vand.u32 2147483647, %v5731_v56  ;;  %v5742_v63 = vsub.f32 %v5740_v12, %v5741_v41  ;;  %v5746_v13 = vsub.f32 %v5744_v35, %v5745_v22  ;;  %v5748_v39 = vld [vmem:[#allocation298_spill] sm:$0xff]  ;;  %v5749_v56 = vld [vmem:[#allocation311_spill] sm:$0xff]  ;;  %v5751_v23 = vld [vmem:[#allocation237_spill] sm:$0xff] }
 0x17f   :  { %v1024_v4 = vand.u32 2147483647, %v5739_v36  ;;  %v5750_v57 = vsub.f32 %v5748_v39, %v5749_v56  ;;  %v5756_v43 = vld [vmem:[#allocation251_spill] sm:$0xff]  ;;  %v5759_v36 = vld [vmem:[#allocation69_spill] sm:$0xff]  ;;  %v5766_v28 = vld [vmem:[#allocation244_spill] sm:$0xff] }
 0x180   :  { %5732 = vst [vmem:[#allocation155_spill] sm:$0xff] %v3762_v32  ;;  %v3775_v31 = vand.u32 2147483647, %v5742_v63  ;;  %v3780_v47 = vand.u32 2147483647, %v5746_v13  ;;  %v5752_v32 = vld [vmem:[#allocation250_spill] sm:$0xff]  ;;  %v5757_v41 = vsub.f32 %v5755_v53, %v5756_v43  ;;  %v1125_v13 = vadd.f32 %v1124_v7, %v1016_v11 }
 0x181   :  { %v1025_v55 = vand.u32 2147483647, %v5750_v57  ;;  %v5753_v14 = vsub.f32 %v5751_v23, %v5752_v32  ;;  %v5760_v63 = vld [vmem:[#allocation323_spill] sm:$0xff]  ;;  %v5767_v54 = vld [vmem:[#allocation258_spill] sm:$0xff]  ;;  %v5770_v57 = vld [vmem:[#allocation85_spill] sm:$0xff] }
 0x182   :  { %5743 = vst [vmem:[#allocation156_spill] sm:$0xff] %v3775_v31  ;;  %5747 = vst [vmem:[#allocation161_spill] sm:$0xff] %v3780_v47  ;;  %v3793_v12 = vand.u32 2147483647, %v5757_v41  ;;  %v5761_v35 = vsub.f32 %v5759_v36, %v5760_v63  ;;  %v5762_v47 = vld [vmem:[#allocation243_spill] sm:$0xff]  ;;  %v5763_v31 = vld [vmem:[#allocation257_spill] sm:$0xff]  ;;  %v5768_v32 = vsub.f32 %v5766_v28, %v5767_v54  ;;  %v1156_v41 = vadd.f32 %v1155_v17, %v1017_v49 }
 0x183   :  { %v3788_v16 = vand.u32 2147483647, %v5753_v14  ;;  %v5764_v39 = vsub.f32 %v5762_v47, %v5763_v31  ;;  %v5771_v14 = vld [vmem:[#allocation324_spill] sm:$0xff]  ;;  %v5777_v7 = vld [vmem:[#allocation263_spill] sm:$0xff]  ;;  %v5786_v49 = vld [vmem:[#allocation253_spill] sm:$0xff] }
 0x184   :  { %5758 = vst [vmem:[#allocation148_spill] sm:$0xff] %v3793_v12  ;;  %v1032_v22 = vand.u32 2147483647, %v5761_v35  ;;  %v3806_v23 = vand.u32 2147483647, %v5768_v32  ;;  %v5772_v53 = vsub.f32 %v5770_v57, %v5771_v14  ;;  %v5773_v12 = vld [vmem:[#allocation60_spill] sm:$0xff]  ;;  %v1126_v32 = vadd.f32 %v1125_v13, %v1024_v4 }
 0x185   :  { %5754 = vst [vmem:[#allocation174_spill] sm:$0xff] %v3788_v16  ;;  %v3801_v56 = vand.u32 2147483647, %v5764_v39  ;;  %v5774_v16 = vld [vmem:[#allocation262_spill] sm:$0xff]  ;;  %v5776_v11 = vld [vmem:[#allocation248_spill] sm:$0xff]  ;;  %v5787_v17 = vld [vmem:[#allocation267_spill] sm:$0xff] }
 0x186   :  { %5769 = vst [vmem:[#allocation29_spill] sm:$0xff] %v3806_v23  ;;  %v1033_v43 = vand.u32 2147483647, %v5772_v53  ;;  %v5775_v36 = vsub.f32 %v5773_v12, %v5774_v16  ;;  %v5778_v31 = vsub.f32 %v5776_v11, %v5777_v7  ;;  %v5780_v35 = vld [vmem:[#allocation322_spill] sm:$0xff]  ;;  %v5783_v23 = vld [vmem:[#allocation249_spill] sm:$0xff]  ;;  %v5788_v16 = vsub.f32 %v5786_v49, %v5787_v17  ;;  %v5789_v53 = vld [vmem:[#allocation335_spill] sm:$0xff] }
 0x187   :  { %5765 = vst [vmem:[#allocation160_spill] sm:$0xff] %v3801_v56  ;;  %v5781_v39 = vld [vmem:[#allocation334_spill] sm:$0xff]  ;;  %v5784_v56 = vld [vmem:[#allocation264_spill] sm:$0xff]  ;;  %v1157_v7 = vadd.f32 %v1156_v41, %v1025_v55  ;;  %v5795_v13 = vld [vmem:[#allocation273_spill] sm:$0xff]  ;;  %v1127_v49 = vadd.f32 %v1126_v32, %v1032_v22 }
 0x188   :  { %v3814_v63 = vand.u32 2147483647, %v5775_v36  ;;  %v3819_v47 = vand.u32 2147483647, %v5778_v31  ;;  %v5782_v28 = vsub.f32 %v5780_v35, %v5781_v39  ;;  %v5785_v57 = vsub.f32 %v5783_v23, %v5784_v56  ;;  %v5791_v31 = vld [vmem:[#allocation259_spill] sm:$0xff]  ;;  %v5794_v4 = vld [vmem:[#allocation260_spill] sm:$0xff] }
 0x189   :  { %v3832_v12 = vand.u32 2147483647, %v5788_v16  ;;  %v5790_v36 = vsub.f32 %v2949_v37, %v5789_v53  ;;  %v5796_v56 = vsub.f32 %v5794_v4, %v5795_v13  ;;  %v5799_v17 = vld [vmem:[#allocation261_spill] sm:$0xff]  ;;  %v5800_v16 = vld [vmem:[#allocation274_spill] sm:$0xff]  ;;  %v1158_v13 = vadd.f32 %v1157_v7, %v1033_v43  ;;  %v5814_v32 = vld [vmem:[#allocation279_spill] sm:$0xff] }
 0x18a   :  { %5779 = vst [vmem:[#allocation164_spill] sm:$0xff] %v3819_v47  ;;  %v1040_v54 = vand.u32 2147483647, %v5782_v28  ;;  %v3827_v14 = vand.u32 2147483647, %v5785_v57  ;;  %v5792_v47 = vld [vmem:[#allocation272_spill] sm:$0xff]  ;;  %v5798_v28 = vsub.f32 %v2997_v60, %v3049_v5  ;;  %v5801_v37 = vsub.f32 %v5799_v17, %v5800_v16 }
 0x18b   :  { %v1041_v11 = vand.u32 2147483647, %v5790_v36  ;;  %v5793_v35 = vsub.f32 %v5791_v31, %v5792_v47  ;;  %v3845_v23 = vand.u32 2147483647, %v5796_v56  ;;  %v5803_v55 = vld [vmem:[#allocation65_spill] sm:$0xff]  ;;  %v5807_v31 = vld [vmem:[#allocation346_spill] sm:$0xff] }
 0x18c   :  { %v1048_v57 = vand.u32 2147483647, %v5798_v28  ;;  %v3853_v53 = vand.u32 2147483647, %v5801_v37  ;;  %v5804_v41 = vld [vmem:[#allocation277_spill] sm:$0xff]  ;;  %v5813_v22 = vld [vmem:[#allocation266_spill] sm:$0xff] }
 0x18d   :  { %v3840_v39 = vand.u32 2147483647, %v5793_v35  ;;  %5797 = vst [vmem:[#allocation187_spill] sm:$0xff] %v3845_v23  ;;  %v5805_v47 = vsub.f32 %v5803_v55, %v5804_v41  ;;  %v5808_v35 = vsub.f32 %v2999_v6, %v5807_v31  ;;  %v5809_v56 = vld [vmem:[#allocation265_spill] sm:$0xff]  ;;  %v5810_v23 = vld [vmem:[#allocation278_spill] sm:$0xff]  ;;  %v5815_v28 = vsub.f32 %v5813_v22, %v5814_v32  ;;  %v5817_v16 = vld [vmem:[#allocation88_spill] sm:$0xff] }
 0x18e   :  { %5802 = vst [vmem:[#allocation152_spill] sm:$0xff] %v3853_v53  ;;  %v5811_v60 = vsub.f32 %v5809_v56, %v5810_v23  ;;  %v5818_v37 = vld [vmem:[#allocation357_spill] sm:$0xff]  ;;  %v5821_v53 = vld [vmem:[#allocation284_spill] sm:$0xff]  ;;  %v5824_v43 = vld [vmem:[#allocation71_spill] sm:$0xff] }
 0x18f   :  { %v3858_v36 = vand.u32 2147483647, %v5805_v47  ;;  %v1049_v4 = vand.u32 2147483647, %v5808_v35  ;;  %v3871_v17 = vand.u32 2147483647, %v5815_v28  ;;  %v5819_v55 = vsub.f32 %v5817_v16, %v5818_v37 }
 0x190   :  { %v3866_v5 = vand.u32 2147483647, %v5811_v60  ;;  %v1128_v47 = vadd.f32 %v1127_v49, %v1040_v54  ;;  %v5825_v7 = vld [vmem:[#allocation288_spill] sm:$0xff]  ;;  %v5828_v56 = vld [vmem:[#allocation103_spill] sm:$0xff]  ;;  %v5829_v60 = vld [vmem:[#allocation358_spill] sm:$0xff]  ;;  %v1159_v28 = vadd.f32 %v1158_v13, %v1041_v11 }
 0x191   :  { %5806 = vst [vmem:[#allocation165_spill] sm:$0xff] %v3858_v36  ;;  %5816 = vst [vmem:[#allocation166_spill] sm:$0xff] %v3871_v17  ;;  %v1056_v41 = vand.u32 2147483647, %v5819_v55  ;;  %v5820_v36 = vld [vmem:[#allocation271_spill] sm:$0xff]  ;;  %v5826_v23 = vsub.f32 %v5824_v43, %v5825_v7  ;;  %v5830_v22 = vsub.f32 %v5828_v56, %v5829_v60  ;;  %v5835_v54 = vld [vmem:[#allocation276_spill] sm:$0xff] }
 0x192   :  { %5812 = vst [vmem:[#allocation153_spill] sm:$0xff] %v3866_v5  ;;  %v5822_v6 = vsub.f32 %v5820_v36, %v5821_v53  ;;  %v5831_v17 = vld [vmem:[#allocation275_spill] sm:$0xff]  ;;  %v5832_v5 = vld [vmem:[#allocation289_spill] sm:$0xff]  ;;  %v5836_v49 = vld [vmem:[#allocation290_spill] sm:$0xff] }
 0x193   :  { %v3884_v35 = vand.u32 2147483647, %v5826_v23  ;;  %v1057_v32 = vand.u32 2147483647, %v5830_v22  ;;  %v5833_v16 = vsub.f32 %v5831_v17, %v5832_v5  ;;  %v5837_v53 = vsub.f32 %v5835_v54, %v5836_v49  ;;  %v5839_v55 = vld [vmem:[#allocation360_spill] sm:$0xff]  ;;  %v5846_v13 = vld [vmem:[#allocation295_spill] sm:$0xff] }
 0x194   :  { %v3879_v31 = vand.u32 2147483647, %v5822_v6  ;;  %v5840_v6 = vld [vmem:[#allocation369_spill] sm:$0xff]  ;;  %v1129_v23 = vadd.f32 %v1128_v47, %v1048_v57  ;;  %v5845_v11 = vld [vmem:[#allocation280_spill] sm:$0xff]  ;;  %v5854_v57 = vld [vmem:[#allocation287_spill] sm:$0xff] }
 0x195   :  { %5827 = vst [vmem:[#allocation188_spill] sm:$0xff] %v3884_v35  ;;  %v3892_v37 = vand.u32 2147483647, %v5833_v16  ;;  %v3897_v36 = vand.u32 2147483647, %v5837_v53  ;;  %v5841_v43 = vsub.f32 %v5839_v55, %v5840_v6  ;;  %v5842_v35 = vld [vmem:[#allocation72_spill] sm:$0xff]  ;;  %v5847_v5 = vsub.f32 %v5845_v11, %v5846_v13 }
 0x196   :  { %5823 = vst [vmem:[#allocation173_spill] sm:$0xff] %v3879_v31  ;;  %v5843_v31 = vld [vmem:[#allocation294_spill] sm:$0xff]  ;;  %v5848_v22 = vld [vmem:[#allocation361_spill] sm:$0xff]  ;;  %v1160_v53 = vadd.f32 %v1159_v28, %v1049_v4  ;;  %v1130_v11 = vadd.f32 %v1129_v23, %v1056_v41  ;;  %v5859_v13 = vld [vmem:[#allocation291_spill] sm:$0xff] }
 0x197   :  { %5834 = vst [vmem:[#allocation30_spill] sm:$0xff] %v3892_v37  ;;  %5838 = vst [vmem:[#allocation170_spill] sm:$0xff] %v3897_v36  ;;  %v1064_v7 = vand.u32 2147483647, %v5841_v43  ;;  %v5844_v56 = vsub.f32 %v5842_v35, %v5843_v31  ;;  %v3910_v17 = vand.u32 2147483647, %v5847_v5  ;;  %v5858_v43 = vsub.f32 %v3194_v27, %v3235_v48 }
 0x198   :  { %v5849_v16 = vld [vmem:[#allocation370_spill] sm:$0xff]  ;;  %v5852_v37 = vld [vmem:[#allocation300_spill] sm:$0xff]  ;;  %v5855_v47 = vld [vmem:[#allocation301_spill] sm:$0xff] }
 0x199   :  { %v3905_v60 = vand.u32 2147483647, %v5844_v56  ;;  %v5850_v54 = vsub.f32 %v5848_v22, %v5849_v16  ;;  %v5851_v36 = vld [vmem:[#allocation286_spill] sm:$0xff]  ;;  %v5856_v31 = vsub.f32 %v5854_v57, %v5855_v47  ;;  %v1072_v56 = vand.u32 2147483647, %v5858_v43  ;;  %v5860_v5 = vld [vmem:[#allocation304_spill] sm:$0xff] }
 0x19a   :  { %v5853_v55 = vsub.f32 %v5851_v36, %v5852_v37  ;;  %v5861_v22 = vsub.f32 %v5859_v13, %v5860_v5  ;;  %v5862_v4 = vld [vmem:[#allocation292_spill] sm:$0xff]  ;;  %v5863_v28 = vld [vmem:[#allocation305_spill] sm:$0xff]  ;;  %v1161_v47 = vadd.f32 %v1160_v53, %v1057_v32  ;;  %v5871_v41 = vld [vmem:[#allocation78_spill] sm:$0xff]  ;;  %v5875_v5 = vsub.f32 %v3267_v45, %v3306_v15 }
 0x19b   :  { %v1065_v49 = vand.u32 2147483647, %v5850_v54  ;;  %v3923_v35 = vand.u32 2147483647, %v5856_v31  ;;  %v5864_v37 = vsub.f32 %v5862_v4, %v5863_v28  ;;  %v5865_v54 = vld [vmem:[#allocation105_spill] sm:$0xff]  ;;  %v1131_v4 = vadd.f32 %v1130_v11, %v1064_v7  ;;  %v5876_v28 = vld [vmem:[#allocation83_spill] sm:$0xff] }
 0x19c   :  { %v3918_v6 = vand.u32 2147483647, %v5853_v55  ;;  %v3931_v16 = vand.u32 2147483647, %v5861_v22  ;;  %v5866_v55 = vsub.f32 %v3211_v25, %v5865_v54  ;;  %v5867_v31 = vld [vmem:[#allocation293_spill] sm:$0xff]  ;;  %v5880_v32 = vld [vmem:[#allocation302_spill] sm:$0xff]  ;;  %v5889_v7 = vsub.f32 %v3338_v10, %v3373_v0 }
 0x19d   :  { %5857 = vst [vmem:[#allocation157_spill] sm:$0xff] %v3923_v35  ;;  %v3936_v36 = vand.u32 2147483647, %v5864_v37  ;;  %v5868_v35 = vld [vmem:[#allocation306_spill] sm:$0xff]  ;;  %v5872_v23 = vld [vmem:[#allocation309_spill] sm:$0xff] }
 0x19e   :  { %v1073_v57 = vand.u32 2147483647, %v5866_v55  ;;  %v5869_v48 = vsub.f32 %v5867_v31, %v5868_v35  ;;  %v5873_v43 = vsub.f32 %v5871_v41, %v5872_v23  ;;  %v1080_v22 = vand.u32 2147483647, %v5875_v5  ;;  %v5877_v37 = vld [vmem:[#allocation313_spill] sm:$0xff]  ;;  %v5881_v53 = vld [vmem:[#allocation314_spill] sm:$0xff] }
 0x19f   :  { %v5878_v25 = vsub.f32 %v5876_v28, %v5877_v37  ;;  %v5882_v35 = vsub.f32 %v5880_v32, %v5881_v53  ;;  %v5884_v31 = vsub.f32 %v3269_v59, %v3308_v8  ;;  %v1162_v41 = vadd.f32 %v1161_v47, %v1065_v49  ;;  %v5885_v23 = vld [vmem:[#allocation303_spill] sm:$0xff]  ;;  %v5891_v32 = vld [vmem:[#allocation26_spill] sm:$0xff]  ;;  %v5894_v49 = vld [vmem:[#allocation73_spill] sm:$0xff] }
 0x1a0   :  { %v3944_v27 = vand.u32 2147483647, %v5869_v48  ;;  %v3949_v13 = vand.u32 2147483647, %v5873_v43  ;;  %v5886_v43 = vld [vmem:[#allocation315_spill] sm:$0xff]  ;;  %v5890_v5 = vsub.f32 %v3340_v34, %v3375_v3  ;;  %v1132_v37 = vadd.f32 %v1131_v4, %v1072_v56  ;;  %v5892_v53 = vld [vmem:[#allocation66_spill] sm:$0xff] }
 0x1a1   :  { %v3957_v54 = vand.u32 2147483647, %v5878_v25  ;;  %v3962_v55 = vand.u32 2147483647, %v5882_v35  ;;  %v1081_v48 = vand.u32 2147483647, %v5884_v31  ;;  %v5887_v45 = vsub.f32 %v5885_v23, %v5886_v43 }
 0x1a2   :  { %5870 = vst [vmem:[#allocation171_spill] sm:$0xff] %v3944_v27  ;;  %5874 = vst [vmem:[#allocation162_spill] sm:$0xff] %v3949_v13  ;;  %v1088_v11 = vand.u32 2147483647, %v5889_v7  ;;  %v1089_v28 = vand.u32 2147483647, %v5890_v5  ;;  %v1163_v25 = vadd.f32 %v1162_v41, %v1073_v57  ;;  %v1166_v59 = vadd.f32 %v5892_v53, %v5891_v32 }
 0x1a3   :  { %5879 = vst [vmem:[#allocation175_spill] sm:$0xff] %v3957_v54  ;;  %5883 = vst [vmem:[#allocation163_spill] sm:$0xff] %v3962_v55  ;;  %v3970_v15 = vand.u32 2147483647, %v5887_v45  ;;  %v5893_v8 = vld [vmem:[#allocation31_spill] sm:$0xff]  ;;  %v5895_v35 = vld [vmem:[#allocation36_spill] sm:$0xff]  ;;  %v1133_v43 = vadd.f32 %v1132_v37, %v1080_v22 }
 0x1a4   :  { %v1197_v47 = vadd.f32 %v5894_v49, %v5893_v8  ;;  %v5896_v31 = vld [vmem:[#allocation79_spill] sm:$0xff]  ;;  %v5897_v45 = vld [vmem:[#allocation41_spill] sm:$0xff]  ;;  %v5899_v0 = vld [vmem:[#allocation46_spill] sm:$0xff]  ;;  %v1164_v57 = vadd.f32 %v1163_v25, %v1081_v48 }
 0x1a5   :  { %5888 = vst [vmem:[#allocation176_spill] sm:$0xff] %v3970_v15  ;;  %v1228_v23 = vadd.f32 %v5896_v31, %v5895_v35  ;;  %v5898_v15 = vld [vmem:[#allocation86_spill] sm:$0xff]  ;;  %v5900_v7 = vld [vmem:[#allocation93_spill] sm:$0xff]  ;;  %v5901_v34 = vld [vmem:[#allocation51_spill] sm:$0xff]  ;;  %v1134_v49 = vadd.f32 %v1133_v43, %v1088_v11 }
 0x1a6   :  { %v1259_v10 = vadd.f32 %v5898_v15, %v5897_v45  ;;  %v1290_v55 = vadd.f32 %v5900_v7, %v5899_v0  ;;  %v5902_v3 = vld [vmem:[#allocation98_spill] sm:$0xff]  ;;  %v5903_v4 = vld [vmem:[#allocation19_spill] sm:$0xff]  ;;  %v5904_v5 = vld [vmem:[#allocation12_spill] sm:$0xff]  ;;  %v1165_v45 = vadd.f32 %v1164_v57, %v1089_v28 }
 0x1a7   :  { %v1321_v56 = vadd.f32 %v5902_v3, %v5901_v34  ;;  %v1167_v41 = vadd.f32 %v1166_v59, %v5903_v4  ;;  %v1198_v32 = vadd.f32 %v1197_v47, %v5904_v5  ;;  %v5905_v53 = vld [vmem:[#allocation13_spill] sm:$0xff]  ;;  %v5907_v22 = vld [vmem:[#allocation14_spill] sm:$0xff]  ;;  %v5908_v31 = vld [vmem:[#allocation15_spill] sm:$0xff]  ;;  %1360 = vst [vmem:[#allocation7] sm:$0xff] %v1134_v49 }
 0x1a8   :  { %v1229_v8 = vadd.f32 %v1228_v23, %v5905_v53  ;;  %v5906_v54 = vld [vmem:[#allocation133_spill] sm:$0xff]  ;;  %v1291_v37 = vadd.f32 %v1290_v55, %v5907_v22  ;;  %v5909_v13 = vld [vmem:[#allocation18_spill] sm:$0xff]  ;;  %v5912_v25 = vld [vmem:[#allocation23_spill] sm:$0xff]  ;;  %1361 = vst [vmem:[#allocation7 + $0x8] sm:$0xff] %v1165_v45 }
 0x1a9   :  { %v1260_v35 = vadd.f32 %v1259_v10, %v5906_v54  ;;  %v1322_v15 = vadd.f32 %v1321_v56, %v5908_v31  ;;  %v1168_v0 = vadd.f32 %v1167_v41, %v5909_v13  ;;  %v5910_v7 = vld [vmem:[#allocation33_spill] sm:$0xff]  ;;  %v5911_v34 = vld [vmem:[#allocation34_spill] sm:$0xff]  ;;  %v5914_v4 = vld [vmem:[#allocation39_spill] sm:$0xff] }
 0x1aa   :  { %v1199_v27 = vadd.f32 %v1198_v32, %v5910_v7  ;;  %v1230_v48 = vadd.f32 %v1229_v8, %v5911_v34  ;;  %v5913_v3 = vld [vmem:[#allocation38_spill] sm:$0xff]  ;;  %v5915_v11 = vld [vmem:[#allocation44_spill] sm:$0xff]  ;;  %v5921_v41 = vld [vmem:[#allocation49_spill] sm:$0xff] }
 0x1ab   :  { %v1261_v59 = vadd.f32 %v1260_v35, %v5912_v25  ;;  %v1292_v47 = vadd.f32 %v1291_v37, %v5913_v3  ;;  %v1323_v23 = vadd.f32 %v1322_v15, %v5914_v4  ;;  %v1169_v43 = vadd.f32 %v1168_v0, %v5915_v11  ;;  %v5916_v54 = vld [vmem:[#allocation32_spill] sm:$0xff]  ;;  %v5919_v28 = vld [vmem:[#allocation318_spill] sm:$0xff]  ;;  %v5922_v53 = vld [vmem:[#allocation37_spill] sm:$0xff] }
 0x1ac   :  { %v1200_v10 = vadd.f32 %v1199_v27, %v5916_v54  ;;  %v5917_v55 = vld [vmem:[#allocation48_spill] sm:$0xff]  ;;  %v5923_v35 = vld [vmem:[#allocation53_spill] sm:$0xff]  ;;  %v5924_v37 = vld [vmem:[#allocation307_spill] sm:$0xff] }
 0x1ad   :  { %v1231_v5 = vadd.f32 %v1230_v48, %v5917_v55  ;;  %v5918_v56 = vld [vmem:[#allocation84_spill] sm:$0xff]  ;;  %v1262_v32 = vadd.f32 %v1261_v59, %v5921_v41  ;;  %v1293_v8 = vadd.f32 %v1292_v47, %v5922_v53  ;;  %v1324_v22 = vadd.f32 %v1323_v23, %v5923_v35  ;;  %v5925_v31 = vld [vmem:[#allocation319_spill] sm:$0xff]  ;;  %v5927_v27 = vld [vmem:[#allocation58_spill] sm:$0xff] }
 0x1ae   :  { %v5920_v57 = vsub.f32 %v5918_v56, %v5919_v28  ;;  %v5926_v15 = vsub.f32 %v5924_v37, %v5925_v31  ;;  %v1170_v7 = vadd.f32 %v1169_v43, %v5927_v27  ;;  %v5928_v34 = vld [vmem:[#allocation59_spill] sm:$0xff]  ;;  %v5930_v4 = vld [vmem:[#allocation308_spill] sm:$0xff]  ;;  %v5937_v41 = vld [vmem:[#allocation325_spill] sm:$0xff] }
 0x1af   :  { %v1201_v48 = vadd.f32 %v1200_v10, %v5928_v34  ;;  %v5929_v25 = vld [vmem:[#allocation47_spill] sm:$0xff]  ;;  %v5931_v11 = vld [vmem:[#allocation320_spill] sm:$0xff]  ;;  %v5939_v10 = vld [vmem:[#allocation57_spill] sm:$0xff] }
 0x1b0   :  { %v4008_v13 = vand.u32 2147483647, %v5920_v57  ;;  %v4016_v0 = vand.u32 2147483647, %v5926_v15  ;;  %v1232_v3 = vadd.f32 %v1231_v5, %v5929_v25  ;;  %v5932_v59 = vsub.f32 %v5930_v4, %v5931_v11  ;;  %v5933_v47 = vld [vmem:[#allocation63_spill] sm:$0xff]  ;;  %v5934_v49 = vld [vmem:[#allocation64_spill] sm:$0xff] }
 0x1b1   :  { %v1263_v23 = vadd.f32 %v1262_v32, %v5933_v47  ;;  %v1294_v55 = vadd.f32 %v1293_v8, %v5934_v49  ;;  %v5935_v56 = vld [vmem:[#allocation52_spill] sm:$0xff]  ;;  %v1171_v35 = vadd.f32 %v1170_v7, %v5939_v10  ;;  %v5941_v37 = vld [vmem:[#allocation77_spill] sm:$0xff]  ;;  %v5942_v15 = vld [vmem:[#allocation90_spill] sm:$0xff] }
 0x1b2   :  { %v4024_v54 = vand.u32 2147483647, %v5932_v59  ;;  %v1325_v28 = vadd.f32 %v1324_v22, %v5935_v56  ;;  %v5936_v57 = vld [vmem:[#allocation312_spill] sm:$0xff]  ;;  %v1233_v31 = vadd.f32 %v1232_v3, %v5941_v37  ;;  %v5943_v27 = vld [vmem:[#allocation327_spill] sm:$0xff]  ;;  %v5945_v32 = vld [vmem:[#allocation62_spill] sm:$0xff] }
 0x1b3   :  { %v5938_v53 = vsub.f32 %v5936_v57, %v5937_v41  ;;  %v5940_v5 = vld [vmem:[#allocation76_spill] sm:$0xff]  ;;  %v5944_v34 = vsub.f32 %v5942_v15, %v5943_v27  ;;  %v1264_v8 = vadd.f32 %v1263_v23, %v5945_v32  ;;  %v5946_v4 = vld [vmem:[#allocation67_spill] sm:$0xff]  ;;  %v5951_v7 = vld [vmem:[#allocation74_spill] sm:$0xff] }
 0x1b4   :  { %v1202_v45 = vadd.f32 %v1201_v48, %v5940_v5  ;;  %v1295_v22 = vadd.f32 %v1294_v55, %v5946_v4  ;;  %v5947_v11 = vld [vmem:[#allocation68_spill] sm:$0xff]  ;;  %v1172_v48 = vadd.f32 %v1171_v35, %v5951_v7  ;;  %v5952_v41 = vld [vmem:[#allocation75_spill] sm:$0xff]  ;;  %v5954_v5 = vld [vmem:[#allocation317_spill] sm:$0xff] }
 0x1b5   :  { %v4032_v43 = vand.u32 2147483647, %v5938_v53  ;;  %v4040_v25 = vand.u32 2147483647, %v5944_v34  ;;  %v1326_v59 = vadd.f32 %v1325_v28, %v5947_v11  ;;  %v5948_v47 = vld [vmem:[#allocation316_spill] sm:$0xff]  ;;  %v5955_v37 = vld [vmem:[#allocation329_spill] sm:$0xff] }
 0x1b6   :  { %v5949_v49 = vld [vmem:[#allocation328_spill] sm:$0xff]  ;;  %v1203_v3 = vadd.f32 %v1202_v45, %v5952_v41  ;;  %v5956_v15 = vsub.f32 %v5954_v5, %v5955_v37  ;;  %v5958_v23 = vld [vmem:[#allocation81_spill] sm:$0xff]  ;;  %v5959_v34 = vld [vmem:[#allocation82_spill] sm:$0xff] }
 0x1b7   :  { %v5950_v56 = vsub.f32 %v5948_v47, %v5949_v49  ;;  %v5953_v53 = vld [vmem:[#allocation80_spill] sm:$0xff]  ;;  %v1265_v55 = vadd.f32 %v1264_v8, %v5958_v23  ;;  %v1296_v28 = vadd.f32 %v1295_v22, %v5959_v34  ;;  %v5960_v32 = vld [vmem:[#allocation87_spill] sm:$0xff]  ;;  %v5965_v35 = vld [vmem:[#allocation109_spill] sm:$0xff] }
 0x1b8   :  { %v1234_v10 = vadd.f32 %v1233_v31, %v5953_v53  ;;  %v4056_v27 = vand.u32 2147483647, %v5956_v15  ;;  %v1327_v4 = vadd.f32 %v1326_v59, %v5960_v32  ;;  %v5961_v11 = vld [vmem:[#allocation91_spill] sm:$0xff]  ;;  %v5962_v47 = vld [vmem:[#allocation332_spill] sm:$0xff]  ;;  %v1173_v45 = vadd.f32 %v1172_v48, %v5965_v35  ;;  %v5966_v7 = vld [vmem:[#allocation110_spill] sm:$0xff] }
 0x1b9   :  { %v4048_v57 = vand.u32 2147483647, %v5950_v56  ;;  %v5963_v49 = vsub.f32 %v5961_v11, %v5962_v47  ;;  %v1204_v31 = vadd.f32 %v1203_v3, %v5966_v7  ;;  %v5967_v41 = vld [vmem:[#allocation94_spill] sm:$0xff]  ;;  %v5968_v5 = vld [vmem:[#allocation321_spill] sm:$0xff]  ;;  %v5971_v8 = vld [vmem:[#allocation99_spill] sm:$0xff] }
 0x1ba   :  { %5957 = vst [vmem:[#allocation27_spill] sm:$0xff] %v4056_v27  ;;  %v1235_v53 = vadd.f32 %v1234_v10, %v5967_v41  ;;  %v5969_v37 = vld [vmem:[#allocation333_spill] sm:$0xff]  ;;  %v1266_v22 = vadd.f32 %v1265_v55, %v5971_v8  ;;  %v5972_v23 = vld [vmem:[#allocation100_spill] sm:$0xff]  ;;  %v5979_v41 = vld [vmem:[#allocation326_spill] sm:$0xff] }
 0x1bb   :  { %v4064_v56 = vand.u32 2147483647, %v5963_v49  ;;  %v5970_v15 = vsub.f32 %v5968_v5, %v5969_v37  ;;  %v1297_v59 = vadd.f32 %v1296_v28, %v5972_v23  ;;  %v5973_v34 = vld [vmem:[#allocation101_spill] sm:$0xff]  ;;  %v5974_v11 = vld [vmem:[#allocation92_spill] sm:$0xff]  ;;  %v5982_v8 = vld [vmem:[#allocation95_spill] sm:$0xff] }
 0x1bc   :  { %v1328_v32 = vadd.f32 %v1327_v4, %v5973_v34  ;;  %v5975_v47 = vld [vmem:[#allocation336_spill] sm:$0xff]  ;;  %v1236_v7 = vadd.f32 %v1235_v53, %v3335_v18  ;;  %v5980_v5 = vld [vmem:[#allocation337_spill] sm:$0xff]  ;;  %v1267_v55 = vadd.f32 %v1266_v22, %v3355_v9  ;;  %v5985_v53 = vld [vmem:[#allocation330_spill] sm:$0xff] }
 0x1bd   :  { %5964 = vst [vmem:[#allocation200_spill] sm:$0xff] %v4064_v56  ;;  %v4072_v27 = vand.u32 2147483647, %v5970_v15  ;;  %v5976_v49 = vsub.f32 %v5974_v11, %v5975_v47  ;;  %v5977_v48 = vld [vmem:[#allocation108_spill] sm:$0xff]  ;;  %v5981_v37 = vsub.f32 %v5979_v41, %v5980_v5  ;;  %v1298_v28 = vadd.f32 %v1297_v59, %v3386_v38  ;;  %v5986_v47 = vld [vmem:[#allocation341_spill] sm:$0xff]  ;;  %v5988_v22 = vld [vmem:[#allocation331_spill] sm:$0xff] }
 0x1be   :  { %v1174_v3 = vadd.f32 %v1173_v45, %v5977_v48  ;;  %v5978_v35 = vld [vmem:[#allocation16_spill] sm:$0xff]  ;;  %v1329_v4 = vadd.f32 %v1328_v32, %v3402_v52  ;;  %v1268_v38 = vadd.f32 %v1267_v55, %v3467_v30  ;;  %v5989_v59 = vld [vmem:[#allocation342_spill] sm:$0xff]  ;;  %v5994_v5 = vld [vmem:[#allocation97_spill] sm:$0xff] }
 0x1bf   :  { %v4080_v56 = vand.u32 2147483647, %v5976_v49  ;;  %v1205_v10 = vadd.f32 %v1204_v31, %v5978_v35  ;;  %v4088_v15 = vand.u32 2147483647, %v5981_v37  ;;  %v5983_v23 = vld [vmem:[#allocation340_spill] sm:$0xff]  ;;  %v1237_v31 = vadd.f32 %v1236_v7, %v3462_v40 }
 0x1c0   :  { %v5984_v34 = vsub.f32 %v5982_v8, %v5983_v23  ;;  %v1175_v45 = vadd.f32 %v1174_v3, %v3445_v29  ;;  %v5987_v49 = vsub.f32 %v5985_v53, %v5986_v47  ;;  %v1299_v9 = vadd.f32 %v1298_v28, %v3476_v62  ;;  %v5991_v3 = vld [vmem:[#allocation96_spill] sm:$0xff]  ;;  %v5998_v8 = vld [vmem:[#allocation349_spill] sm:$0xff]  ;;  %v6003_v53 = vld [vmem:[#allocation350_spill] sm:$0xff] }
 0x1c1   :  { %v1206_v18 = vadd.f32 %v1205_v10, %v3453_v42  ;;  %v1330_v52 = vadd.f32 %v1329_v4, %v3481_v51  ;;  %v5990_v32 = vsub.f32 %v5988_v22, %v5989_v59  ;;  %v1238_v40 = vadd.f32 %v1237_v31, %v3502_v24  ;;  %v5992_v10 = vld [vmem:[#allocation345_spill] sm:$0xff]  ;;  %v5995_v37 = vld [vmem:[#allocation348_spill] sm:$0xff]  ;;  %v5997_v4 = vld [vmem:[#allocation338_spill] sm:$0xff] }
 0x1c2   :  { %v4096_v11 = vand.u32 2147483647, %v5984_v34  ;;  %v4104_v48 = vand.u32 2147483647, %v5987_v49  ;;  %v1176_v29 = vadd.f32 %v1175_v45, %v3489_v50  ;;  %v5993_v7 = vsub.f32 %v5991_v3, %v5992_v10  ;;  %v6001_v45 = vld [vmem:[#allocation136_spill] sm:$0xff]  ;;  %v6002_v31 = vld [vmem:[#allocation339_spill] sm:$0xff] }
 0x1c3   :  { %v4112_v35 = vand.u32 2147483647, %v5990_v32  ;;  %v1207_v42 = vadd.f32 %v1206_v18, %v3494_v1  ;;  %v1269_v30 = vadd.f32 %v1268_v38, %v3507_v19  ;;  %v1300_v62 = vadd.f32 %v1299_v9, %v3515_v44  ;;  %v6000_v44 = vld [vmem:[#allocation20_spill] sm:$0xff]  ;;  %v6006_v38 = vld [vmem:[#allocation137_spill] sm:$0xff]  ;;  %v6008_v22 = vld [vmem:[#allocation102_spill] sm:$0xff] }
 0x1c4   :  { %v4120_v41 = vand.u32 2147483647, %v5993_v7  ;;  %v1331_v51 = vadd.f32 %v1330_v52, %v3520_v46  ;;  %v5996_v55 = vsub.f32 %v5994_v5, %v5995_v37  ;;  %v1177_v50 = vadd.f32 %v1176_v29, %v3528_v33  ;;  %v6005_v33 = vld [vmem:[#allocation123_spill] sm:$0xff]  ;;  %v6007_v9 = vld [vmem:[#allocation124_spill] sm:$0xff]  ;;  %v6012_v3 = vld [vmem:[#allocation21_spill] sm:$0xff] }
 0x1c5   :  { %v1208_v1 = vadd.f32 %v1207_v42, %v3533_v20  ;;  %v1239_v24 = vadd.f32 %v1238_v40, %v3541_v58  ;;  %v5999_v23 = vsub.f32 %v5997_v4, %v5998_v8  ;;  %v1270_v19 = vadd.f32 %v1269_v30, %v3546_v2  ;;  %v6009_v59 = vld [vmem:[#allocation351_spill] sm:$0xff]  ;;  %v6011_v2 = vld [vmem:[#allocation138_spill] sm:$0xff]  ;;  %v6014_v30 = vld [vmem:[#allocation352_spill] sm:$0xff] }
 0x1c6   :  { %v4128_v28 = vand.u32 2147483647, %v5996_v55  ;;  %v1301_v46 = vadd.f32 %v1300_v62, %v6000_v44  ;;  %v1332_v18 = vadd.f32 %v1331_v51, %v6001_v45  ;;  %v6004_v47 = vsub.f32 %v6002_v31, %v6003_v53  ;;  %v6013_v7 = vld [vmem:[#allocation343_spill] sm:$0xff]  ;;  %v6016_v5 = vld [vmem:[#allocation141_spill] sm:$0xff]  ;;  %v6017_v55 = vld [vmem:[#allocation128_spill] sm:$0xff] }
 0x1c7   :  { %v4136_v34 = vand.u32 2147483647, %v5999_v23  ;;  %v1178_v20 = vadd.f32 %v1177_v50, %v6005_v33  ;;  %v1209_v58 = vadd.f32 %v1208_v1, %v6006_v38  ;;  %v1240_v52 = vadd.f32 %v1239_v24, %v6007_v9  ;;  %v6018_v24 = vld [vmem:[#allocation344_spill] sm:$0xff]  ;;  %v6019_v4 = vld [vmem:[#allocation353_spill] sm:$0xff]  ;;  %v6024_v31 = vld [vmem:[#allocation359_spill] sm:$0xff] }
 0x1c8   :  { %v4144_v49 = vand.u32 2147483647, %v6004_v47  ;;  %v6010_v32 = vsub.f32 %v6008_v22, %v6009_v59  ;;  %v1271_v42 = vadd.f32 %v1270_v19, %v6011_v2  ;;  %v1302_v40 = vadd.f32 %v1301_v46, %v3593_v26  ;;  %v6021_v19 = vld [vmem:[#allocation142_spill] sm:$0xff]  ;;  %v6022_v46 = vld [vmem:[#allocation135_spill] sm:$0xff]  ;;  %v6027_v38 = vld [vmem:[#allocation129_spill] sm:$0xff] }
 0x1c9   :  { %v1333_v10 = vadd.f32 %v1332_v18, %v6012_v3  ;;  %v6015_v62 = vsub.f32 %v6013_v7, %v6014_v30  ;;  %v1179_v37 = vadd.f32 %v1178_v20, %v6016_v5  ;;  %v1210_v50 = vadd.f32 %v1209_v58, %v6017_v55  ;;  %v6023_v18 = vld [vmem:[#allocation347_spill] sm:$0xff]  ;;  %v6030_v22 = vld [vmem:[#allocation362_spill] sm:$0xff]  ;;  %v6034_v3 = vld [vmem:[#allocation24_spill] sm:$0xff] }
 0x1ca   :  { %v4152_v29 = vand.u32 2147483647, %v6010_v32  ;;  %v1241_v1 = vadd.f32 %v1240_v52, %v3619_v61  ;;  %v6020_v8 = vsub.f32 %v6018_v24, %v6019_v4  ;;  %v1272_v26 = vadd.f32 %v1271_v42, %v3624_v21  ;;  %v6026_v33 = vld [vmem:[#allocation147_spill] sm:$0xff]  ;;  %v6029_v52 = vld [vmem:[#allocation89_spill] sm:$0xff]  ;;  %v6032_v21 = vld [vmem:[#allocation134_spill] sm:$0xff] }
 0x1cb   :  { %v4160_v51 = vand.u32 2147483647, %v6015_v62  ;;  %v1303_v44 = vadd.f32 %v1302_v40, %v6021_v19  ;;  %v1334_v45 = vadd.f32 %v1333_v10, %v6022_v46  ;;  %v6025_v53 = vsub.f32 %v6023_v18, %v6024_v31  ;;  %v6028_v58 = vld [vmem:[#allocation143_spill] sm:$0xff]  ;;  %v6033_v42 = vld [vmem:[#allocation146_spill] sm:$0xff]  ;;  %v6035_v7 = vld [vmem:[#allocation104_spill] sm:$0xff] }
 0x1cc   :  { %v4168_v23 = vand.u32 2147483647, %v6020_v8  ;;  %v1180_v20 = vadd.f32 %v1179_v37, %v6026_v33  ;;  %v1211_v61 = vadd.f32 %v1210_v50, %v6027_v38  ;;  %v1242_v9 = vadd.f32 %v1241_v1, %v6028_v58  ;;  %v6036_v30 = vld [vmem:[#allocation363_spill] sm:$0xff]  ;;  %v6038_v37 = vld [vmem:[#allocation149_spill] sm:$0xff]  ;;  %v6040_v24 = vld [vmem:[#allocation150_spill] sm:$0xff] }
 0x1cd   :  { %v4176_v47 = vand.u32 2147483647, %v6025_v53  ;;  %v6031_v59 = vsub.f32 %v6029_v52, %v6030_v22  ;;  %v1273_v2 = vadd.f32 %v1272_v26, %v6032_v21  ;;  %v1304_v40 = vadd.f32 %v1303_v44, %v6033_v42  ;;  %v6039_v50 = vld [vmem:[#allocation139_spill] sm:$0xff]  ;;  %v6041_v8 = vld [vmem:[#allocation354_spill] sm:$0xff]  ;;  %v6042_v19 = vld [vmem:[#allocation365_spill] sm:$0xff] }
 0x1ce   :  { %v1335_v10 = vadd.f32 %v1334_v45, %v6034_v3  ;;  %v6037_v62 = vsub.f32 %v6035_v7, %v6036_v30  ;;  %v1181_v55 = vadd.f32 %v1180_v20, %v6038_v37  ;;  %v1212_v1 = vadd.f32 %v1211_v61, %v6039_v50  ;;  %v6044_v26 = vld [vmem:[#allocation28_spill] sm:$0xff]  ;;  %v6045_v31 = vld [vmem:[#allocation159_spill] sm:$0xff]  ;;  %v6048_v58 = vld [vmem:[#allocation366_spill] sm:$0xff] }
 0x1cf   :  { %v4184_v32 = vand.u32 2147483647, %v6031_v59  ;;  %v1243_v4 = vadd.f32 %v1242_v9, %v6040_v24  ;;  %v6043_v46 = vsub.f32 %v6041_v8, %v6042_v19  ;;  %v1274_v44 = vadd.f32 %v1273_v2, %v6044_v26  ;;  %v6046_v53 = vld [vmem:[#allocation140_spill] sm:$0xff]  ;;  %v6047_v38 = vld [vmem:[#allocation355_spill] sm:$0xff]  ;;  %v6051_v59 = vld [vmem:[#allocation25_spill] sm:$0xff] }
 0x1d0   :  { %v4192_v5 = vand.u32 2147483647, %v6037_v62  ;;  %v1305_v45 = vadd.f32 %v1304_v40, %v6045_v31  ;;  %v1336_v33 = vadd.f32 %v1335_v10, %v6046_v53  ;;  %v6049_v52 = vsub.f32 %v6047_v38, %v6048_v58  ;;  %v6050_v20 = vld [vmem:[#allocation151_spill] sm:$0xff]  ;;  %v6052_v21 = vld [vmem:[#allocation154_spill] sm:$0xff]  ;;  %v6053_v3 = vld [vmem:[#allocation356_spill] sm:$0xff] }
 0x1d1   :  { %v4200_v18 = vand.u32 2147483647, %v6043_v46  ;;  %v1182_v61 = vadd.f32 %v1181_v55, %v6050_v20  ;;  %v1213_v9 = vadd.f32 %v1212_v1, %v6051_v59  ;;  %v1244_v42 = vadd.f32 %v1243_v4, %v6052_v21  ;;  %v6054_v7 = vld [vmem:[#allocation367_spill] sm:$0xff]  ;;  %v6056_v2 = vld [vmem:[#allocation158_spill] sm:$0xff]  ;;  %v6057_v37 = vld [vmem:[#allocation172_spill] sm:$0xff] }
 0x1d2   :  { %v4208_v22 = vand.u32 2147483647, %v6049_v52  ;;  %v6055_v30 = vsub.f32 %v6053_v3, %v6054_v7  ;;  %v1275_v40 = vadd.f32 %v1274_v44, %v6056_v2  ;;  %v1306_v10 = vadd.f32 %v1305_v45, %v6057_v37  ;;  %v6058_v50 = vld [vmem:[#allocation144_spill] sm:$0xff]  ;;  %v6059_v8 = vld [vmem:[#allocation111_spill] sm:$0xff]  ;;  %v6063_v31 = vld [vmem:[#allocation145_spill] sm:$0xff] }
 0x1d3   :  { %v1337_v24 = vadd.f32 %v1336_v33, %v6058_v50  ;;  %v6060_v19 = vld [vmem:[#allocation372_spill] sm:$0xff]  ;;  %v6062_v55 = vld [vmem:[#allocation155_spill] sm:$0xff]  ;;  %v1214_v4 = vadd.f32 %v1213_v9, %v6063_v31  ;;  %v6066_v52 = vld [vmem:[#allocation373_spill] sm:$0xff] }
 0x1d4   :  { %v4216_v62 = vand.u32 2147483647, %v6055_v30  ;;  %v6061_v46 = vsub.f32 %v6059_v8, %v6060_v19  ;;  %v1183_v1 = vadd.f32 %v1182_v61, %v6062_v55  ;;  %v6064_v53 = vld [vmem:[#allocation156_spill] sm:$0xff]  ;;  %v6068_v44 = vld [vmem:[#allocation161_spill] sm:$0xff]  ;;  %v6069_v21 = vld [vmem:[#allocation174_spill] sm:$0xff] }
 0x1d5   :  { %v1245_v38 = vadd.f32 %v1244_v42, %v6064_v53  ;;  %v6065_v58 = vld [vmem:[#allocation364_spill] sm:$0xff]  ;;  %v1276_v45 = vadd.f32 %v1275_v40, %v6068_v44  ;;  %v1307_v33 = vadd.f32 %v1306_v10, %v6069_v21  ;;  %v6071_v30 = vld [vmem:[#allocation114_spill] sm:$0xff]  ;;  %v6072_v2 = vld [vmem:[#allocation17_spill] sm:$0xff] }
 0x1d6   :  { %v4224_v26 = vand.u32 2147483647, %v6061_v46  ;;  %v6067_v20 = vsub.f32 %v6065_v58, %v6066_v52  ;;  %v6070_v3 = vld [vmem:[#allocation148_spill] sm:$0xff]  ;;  %v6073_v37 = vsub.f32 %v6071_v30, %v6072_v2  ;;  %v6075_v8 = vld [vmem:[#allocation29_spill] sm:$0xff]  ;;  %v6080_v52 = vld [vmem:[#allocation115_spill] sm:$0xff] }
 0x1d7   :  { %v1338_v7 = vadd.f32 %v1337_v24, %v6070_v3  ;;  %v6074_v61 = vld [vmem:[#allocation160_spill] sm:$0xff]  ;;  %v1215_v42 = vadd.f32 %v1214_v4, %v6075_v8  ;;  %v1246_v19 = vadd.f32 %v1245_v38, %v3814_v63  ;;  %v1308_v24 = vadd.f32 %v1307_v33, %v3827_v14  ;;  %v6083_v4 = vld [vmem:[#allocation187_spill] sm:$0xff]  ;;  %v6089_v33 = vld [vmem:[#allocation153_spill] sm:$0xff] }
 0x1d8   :  { %v4232_v59 = vand.u32 2147483647, %v6067_v20  ;;  %v4240_v50 = vand.u32 2147483647, %v6073_v37  ;;  %v1184_v9 = vadd.f32 %v1183_v1, %v6074_v61  ;;  %v6076_v46 = vld [vmem:[#allocation368_spill] sm:$0xff]  ;;  %v6081_v20 = vld [vmem:[#allocation374_spill] sm:$0xff] }
 0x1d9   :  { %v6077_v55 = vld [vmem:[#allocation56_spill] sm:$0xff]  ;;  %v1339_v58 = vadd.f32 %v1338_v7, %v3832_v12  ;;  %v6082_v44 = vsub.f32 %v6080_v52, %v6081_v20  ;;  %v1216_v63 = vadd.f32 %v1215_v42, %v6083_v4  ;;  %v6085_v30 = vld [vmem:[#allocation371_spill] sm:$0xff]  ;;  %v1309_v12 = vadd.f32 %v1308_v24, %v6089_v33  ;;  %v6090_v7 = vld [vmem:[#allocation166_spill] sm:$0xff] }
 0x1da   :  { %v6078_v31 = vsub.f32 %v6076_v46, %v6077_v55  ;;  %v6079_v40 = vld [vmem:[#allocation164_spill] sm:$0xff]  ;;  %v1185_v1 = vadd.f32 %v1184_v9, %v3840_v39  ;;  %v6086_v2 = vld [vmem:[#allocation375_spill] sm:$0xff]  ;;  %v6094_v39 = vld [vmem:[#allocation173_spill] sm:$0xff] }
 0x1db   :  { %v1277_v10 = vadd.f32 %v1276_v45, %v6079_v40  ;;  %v4256_v21 = vand.u32 2147483647, %v6082_v44  ;;  %v6084_v38 = vld [vmem:[#allocation152_spill] sm:$0xff]  ;;  %v6087_v37 = vsub.f32 %v6085_v30, %v6086_v2  ;;  %v6088_v45 = vld [vmem:[#allocation165_spill] sm:$0xff]  ;;  %v1340_v8 = vadd.f32 %v1339_v58, %v6090_v7  ;;  %v6096_v52 = vld [vmem:[#allocation30_spill] sm:$0xff] }
 0x1dc   :  { %v4248_v53 = vand.u32 2147483647, %v6078_v31  ;;  %v1247_v3 = vadd.f32 %v1246_v19, %v6084_v38  ;;  %v6091_v46 = vld [vmem:[#allocation116_spill] sm:$0xff]  ;;  %v1186_v9 = vadd.f32 %v1185_v1, %v6094_v39  ;;  %v6097_v44 = vld [vmem:[#allocation22_spill] sm:$0xff]  ;;  %v6098_v4 = vld [vmem:[#allocation121_spill] sm:$0xff]  ;;  %v1310_v24 = vadd.f32 %v1309_v12, %v3905_v60 }
 0x1dd   :  { %v4264_v61 = vand.u32 2147483647, %v6087_v37  ;;  %v1278_v14 = vadd.f32 %v1277_v10, %v6088_v45  ;;  %v6092_v55 = vld [vmem:[#allocation376_spill] sm:$0xff]  ;;  %v6099_v38 = vsub.f32 %v6097_v44, %v6098_v4  ;;  %v6100_v10 = vld [vmem:[#allocation170_spill] sm:$0xff]  ;;  %v1341_v58 = vadd.f32 %v1340_v8, %v3910_v17  ;;  %v6101_v37 = vld [vmem:[#allocation61_spill] sm:$0xff] }
 0x1de   :  { %v6093_v31 = vsub.f32 %v6091_v46, %v6092_v55  ;;  %v6095_v42 = vld [vmem:[#allocation188_spill] sm:$0xff]  ;;  %v1248_v20 = vadd.f32 %v1247_v3, %v6096_v52  ;;  %v6102_v45 = vld [vmem:[#allocation11_spill] sm:$0xff]  ;;  %v1187_v1 = vadd.f32 %v1186_v9, %v3918_v6  ;;  %v6104_v46 = vld [vmem:[#allocation157_spill] sm:$0xff] }
 0x1df   :  { %v1217_v19 = vadd.f32 %v1216_v63, %v6095_v42  ;;  %v1075_v30 = vand.u32 2147483647, %v6099_v38  ;;  %v1279_v2 = vadd.f32 %v1278_v14, %v6100_v10  ;;  %v6103_v33 = vsub.f32 %v6101_v37, %v6102_v45  ;;  %v6105_v55 = vld [vmem:[#allocation106_spill] sm:$0xff]  ;;  %v6108_v52 = vld [vmem:[#allocation171_spill] sm:$0xff]  ;;  %v6110_v8 = vld [vmem:[#allocation120_spill] sm:$0xff] }
 0x1e0   :  { %v4272_v40 = vand.u32 2147483647, %v6093_v31  ;;  %v1249_v3 = vadd.f32 %v1248_v20, %v3931_v16  ;;  %v6106_v31 = vld [vmem:[#allocation378_spill] sm:$0xff]  ;;  %v1311_v60 = vadd.f32 %v1310_v24, %v6108_v52  ;;  %v6111_v44 = vld [vmem:[#allocation379_spill] sm:$0xff]  ;;  %v6115_v37 = vld [vmem:[#allocation176_spill] sm:$0xff] }
 0x1e1   :  { %v1076_v7 = vand.u32 2147483647, %v6103_v33  ;;  %v1218_v63 = vadd.f32 %v1217_v19, %v6104_v46  ;;  %v6107_v39 = vsub.f32 %v6105_v55, %v6106_v31  ;;  %v1280_v14 = vadd.f32 %v1279_v2, %v3936_v36  ;;  %v6109_v12 = vld [vmem:[#allocation162_spill] sm:$0xff]  ;;  %v6113_v10 = vld [vmem:[#allocation175_spill] sm:$0xff]  ;;  %v6120_v55 = vld [vmem:[#allocation384_spill] sm:$0xff] }
 0x1e2   :  { %v1342_v17 = vadd.f32 %v1341_v58, %v6109_v12  ;;  %v6112_v4 = vsub.f32 %v6110_v8, %v6111_v44  ;;  %v1188_v6 = vadd.f32 %v1187_v1, %v6113_v10  ;;  %v6114_v9 = vld [vmem:[#allocation163_spill] sm:$0xff]  ;;  %v1250_v16 = vadd.f32 %v1249_v3, %v6115_v37  ;;  %v6117_v45 = vld [vmem:[#allocation382_spill] sm:$0xff]  ;;  %v6122_v52 = vld [vmem:[#allocation377_spill] sm:$0xff] }
 0x1e3   :  { %v1077_v42 = vand.u32 2147483647, %v6107_v39  ;;  %v1219_v19 = vadd.f32 %v1218_v63, %v6114_v9  ;;  %v6116_v20 = vld [vmem:[#allocation107_spill] sm:$0xff]  ;;  %v1281_v36 = vadd.f32 %v1280_v14, %v4008_v13  ;;  %v1312_v2 = vadd.f32 %v1311_v60, %v4016_v0  ;;  %v6119_v58 = vld [vmem:[#allocation122_spill] sm:$0xff]  ;;  %v6123_v12 = vld [vmem:[#allocation385_spill] sm:$0xff] }
 0x1e4   :  { %v1078_v38 = vand.u32 2147483647, %v6112_v4  ;;  %v6118_v33 = vsub.f32 %v6116_v20, %v6117_v45  ;;  %v1343_v24 = vadd.f32 %v1342_v17, %v4024_v54  ;;  %v6121_v31 = vsub.f32 %v6119_v58, %v6120_v55  ;;  %v6125_v4 = vld [vmem:[#allocation27_spill] sm:$0xff]  ;;  %v6126_v14 = vld [vmem:[#allocation200_spill] sm:$0xff]  ;;  %v6128_v17 = vld [vmem:[#allocation126_spill] sm:$0xff] }
 0x1e5   :  { %v1189_v1 = vadd.f32 %v1188_v6, %v4032_v43  ;;  %v1220_v63 = vadd.f32 %v1219_v19, %v4040_v25  ;;  %v1251_v3 = vadd.f32 %v1250_v16, %v4048_v57  ;;  %v6124_v8 = vsub.f32 %v6122_v52, %v6123_v12  ;;  %v6127_v60 = vld [vmem:[#allocation380_spill] sm:$0xff]  ;;  %v6130_v6 = vld [vmem:[#allocation381_spill] sm:$0xff]  ;;  %v6131_v19 = vld [vmem:[#allocation386_spill] sm:$0xff] }
 0x1e6   :  { %v1079_v46 = vand.u32 2147483647, %v6118_v33  ;;  %v1082_v39 = vand.u32 2147483647, %v6121_v31  ;;  %v1282_v13 = vadd.f32 %v1281_v36, %v6125_v4  ;;  %v1313_v0 = vadd.f32 %v1312_v2, %v6126_v14  ;;  %v6133_v33 = vld [vmem:[#allocation125_spill] sm:$0xff]  ;;  %v6134_v36 = vld [vmem:[#allocation387_spill] sm:$0xff] }
 0x1e7   :  { %v1083_v44 = vand.u32 2147483647, %v6124_v8  ;;  %v1344_v54 = vadd.f32 %v1343_v24, %v4072_v27  ;;  %v6129_v10 = vsub.f32 %v6127_v60, %v6128_v17  ;;  %v1190_v43 = vadd.f32 %v1189_v1, %v4080_v56  ;;  %v6136_v58 = vld [vmem:[#allocation383_spill] sm:$0xff]  ;;  %v6137_v55 = vld [vmem:[#allocation388_spill] sm:$0xff]  ;;  %v6142_v8 = vld [vmem:[#allocation113_spill] sm:$0xff] }
 0x1e8   :  { %v1221_v25 = vadd.f32 %v1220_v63, %v4088_v15  ;;  %v1252_v57 = vadd.f32 %v1251_v3, %v4096_v11  ;;  %v6132_v37 = vsub.f32 %v6130_v6, %v6131_v19  ;;  %v1283_v20 = vadd.f32 %v1282_v13, %v4104_v48  ;;  %v6139_v63 = vld [vmem:[#allocation112_spill] sm:$0xff]  ;;  %v6140_v3 = vld [vmem:[#allocation389_spill] sm:$0xff]  ;;  %v6143_v4 = vld [vmem:[#allocation130_spill] sm:$0xff] }
 0x1e9   :  { %v1084_v9 = vand.u32 2147483647, %v6129_v10  ;;  %v1314_v45 = vadd.f32 %v1313_v0, %v4112_v35  ;;  %v1345_v27 = vadd.f32 %v1344_v54, %v4120_v41  ;;  %v6135_v2 = vsub.f32 %v6133_v33, %v6134_v36  ;;  %v6145_v0 = vld [vmem:[#allocation127_spill] sm:$0xff]  ;;  %v6146_v54 = vld [vmem:[#allocation390_spill] sm:$0xff]  ;;  %v6148_v10 = vld [vmem:[#allocation117_spill] sm:$0xff] }
 0x1ea   :  { %v1085_v16 = vand.u32 2147483647, %v6132_v37  ;;  %v1191_v56 = vadd.f32 %v1190_v43, %v4128_v28  ;;  %v1222_v15 = vadd.f32 %v1221_v25, %v4136_v34  ;;  %v1253_v11 = vadd.f32 %v1252_v57, %v4144_v49  ;;  %v6149_v43 = vld [vmem:[#allocation131_spill] sm:$0xff]  ;;  %v6151_v6 = vld [vmem:[#allocation118_spill] sm:$0xff] }
 0x1eb   :  { %v1086_v24 = vand.u32 2147483647, %v6135_v2  ;;  %v6138_v31 = vsub.f32 %v6136_v58, %v6137_v55  ;;  %v1284_v48 = vadd.f32 %v1283_v20, %v4152_v29  ;;  %v1315_v35 = vadd.f32 %v1314_v45, %v4160_v51  ;;  %v6152_v19 = vld [vmem:[#allocation391_spill] sm:$0xff] }
 0x1ec   :  { %v1346_v41 = vadd.f32 %v1345_v27, %v4168_v23  ;;  %v6141_v52 = vsub.f32 %v6139_v63, %v6140_v3  ;;  %v1192_v28 = vadd.f32 %v1191_v56, %v4176_v47  ;;  %v1223_v34 = vadd.f32 %v1222_v15, %v4184_v32  ;;  %v6154_v27 = vld [vmem:[#allocation119_spill] sm:$0xff] }
 0x1ed   :  { %v1087_v1 = vand.u32 2147483647, %v6138_v31  ;;  %v1254_v49 = vadd.f32 %v1253_v11, %v4192_v5  ;;  %v6144_v13 = vsub.f32 %v6142_v8, %v6143_v4  ;;  %v1285_v29 = vadd.f32 %v1284_v48, %v4200_v18 }
 0x1ee   :  { %v1090_v12 = vand.u32 2147483647, %v6141_v52  ;;  %v1316_v51 = vadd.f32 %v1315_v35, %v4208_v22  ;;  %v1347_v23 = vadd.f32 %v1346_v41, %v4216_v62  ;;  %v6147_v60 = vsub.f32 %v6145_v0, %v6146_v54 }
 0x1ef   :  { %v1091_v14 = vand.u32 2147483647, %v6144_v13  ;;  %v1193_v47 = vadd.f32 %v1192_v28, %v4224_v26  ;;  %v1224_v32 = vadd.f32 %v1223_v34, %v4232_v59  ;;  %v1255_v5 = vadd.f32 %v1254_v49, %v4240_v50  ;;  %v6155_v50 = vld [vmem:[#allocation132_spill] sm:$0xff] }
 0x1f0   :  { %v1092_v17 = vand.u32 2147483647, %v6147_v60  ;;  %v6150_v25 = vsub.f32 %v6148_v10, %v6149_v43  ;;  %v1286_v18 = vadd.f32 %v1285_v29, %v4248_v53  ;;  %v1317_v22 = vadd.f32 %v1316_v51, %v4256_v21 }
 0x1f1   :  { %v1348_v62 = vadd.f32 %v1347_v23, %v4264_v61  ;;  %v6153_v37 = vsub.f32 %v6151_v6, %v6152_v19  ;;  %v1194_v26 = vadd.f32 %v1193_v47, %v4272_v40  ;;  %v1225_v45 = vadd.f32 %v1224_v32, %v1075_v30 }
 0x1f2   :  { %v1093_v57 = vand.u32 2147483647, %v6150_v25  ;;  %v1256_v59 = vadd.f32 %v1255_v5, %v1076_v7  ;;  %v6156_v33 = vsub.f32 %v6154_v27, %v6155_v50  ;;  %v1287_v2 = vadd.f32 %v1286_v18, %v1077_v42 }
 0x1f3   :  { %v1094_v20 = vand.u32 2147483647, %v6153_v37  ;;  %v1318_v56 = vadd.f32 %v1317_v22, %v1078_v38  ;;  %v1349_v15 = vadd.f32 %v1348_v62, %v1079_v46  ;;  %v1195_v53 = vadd.f32 %v1194_v26, %v1082_v39 }
 0x1f4   :  { %v1095_v36 = vand.u32 2147483647, %v6156_v33  ;;  %v1226_v11 = vadd.f32 %v1225_v45, %v1083_v44  ;;  %v1257_v21 = vadd.f32 %v1256_v59, %v1084_v9  ;;  %v1288_v58 = vadd.f32 %v1287_v2, %v1085_v16 }
 0x1f5   :  { %v1319_v61 = vadd.f32 %v1318_v56, %v1086_v24  ;;  %v1350_v55 = vadd.f32 %v1349_v15, %v1087_v1  ;;  %v1196_v31 = vadd.f32 %v1195_v53, %v1090_v12 }
 0x1f6   :  { %v1227_v48 = vadd.f32 %v1226_v11, %v1091_v14  ;;  %v1258_v35 = vadd.f32 %v1257_v21, %v1092_v17  ;;  %v1289_v40 = vadd.f32 %v1288_v58, %v1093_v57 }
 0x1f7   :  { %v1320_v30 = vadd.f32 %v1319_v61, %v1094_v20  ;;  %v1351_v7 = vadd.f32 %v1350_v55, %v1095_v36  ;;  %1362 = vst [vmem:[#allocation7 + $0x10] sm:$0xff] %v1196_v31 }
 0x1f8   :  { %1363 = vst [vmem:[#allocation7 + $0x18] sm:$0xff] %v1227_v48  ;;  %1364 = vst [vmem:[#allocation7 + $0x20] sm:$0xff] %v1258_v35 }
 0x1f9   :  { %1365 = vst [vmem:[#allocation7 + $0x28] sm:$0xff] %v1289_v40  ;;  %1366 = vst [vmem:[#allocation7 + $0x30] sm:$0xff] %v1320_v30 }
 0x1fa   :  { %1367 = vst [vmem:[#allocation7 + $0x38] sm:$0xff] %v1351_v7 }
 0x1fb   :  { %1451 = shalt.err (!%p1448_p6)
}
 0x1fc   :  { %s1452_s10 = scalar_lea.hbm %s4391_s2, 1024 }
 0x1fd   :  { %p1453_p7 = scmp.ne.s32.totalorder %s4391_s2, %s1452_s10  ;;  %p1456_p8 = scmp.lt.u32.totalorder %s1452_s10, %s4391_s2 }
 0x1ff   :  { %p1458_p9 = pnand %p1456_p8, %p1453_p7 }
 0x201   :  { %1461 = shalt.err (!%p1458_p9)
}
 0x202   :  { %1379 = dma.vmem_to_hbm [thread:$0]  %s1374_s6, 1024, %s4391_s2, [#allocation4], %s1469_s19, %s1469_s19, %s1470_s20  }
 0x203   :  { %1466 = dma.done.wait [#allocation4], 1024  }
 0x204   :  { %1467 = vsyncadd [#allocation4], 4294966272 }
 0x205   :  { %1383 = vsyncpa [#allocation3], 1 }
 0x206   :  { %1384 = vsyncpa [#allocation6], 1 }
 0x207   :  { %1385 = vsyncpa [#allocation4], 1 }

</bundles_post_ra>
